<compile_context>
chip_gen: v6e
topology: v6e:2x2x1
jax: 0.10.0
libtpu: 0.0.40
codegen_flags: <defaults>
</compile_context>

<pallas_src>
import functools

import jax
import jax.numpy as jnp
from jax import lax
from jax.experimental import pallas as pl
from jax.experimental.pallas import tpu as pltpu


# -----------------------------------------------------------------------------
# Fused per-branch kernel: ResNetBlock + LSTM(last hidden)
# -----------------------------------------------------------------------------
def _branch_kernel(xp_ref, w1_ref, b1_ref, w2_ref, b2_ref, wsc_ref, bsc_ref,
                   wih_ref, whh_ref, bl_ref, out_ref, h1p_scr,
                   *, B, L, C_in, C_out, H):
    # ---- ResNet block (conv as 3 shifted matmuls; BN already folded into w/b) ----
    xp = xp_ref[0]                                         # (B, L+2, C_in), zero-padded on L
    w1 = w1_ref[0]                                         # (3, C_in, C_out)
    w2 = w2_ref[0]                                         # (3, C_out, C_out)

    xm1 = xp[:, 0:L, :].reshape(B * L, C_in)               # x[t-1]
    xc = xp[:, 1:L + 1, :].reshape(B * L, C_in)            # x[t]
    xp1 = xp[:, 2:L + 2, :].reshape(B * L, C_in)           # x[t+1]

    shortcut = jnp.dot(xc, wsc_ref[0], preferred_element_type=jnp.float32) + bsc_ref[0]

    h1 = (jnp.dot(xm1, w1[0], preferred_element_type=jnp.float32)
          + jnp.dot(xc, w1[1], preferred_element_type=jnp.float32)
          + jnp.dot(xp1, w1[2], preferred_element_type=jnp.float32)
          + b1_ref[0])
    h1 = jnp.maximum(h1, 0.0)                              # (B*L, C_out), rows = (b, t)

    # Zero-pad h1 along L inside VMEM scratch, then take the three shifted windows.
    h1p_scr[...] = jnp.zeros_like(h1p_scr)
    h1p_scr[:, 1:L + 1, :] = h1.reshape(B, L, C_out)
    h1m1 = h1p_scr[:, 0:L, :].reshape(B * L, C_out)        # h1[t-1]
    h1p1 = h1p_scr[:, 2:L + 2, :].reshape(B * L, C_out)    # h1[t+1]

    h2 = (jnp.dot(h1m1, w2[0], preferred_element_type=jnp.float32)
          + jnp.dot(h1, w2[1], preferred_element_type=jnp.float32)
          + jnp.dot(h1p1, w2[2], preferred_element_type=jnp.float32)
          + b2_ref[0])
    seq = jnp.maximum(h2 + shortcut, 0.0)                  # (B*L, C_out), rows = (b, t)

    # ---- LSTM over T = L steps, whole sequence resident in VMEM ----
    wih = wih_ref[0]                                       # (4, C_out, H)  gate order i,f,g,o
    whh = whh_ref[0]                                       # (4, H, H)
    bl = bl_ref[0]                                         # (4, 1, H)  (b_ih + b_hh)

    # Precompute input->gate contributions for all timesteps (one matmul per gate).
    gx = [(jnp.dot(seq, wih[g], preferred_element_type=jnp.float32)
           + bl[g]).reshape(B, L, H) for g in range(4)]

    h = jnp.zeros((B, H), jnp.float32)
    c = jnp.zeros((B, H), jnp.float32)
    # Fully unrolled static time loop (T=16): per-step body is 4 small MXU dots + elementwise.
    for t in range(L):
        i_g = jax.nn.sigmoid(gx[0][:, t, :]
                             + jnp.dot(h, whh[0], preferred_element_type=jnp.float32))
        f_g = jax.nn.sigmoid(gx[1][:, t, :]
                             + jnp.dot(h, whh[1], preferred_element_type=jnp.float32))
        g_g = jnp.tanh(gx[2][:, t, :]
                       + jnp.dot(h, whh[2], preferred_element_type=jnp.float32))
        o_g = jax.nn.sigmoid(gx[3][:, t, :]
                             + jnp.dot(h, whh[3], preferred_element_type=jnp.float32))
        c = f_g * c + i_g * g_g
        h = o_g * jnp.tanh(c)

    out_ref[0] = h                                         # (B, H) last hidden state


def fused_branch_forward(xp, w1, b1, w2, b2, wsc, bsc, wih, whh, bl):
    """xp: (2, B, L+2, C_in) zero-padded inputs; returns last hidden states (2, B, H)."""
    nb, B, lp2, C_in = xp.shape
    L = lp2 - 2
    C_out = w1.shape[-1]
    H = whh.shape[-1]
    kernel = functools.partial(_branch_kernel, B=B, L=L, C_in=C_in, C_out=C_out, H=H)
    return pl.pallas_call(
        kernel,
        grid=(nb,),
        in_specs=[
            pl.BlockSpec((1, B, lp2, C_in), lambda i: (i, 0, 0, 0)),
            pl.BlockSpec((1, 3, C_in, C_out), lambda i: (i, 0, 0, 0)),
            pl.BlockSpec((1, 1, C_out), lambda i: (i, 0, 0)),
            pl.BlockSpec((1, 3, C_out, C_out), lambda i: (i, 0, 0, 0)),
            pl.BlockSpec((1, 1, C_out), lambda i: (i, 0, 0)),
            pl.BlockSpec((1, C_in, C_out), lambda i: (i, 0, 0)),
            pl.BlockSpec((1, 1, C_out), lambda i: (i, 0, 0)),
            pl.BlockSpec((1, 4, C_out, H), lambda i: (i, 0, 0, 0)),
            pl.BlockSpec((1, 4, H, H), lambda i: (i, 0, 0, 0)),
            pl.BlockSpec((1, 4, 1, H), lambda i: (i, 0, 0, 0)),
        ],
        out_specs=pl.BlockSpec((1, B, H), lambda i: (i, 0, 0)),
        out_shape=jax.ShapeDtypeStruct((nb, B, H), jnp.float32),
        scratch_shapes=[pltpu.VMEM((B, L + 2, C_out), jnp.float32)],
        compiler_params=pltpu.CompilerParams(dimension_semantics=("parallel",)),
    )(xp, w1, b1, w2, b2, wsc, bsc, wih, whh, bl)


# -----------------------------------------------------------------------------
# Parameter init (PyTorch-like) and kernel-ready preparation
# -----------------------------------------------------------------------------
def init_params(key, input_size, resnet_channels, hidden):
    keys = iter(jax.random.split(key, 64))

    def unif(shape, fan_in):
        b = 1.0 / (fan_in ** 0.5)
        return jax.random.uniform(next(keys), shape, jnp.float32, -b, b)

    def bn_init(c):
        return {'gamma': jnp.ones((c,), jnp.float32), 'beta': jnp.zeros((c,), jnp.float32),
                'mean': jnp.zeros((c,), jnp.float32), 'var': jnp.ones((c,), jnp.float32)}

    p = {}
    for name in ('x1', 'x2'):
        p[f'res_{name}'] = {
            'w1': unif((resnet_channels, input_size, 3), input_size * 3),
            'b1': unif((resnet_channels,), input_size * 3),
            'bn1': bn_init(resnet_channels),
            'w2': unif((resnet_channels, resnet_channels, 3), resnet_channels * 3),
            'b2': unif((resnet_channels,), resnet_channels * 3),
            'bn2': bn_init(resnet_channels),
            'w_sc': unif((resnet_channels, input_size, 1), input_size),
            'b_sc': unif((resnet_channels,), input_size),
        }
        p[f'lstm_{name}'] = {
            'w_ih': unif((4 * hidden, resnet_channels), hidden),
            'w_hh': unif((4 * hidden, hidden), hidden),
            'b_ih': unif((4 * hidden,), hidden),
            'b_hh': unif((4 * hidden,), hidden),
        }
    p['fc_lstm_w'] = unif((2, hidden), hidden)
    p['fc_lstm_b'] = unif((2,), hidden)
    p['fc_x1_w'] = unif((1, 3), 3)
    p['fc_x1_b'] = unif((1,), 3)
    p['fc_x2_w'] = unif((1, 3), 3)
    p['fc_x2_b'] = unif((1,), 3)
    return p


def prepare_params(p, hidden, eps=1e-5):
    """One-time host-side prep: fold eval-mode BN into conv weights, split gates, stack branches."""
    def fold_conv_bn(w, b, bn):
        scale = bn['gamma'] / jnp.sqrt(bn['var'] + eps)            # (C_out,)
        shift = bn['beta'] - bn['mean'] * scale
        w_taps = jnp.transpose(w, (2, 1, 0)) * scale               # (K, C_in, C_out)
        b_eff = (b * scale + shift).reshape(1, -1)                 # (1, C_out)
        return w_taps, b_eff

    def prep_res(r):
        w1, b1 = fold_conv_bn(r['w1'], r['b1'], r['bn1'])
        w2, b2 = fold_conv_bn(r['w2'], r['b2'], r['bn2'])
        wsc = jnp.transpose(r['w_sc'][:, :, 0], (1, 0))            # (C_in, C_out)
        bsc = r['b_sc'].reshape(1, -1)
        return w1, b1, w2, b2, wsc, bsc

    def prep_lstm(l):
        wih = jnp.transpose(l['w_ih'].reshape(4, hidden, -1), (0, 2, 1))       # (4, C, H)
        whh = jnp.transpose(l['w_hh'].reshape(4, hidden, hidden), (0, 2, 1))   # (4, H, H)
        b = (l['b_ih'] + l['b_hh']).reshape(4, 1, hidden)                      # (4, 1, H)
        return wih, whh, b

    r1, r2 = prep_res(p['res_x1']), prep_res(p['res_x2'])
    l1, l2 = prep_lstm(p['lstm_x1']), prep_lstm(p['lstm_x2'])
    return {
        'res_w1': jnp.stack([r1[0], r2[0]]), 'res_b1': jnp.stack([r1[1], r2[1]]),
        'res_w2': jnp.stack([r1[2], r2[2]]), 'res_b2': jnp.stack([r1[3], r2[3]]),
        'res_wsc': jnp.stack([r1[4], r2[4]]), 'res_bsc': jnp.stack([r1[5], r2[5]]),
        'lstm_wih': jnp.stack([l1[0], l2[0]]), 'lstm_whh': jnp.stack([l1[1], l2[1]]),
        'lstm_b': jnp.stack([l1[2], l2[2]]),
        'fc_lstm_w': p['fc_lstm_w'], 'fc_lstm_b': p['fc_lstm_b'],
        'fc_x1_w': p['fc_x1_w'], 'fc_x1_b': p['fc_x1_b'],
        'fc_x2_w': p['fc_x2_w'], 'fc_x2_b': p['fc_x2_b'],
    }


# -----------------------------------------------------------------------------
# Full forward pass
# -----------------------------------------------------------------------------
@jax.jit
def model_forward(pp, x1, x2, y1, y2):
    x = jnp.stack([x1, x2], axis=0)                        # (2, B, C_in, L)
    x = jnp.transpose(x, (0, 1, 3, 2))                     # (2, B, L, C_in)
    xp = jnp.pad(x, ((0, 0), (0, 0), (1, 1), (0, 0)))      # (2, B, L+2, C_in)

    h_last = fused_branch_forward(
        xp, pp['res_w1'], pp['res_b1'], pp['res_w2'], pp['res_b2'],
        pp['res_wsc'], pp['res_bsc'], pp['lstm_wih'], pp['lstm_whh'], pp['lstm_b'])  # (2, B, H)

    lstm_out = jnp.einsum('nbh,oh->nbo', h_last, pp['fc_lstm_w']) + pp['fc_lstm_b']  # (2, B, 2)
    x1_in = jnp.concatenate([lstm_out[0], y1], axis=1)     # (B, 3)
    x2_in = jnp.concatenate([lstm_out[1], y2], axis=1)     # (B, 3)
    x1_pred = x1_in @ pp['fc_x1_w'].T + pp['fc_x1_b']      # (B, 1)
    x2_pred = x2_in @ pp['fc_x2_w'].T + pp['fc_x2_b']      # (B, 1)
    return jnp.concatenate([x1_pred, x2_pred], axis=1)     # (B, 2)


# -----------------------------------------------------------------------------
# Pure-JAX (XLA) reference of the PyTorch module, for a sanity check
# -----------------------------------------------------------------------------
def ref_forward(params, x1, x2, y1, y2, hidden, eps=1e-5):
    def conv1d(x, w, b, pad):
        y = lax.conv_general_dilated(x, w, window_strides=(1,), padding=[(pad, pad)],
                                     dimension_numbers=('NCH', 'OIH', 'NCH'))
        return y + b[None, :, None]

    def bn(x, bnp):
        scale = bnp['gamma'] / jnp.sqrt(bnp['var'] + eps)
        shift = bnp['beta'] - bnp['mean'] * scale
        return x * scale[None, :, None] + shift[None, :, None]

    def resblock(x, r):
        sc = conv1d(x, r['w_sc'], r['b_sc'], 0)
        h = jax.nn.relu(bn(conv1d(x, r['w1'], r['b1'], 1), r['bn1']))
        h = bn(conv1d(h, r['w2'], r['b2'], 1), r['bn2'])
        return jax.nn.relu(h + sc)

    def lstm_last(x_blc, l):
        B = x_blc.shape[0]

        def step(carry, x_t):
            h, c = carry
            gates = x_t @ l['w_ih'].T + h @ l['w_hh'].T + l['b_ih'] + l['b_hh']
            i, f, g, o = jnp.split(gates, 4, axis=1)
            c = jax.nn.sigmoid(f) * c + jax.nn.sigmoid(i) * jnp.tanh(g)
            h = jax.nn.sigmoid(o) * jnp.tanh(c)
            return (h, c), None

        init = (jnp.zeros((B, hidden), jnp.float32), jnp.zeros((B, hidden), jnp.float32))
        (h, _), _ = lax.scan(step, init, jnp.transpose(x_blc, (1, 0, 2)))
        return h

    s1 = jnp.transpose(resblock(x1, params['res_x1']), (0, 2, 1))
    s2 = jnp.transpose(resblock(x2, params['res_x2']), (0, 2, 1))
    h1 = lstm_last(s1, params['lstm_x1'])
    h2 = lstm_last(s2, params['lstm_x2'])
    o1 = h1 @ params['fc_lstm_w'].T + params['fc_lstm_b']
    o2 = h2 @ params['fc_lstm_w'].T + params['fc_lstm_b']
    p1 = jnp.concatenate([o1, y1], axis=1) @ params['fc_x1_w'].T + params['fc_x1_b']
    p2 = jnp.concatenate([o2, y2], axis=1) @ params['fc_x2_w'].T + params['fc_x2_b']
    return jnp.concatenate([p1, p2], axis=1)


if __name__ == "__main__":
    B, INPUT_SIZE, L = 2, 4, 16
    RESNET_CHANNELS, LSTM_HIDDEN = 8, 32

    key = jax.random.PRNGKey(0)
    k_params, k_x1, k_x2, k_y1, k_y2 = jax.random.split(key, 5)

    params = init_params(k_params, INPUT_SIZE, RESNET_CHANNELS, LSTM_HIDDEN)
    prepared = prepare_params(params, LSTM_HIDDEN)

    x1 = jax.random.normal(k_x1, (B, INPUT_SIZE, L), jnp.float32)
    x2 = jax.random.normal(k_x2, (B, INPUT_SIZE, L), jnp.float32)
    y1 = jax.random.normal(k_y1, (B, 1), jnp.float32)
    y2 = jax.random.normal(k_y2, (B, 1), jnp.float32)

    out = model_forward(prepared, x1, x2, y1, y2)
    jax.block_until_ready(out)
    assert out.shape == (B, 2), out.shape

    ref = ref_forward(params, x1, x2, y1, y2, LSTM_HIDDEN)
    max_err = float(jnp.max(jnp.abs(out - ref)))
    assert max_err < 5e-2, f"kernel vs reference max abs err {max_err}"

    print("KERNEL_OK")
</pallas_src>

<mosaic_0001>
module attributes {stable_mosaic.version = 11 : i64} {
  func.func @_branch_kernel(%arg0: i32, %arg1: memref<1x2x18x4xf32, #tpu.memory_space<vmem>>, %arg2: memref<1x3x4x8xf32, #tpu.memory_space<vmem>>, %arg3: memref<1x1x8xf32, #tpu.memory_space<vmem>>, %arg4: memref<1x3x8x8xf32, #tpu.memory_space<vmem>>, %arg5: memref<1x1x8xf32, #tpu.memory_space<vmem>>, %arg6: memref<1x4x8xf32, #tpu.memory_space<vmem>>, %arg7: memref<1x1x8xf32, #tpu.memory_space<vmem>>, %arg8: memref<1x4x8x32xf32, #tpu.memory_space<vmem>>, %arg9: memref<1x4x32x32xf32, #tpu.memory_space<vmem>>, %arg10: memref<1x4x1x32xf32, #tpu.memory_space<vmem>>, %arg11: memref<1x2x32xf32, #tpu.memory_space<vmem>>, %arg12: memref<2x18x8xf32, #tpu.memory_space<vmem>>) attributes {dimension_semantics = [#tpu.dimension_semantics<parallel>], iteration_bounds = array<i64: 2>, scalar_prefetch = 0 : i64, scratch_operands = 1 : i64, tpu.core_type = #tpu.core_type<tc>, window_params = [{transform_indices = @transform_0, window_bounds = array<i64: 1, 2, 18, 4>}, {transform_indices = @transform_1, window_bounds = array<i64: 1, 3, 4, 8>}, {transform_indices = @transform_2, window_bounds = array<i64: 1, 1, 8>}, {transform_indices = @transform_3, window_bounds = array<i64: 1, 3, 8, 8>}, {transform_indices = @transform_4, window_bounds = array<i64: 1, 1, 8>}, {transform_indices = @transform_5, window_bounds = array<i64: 1, 4, 8>}, {transform_indices = @transform_6, window_bounds = array<i64: 1, 1, 8>}, {transform_indices = @transform_7, window_bounds = array<i64: 1, 4, 8, 32>}, {transform_indices = @transform_8, window_bounds = array<i64: 1, 4, 32, 32>}, {transform_indices = @transform_9, window_bounds = array<i64: 1, 4, 1, 32>}, {transform_indices = @transform_10, window_bounds = array<i64: 1, 2, 32>}]} {
    %c0 = arith.constant 0 : index
    %c0_0 = arith.constant 0 : index
    %c0_1 = arith.constant 0 : index
    %c0_2 = arith.constant 0 : index
    %0 = vector.load %arg1[%c0, %c0_0, %c0_1, %c0_2] : memref<1x2x18x4xf32, #tpu.memory_space<vmem>>, vector<1x2x18x4xf32>
    %1 = vector.shape_cast %0 : vector<1x2x18x4xf32> to vector<2x18x4xf32>
    %c0_3 = arith.constant 0 : index
    %c0_4 = arith.constant 0 : index
    %c0_5 = arith.constant 0 : index
    %c0_6 = arith.constant 0 : index
    %2 = vector.load %arg2[%c0_3, %c0_4, %c0_5, %c0_6] : memref<1x3x4x8xf32, #tpu.memory_space<vmem>>, vector<1x3x4x8xf32>
    %3 = vector.shape_cast %2 : vector<1x3x4x8xf32> to vector<3x4x8xf32>
    %c0_7 = arith.constant 0 : index
    %c0_8 = arith.constant 0 : index
    %c0_9 = arith.constant 0 : index
    %c0_10 = arith.constant 0 : index
    %4 = vector.load %arg4[%c0_7, %c0_8, %c0_9, %c0_10] : memref<1x3x8x8xf32, #tpu.memory_space<vmem>>, vector<1x3x8x8xf32>
    %5 = vector.shape_cast %4 : vector<1x3x8x8xf32> to vector<3x8x8xf32>
    %6 = vector.extract_strided_slice %1 {offsets = [0, 0, 0], sizes = [2, 16, 4], strides = [1, 1, 1]} : vector<2x18x4xf32> to vector<2x16x4xf32>
    %7 = vector.shape_cast %6 : vector<2x16x4xf32> to vector<32x4xf32>
    %8 = vector.extract_strided_slice %1 {offsets = [0, 1, 0], sizes = [2, 16, 4], strides = [1, 1, 1]} : vector<2x18x4xf32> to vector<2x16x4xf32>
    %9 = vector.shape_cast %8 : vector<2x16x4xf32> to vector<32x4xf32>
    %10 = vector.extract_strided_slice %1 {offsets = [0, 2, 0], sizes = [2, 16, 4], strides = [1, 1, 1]} : vector<2x18x4xf32> to vector<2x16x4xf32>
    %11 = vector.shape_cast %10 : vector<2x16x4xf32> to vector<32x4xf32>
    %c0_11 = arith.constant 0 : index
    %c0_12 = arith.constant 0 : index
    %c0_13 = arith.constant 0 : index
    %12 = vector.load %arg6[%c0_11, %c0_12, %c0_13] : memref<1x4x8xf32, #tpu.memory_space<vmem>>, vector<1x4x8xf32>
    %13 = vector.shape_cast %12 : vector<1x4x8xf32> to vector<4x8xf32>
    %cst = arith.constant dense<0.000000e+00> : vector<32x8xf32>
    %14 = tpu.matmul %9, %13, %cst {dimension_numbers = #tpu.dot_dimension_numbers<[1], [0], [0], [1], [0, 0, 1, 1], [], []>} : vector<32x4xf32>, vector<4x8xf32>, vector<32x8xf32> -> vector<32x8xf32>
    %c0_14 = arith.constant 0 : index
    %c0_15 = arith.constant 0 : index
    %c0_16 = arith.constant 0 : index
    %15 = vector.load %arg7[%c0_14, %c0_15, %c0_16] : memref<1x1x8xf32, #tpu.memory_space<vmem>>, vector<1x1x8xf32>
    %16 = vector.shape_cast %15 : vector<1x1x8xf32> to vector<1x8xf32>
    %17 = vector.broadcast %16 : vector<1x8xf32> to vector<32x8xf32>
    %18 = arith.addf %14, %17 : vector<32x8xf32>
    %19 = vector.extract_strided_slice %3 {offsets = [0, 0, 0], sizes = [1, 4, 8], strides = [1, 1, 1]} : vector<3x4x8xf32> to vector<1x4x8xf32>
    %20 = vector.shape_cast %19 : vector<1x4x8xf32> to vector<4x8xf32>
    %cst_17 = arith.constant dense<0.000000e+00> : vector<32x8xf32>
    %21 = tpu.matmul %7, %20, %cst_17 {dimension_numbers = #tpu.dot_dimension_numbers<[1], [0], [0], [1], [0, 0, 1, 1], [], []>} : vector<32x4xf32>, vector<4x8xf32>, vector<32x8xf32> -> vector<32x8xf32>
    %22 = vector.extract_strided_slice %3 {offsets = [1, 0, 0], sizes = [1, 4, 8], strides = [1, 1, 1]} : vector<3x4x8xf32> to vector<1x4x8xf32>
    %23 = vector.shape_cast %22 : vector<1x4x8xf32> to vector<4x8xf32>
    %cst_18 = arith.constant dense<0.000000e+00> : vector<32x8xf32>
    %24 = tpu.matmul %9, %23, %cst_18 {dimension_numbers = #tpu.dot_dimension_numbers<[1], [0], [0], [1], [0, 0, 1, 1], [], []>} : vector<32x4xf32>, vector<4x8xf32>, vector<32x8xf32> -> vector<32x8xf32>
    %25 = arith.addf %21, %24 : vector<32x8xf32>
    %26 = vector.extract_strided_slice %3 {offsets = [2, 0, 0], sizes = [1, 4, 8], strides = [1, 1, 1]} : vector<3x4x8xf32> to vector<1x4x8xf32>
    %27 = vector.shape_cast %26 : vector<1x4x8xf32> to vector<4x8xf32>
    %cst_19 = arith.constant dense<0.000000e+00> : vector<32x8xf32>
    %28 = tpu.matmul %11, %27, %cst_19 {dimension_numbers = #tpu.dot_dimension_numbers<[1], [0], [0], [1], [0, 0, 1, 1], [], []>} : vector<32x4xf32>, vector<4x8xf32>, vector<32x8xf32> -> vector<32x8xf32>
    %29 = arith.addf %25, %28 : vector<32x8xf32>
    %c0_20 = arith.constant 0 : index
    %c0_21 = arith.constant 0 : index
    %c0_22 = arith.constant 0 : index
    %30 = vector.load %arg3[%c0_20, %c0_21, %c0_22] : memref<1x1x8xf32, #tpu.memory_space<vmem>>, vector<1x1x8xf32>
    %31 = vector.shape_cast %30 : vector<1x1x8xf32> to vector<1x8xf32>
    %32 = vector.broadcast %31 : vector<1x8xf32> to vector<32x8xf32>
    %33 = arith.addf %29, %32 : vector<32x8xf32>
    %cst_23 = arith.constant 0.000000e+00 : f32
    %34 = vector.broadcast %cst_23 : f32 to vector<32x8xf32>
    %35 = arith.maximumf %33, %34 : vector<32x8xf32>
    %cst_24 = arith.constant 0.000000e+00 : f32
    %36 = vector.broadcast %cst_24 : f32 to vector<2x18x8xf32>
    %c0_25 = arith.constant 0 : index
    %c0_26 = arith.constant 0 : index
    %c0_27 = arith.constant 0 : index
    %37 = vector.load %arg12[%c0_25, %c0_26, %c0_27] : memref<2x18x8xf32, #tpu.memory_space<vmem>>, vector<2x18x8xf32>
    tpu.vector_store %arg12[%c0_25, %c0_26, %c0_27], %36 {strides = array<i32>} : memref<2x18x8xf32, #tpu.memory_space<vmem>>, vector<2x18x8xf32>,
    %38 = vector.shape_cast %35 : vector<32x8xf32> to vector<2x16x8xf32>
    %c0_28 = arith.constant 0 : index
    %c1 = arith.constant 1 : index
    %c0_29 = arith.constant 0 : index
    %39 = vector.load %arg12[%c0_28, %c1, %c0_29] : memref<2x18x8xf32, #tpu.memory_space<vmem>>, vector<2x16x8xf32>
    tpu.vector_store %arg12[%c0_28, %c1, %c0_29], %38 {strides = array<i32>} : memref<2x18x8xf32, #tpu.memory_space<vmem>>, vector<2x16x8xf32>,
    %c0_30 = arith.constant 0 : index
    %c0_31 = arith.constant 0 : index
    %c0_32 = arith.constant 0 : index
    %40 = vector.load %arg12[%c0_30, %c0_31, %c0_32] : memref<2x18x8xf32, #tpu.memory_space<vmem>>, vector<2x16x8xf32>
    %41 = vector.shape_cast %40 : vector<2x16x8xf32> to vector<32x8xf32>
    %c0_33 = arith.constant 0 : index
    %c2 = arith.constant 2 : index
    %c0_34 = arith.constant 0 : index
    %42 = vector.load %arg12[%c0_33, %c2, %c0_34] : memref<2x18x8xf32, #tpu.memory_space<vmem>>, vector<2x16x8xf32>
    %43 = vector.shape_cast %42 : vector<2x16x8xf32> to vector<32x8xf32>
    %44 = vector.extract_strided_slice %5 {offsets = [0, 0, 0], sizes = [1, 8, 8], strides = [1, 1, 1]} : vector<3x8x8xf32> to vector<1x8x8xf32>
    %45 = vector.shape_cast %44 : vector<1x8x8xf32> to vector<8x8xf32>
    %cst_35 = arith.constant dense<0.000000e+00> : vector<32x8xf32>
    %46 = tpu.matmul %41, %45, %cst_35 {dimension_numbers = #tpu.dot_dimension_numbers<[1], [0], [0], [1], [0, 0, 1, 1], [], []>} : vector<32x8xf32>, vector<8x8xf32>, vector<32x8xf32> -> vector<32x8xf32>
    %47 = vector.extract_strided_slice %5 {offsets = [1, 0, 0], sizes = [1, 8, 8], strides = [1, 1, 1]} : vector<3x8x8xf32> to vector<1x8x8xf32>
    %48 = vector.shape_cast %47 : vector<1x8x8xf32> to vector<8x8xf32>
    %cst_36 = arith.constant dense<0.000000e+00> : vector<32x8xf32>
    %49 = tpu.matmul %35, %48, %cst_36 {dimension_numbers = #tpu.dot_dimension_numbers<[1], [0], [0], [1], [0, 0, 1, 1], [], []>} : vector<32x8xf32>, vector<8x8xf32>, vector<32x8xf32> -> vector<32x8xf32>
    %50 = arith.addf %46, %49 : vector<32x8xf32>
    %51 = vector.extract_strided_slice %5 {offsets = [2, 0, 0], sizes = [1, 8, 8], strides = [1, 1, 1]} : vector<3x8x8xf32> to vector<1x8x8xf32>
    %52 = vector.shape_cast %51 : vector<1x8x8xf32> to vector<8x8xf32>
    %cst_37 = arith.constant dense<0.000000e+00> : vector<32x8xf32>
    %53 = tpu.matmul %43, %52, %cst_37 {dimension_numbers = #tpu.dot_dimension_numbers<[1], [0], [0], [1], [0, 0, 1, 1], [], []>} : vector<32x8xf32>, vector<8x8xf32>, vector<32x8xf32> -> vector<32x8xf32>
    %54 = arith.addf %50, %53 : vector<32x8xf32>
    %c0_38 = arith.constant 0 : index
    %c0_39 = arith.constant 0 : index
    %c0_40 = arith.constant 0 : index
    %55 = vector.load %arg5[%c0_38, %c0_39, %c0_40] : memref<1x1x8xf32, #tpu.memory_space<vmem>>, vector<1x1x8xf32>
    %56 = vector.shape_cast %55 : vector<1x1x8xf32> to vector<1x8xf32>
    %57 = vector.broadcast %56 : vector<1x8xf32> to vector<32x8xf32>
    %58 = arith.addf %54, %57 : vector<32x8xf32>
    %59 = arith.addf %58, %18 : vector<32x8xf32>
    %cst_41 = arith.constant 0.000000e+00 : f32
    %60 = vector.broadcast %cst_41 : f32 to vector<32x8xf32>
    %61 = arith.maximumf %59, %60 : vector<32x8xf32>
    %c0_42 = arith.constant 0 : index
    %c0_43 = arith.constant 0 : index
    %c0_44 = arith.constant 0 : index
    %c0_45 = arith.constant 0 : index
    %62 = vector.load %arg8[%c0_42, %c0_43, %c0_44, %c0_45] : memref<1x4x8x32xf32, #tpu.memory_space<vmem>>, vector<1x4x8x32xf32>
    %63 = vector.shape_cast %62 : vector<1x4x8x32xf32> to vector<4x8x32xf32>
    %c0_46 = arith.constant 0 : index
    %c0_47 = arith.constant 0 : index
    %c0_48 = arith.constant 0 : index
    %c0_49 = arith.constant 0 : index
    %64 = vector.load %arg9[%c0_46, %c0_47, %c0_48, %c0_49] : memref<1x4x32x32xf32, #tpu.memory_space<vmem>>, vector<1x4x32x32xf32>
    %65 = vector.shape_cast %64 : vector<1x4x32x32xf32> to vector<4x32x32xf32>
    %c0_50 = arith.constant 0 : index
    %c0_51 = arith.constant 0 : index
    %c0_52 = arith.constant 0 : index
    %c0_53 = arith.constant 0 : index
    %66 = vector.load %arg10[%c0_50, %c0_51, %c0_52, %c0_53] : memref<1x4x1x32xf32, #tpu.memory_space<vmem>>, vector<1x4x1x32xf32>
    %67 = vector.shape_cast %66 : vector<1x4x1x32xf32> to vector<4x1x32xf32>
    %68 = vector.extract_strided_slice %63 {offsets = [0, 0, 0], sizes = [1, 8, 32], strides = [1, 1, 1]} : vector<4x8x32xf32> to vector<1x8x32xf32>
    %69 = vector.shape_cast %68 : vector<1x8x32xf32> to vector<8x32xf32>
    %cst_54 = arith.constant dense<0.000000e+00> : vector<32x32xf32>
    %70 = tpu.matmul %61, %69, %cst_54 {dimension_numbers = #tpu.dot_dimension_numbers<[1], [0], [0], [1], [0, 0, 1, 1], [], []>} : vector<32x8xf32>, vector<8x32xf32>, vector<32x32xf32> -> vector<32x32xf32>
    %71 = vector.extract_strided_slice %67 {offsets = [0, 0, 0], sizes = [1, 1, 32], strides = [1, 1, 1]} : vector<4x1x32xf32> to vector<1x1x32xf32>
    %72 = vector.shape_cast %71 : vector<1x1x32xf32> to vector<1x32xf32>
    %73 = vector.broadcast %72 : vector<1x32xf32> to vector<32x32xf32>
    %74 = arith.addf %70, %73 : vector<32x32xf32>
    %75 = vector.shape_cast %74 : vector<32x32xf32> to vector<2x16x32xf32>
    %76 = vector.extract_strided_slice %63 {offsets = [1, 0, 0], sizes = [1, 8, 32], strides = [1, 1, 1]} : vector<4x8x32xf32> to vector<1x8x32xf32>
    %77 = vector.shape_cast %76 : vector<1x8x32xf32> to vector<8x32xf32>
    %cst_55 = arith.constant dense<0.000000e+00> : vector<32x32xf32>
    %78 = tpu.matmul %61, %77, %cst_55 {dimension_numbers = #tpu.dot_dimension_numbers<[1], [0], [0], [1], [0, 0, 1, 1], [], []>} : vector<32x8xf32>, vector<8x32xf32>, vector<32x32xf32> -> vector<32x32xf32>
    %79 = vector.extract_strided_slice %67 {offsets = [1, 0, 0], sizes = [1, 1, 32], strides = [1, 1, 1]} : vector<4x1x32xf32> to vector<1x1x32xf32>
    %80 = vector.shape_cast %79 : vector<1x1x32xf32> to vector<1x32xf32>
    %81 = vector.broadcast %80 : vector<1x32xf32> to vector<32x32xf32>
    %82 = arith.addf %78, %81 : vector<32x32xf32>
    %83 = vector.shape_cast %82 : vector<32x32xf32> to vector<2x16x32xf32>
    %84 = vector.extract_strided_slice %63 {offsets = [2, 0, 0], sizes = [1, 8, 32], strides = [1, 1, 1]} : vector<4x8x32xf32> to vector<1x8x32xf32>
    %85 = vector.shape_cast %84 : vector<1x8x32xf32> to vector<8x32xf32>
    %cst_56 = arith.constant dense<0.000000e+00> : vector<32x32xf32>
    %86 = tpu.matmul %61, %85, %cst_56 {dimension_numbers = #tpu.dot_dimension_numbers<[1], [0], [0], [1], [0, 0, 1, 1], [], []>} : vector<32x8xf32>, vector<8x32xf32>, vector<32x32xf32> -> vector<32x32xf32>
    %87 = vector.extract_strided_slice %67 {offsets = [2, 0, 0], sizes = [1, 1, 32], strides = [1, 1, 1]} : vector<4x1x32xf32> to vector<1x1x32xf32>
    %88 = vector.shape_cast %87 : vector<1x1x32xf32> to vector<1x32xf32>
    %89 = vector.broadcast %88 : vector<1x32xf32> to vector<32x32xf32>
    %90 = arith.addf %86, %89 : vector<32x32xf32>
    %91 = vector.shape_cast %90 : vector<32x32xf32> to vector<2x16x32xf32>
    %92 = vector.extract_strided_slice %63 {offsets = [3, 0, 0], sizes = [1, 8, 32], strides = [1, 1, 1]} : vector<4x8x32xf32> to vector<1x8x32xf32>
    %93 = vector.shape_cast %92 : vector<1x8x32xf32> to vector<8x32xf32>
    %cst_57 = arith.constant dense<0.000000e+00> : vector<32x32xf32>
    %94 = tpu.matmul %61, %93, %cst_57 {dimension_numbers = #tpu.dot_dimension_numbers<[1], [0], [0], [1], [0, 0, 1, 1], [], []>} : vector<32x8xf32>, vector<8x32xf32>, vector<32x32xf32> -> vector<32x32xf32>
    %95 = vector.extract_strided_slice %67 {offsets = [3, 0, 0], sizes = [1, 1, 32], strides = [1, 1, 1]} : vector<4x1x32xf32> to vector<1x1x32xf32>
    %96 = vector.shape_cast %95 : vector<1x1x32xf32> to vector<1x32xf32>
    %97 = vector.broadcast %96 : vector<1x32xf32> to vector<32x32xf32>
    %98 = arith.addf %94, %97 : vector<32x32xf32>
    %99 = vector.shape_cast %98 : vector<32x32xf32> to vector<2x16x32xf32>
    %cst_58 = arith.constant 0.000000e+00 : f32
    %100 = vector.broadcast %cst_58 : f32 to vector<2x32xf32>
    %cst_59 = arith.constant 0.000000e+00 : f32
    %101 = vector.broadcast %cst_59 : f32 to vector<2x32xf32>
    %102 = vector.extract_strided_slice %75 {offsets = [0, 0, 0], sizes = [2, 1, 32], strides = [1, 1, 1]} : vector<2x16x32xf32> to vector<2x1x32xf32>
    %103 = vector.shape_cast %102 : vector<2x1x32xf32> to vector<2x32xf32>
    %104 = vector.extract_strided_slice %65 {offsets = [0, 0, 0], sizes = [1, 32, 32], strides = [1, 1, 1]} : vector<4x32x32xf32> to vector<1x32x32xf32>
    %105 = vector.shape_cast %104 : vector<1x32x32xf32> to vector<32x32xf32>
    %cst_60 = arith.constant dense<0.000000e+00> : vector<2x32xf32>
    %106 = tpu.matmul %100, %105, %cst_60 {dimension_numbers = #tpu.dot_dimension_numbers<[1], [0], [0], [1], [0, 0, 1, 1], [], []>} : vector<2x32xf32>, vector<32x32xf32>, vector<2x32xf32> -> vector<2x32xf32>
    %107 = arith.addf %103, %106 : vector<2x32xf32>
    %108 = arith.negf %107 : vector<2x32xf32>
    %109 = math.exp %108 : vector<2x32xf32>
    %cst_61 = arith.constant 1.000000e+00 : f32
    %110 = vector.broadcast %cst_61 : f32 to vector<2x32xf32>
    %111 = arith.addf %110, %109 : vector<2x32xf32>
    %112 = arith.divf %110, %111 : vector<2x32xf32>
    %113 = vector.extract_strided_slice %83 {offsets = [0, 0, 0], sizes = [2, 1, 32], strides = [1, 1, 1]} : vector<2x16x32xf32> to vector<2x1x32xf32>
    %114 = vector.shape_cast %113 : vector<2x1x32xf32> to vector<2x32xf32>
    %115 = vector.extract_strided_slice %65 {offsets = [1, 0, 0], sizes = [1, 32, 32], strides = [1, 1, 1]} : vector<4x32x32xf32> to vector<1x32x32xf32>
    %116 = vector.shape_cast %115 : vector<1x32x32xf32> to vector<32x32xf32>
    %cst_62 = arith.constant dense<0.000000e+00> : vector<2x32xf32>
    %117 = tpu.matmul %100, %116, %cst_62 {dimension_numbers = #tpu.dot_dimension_numbers<[1], [0], [0], [1], [0, 0, 1, 1], [], []>} : vector<2x32xf32>, vector<32x32xf32>, vector<2x32xf32> -> vector<2x32xf32>
    %118 = arith.addf %114, %117 : vector<2x32xf32>
    %119 = arith.negf %118 : vector<2x32xf32>
    %120 = math.exp %119 : vector<2x32xf32>
    %cst_63 = arith.constant 1.000000e+00 : f32
    %121 = vector.broadcast %cst_63 : f32 to vector<2x32xf32>
    %122 = arith.addf %121, %120 : vector<2x32xf32>
    %123 = arith.divf %121, %122 : vector<2x32xf32>
    %124 = vector.extract_strided_slice %91 {offsets = [0, 0, 0], sizes = [2, 1, 32], strides = [1, 1, 1]} : vector<2x16x32xf32> to vector<2x1x32xf32>
    %125 = vector.shape_cast %124 : vector<2x1x32xf32> to vector<2x32xf32>
    %126 = vector.extract_strided_slice %65 {offsets = [2, 0, 0], sizes = [1, 32, 32], strides = [1, 1, 1]} : vector<4x32x32xf32> to vector<1x32x32xf32>
    %127 = vector.shape_cast %126 : vector<1x32x32xf32> to vector<32x32xf32>
    %cst_64 = arith.constant dense<0.000000e+00> : vector<2x32xf32>
    %128 = tpu.matmul %100, %127, %cst_64 {dimension_numbers = #tpu.dot_dimension_numbers<[1], [0], [0], [1], [0, 0, 1, 1], [], []>} : vector<2x32xf32>, vector<32x32xf32>, vector<2x32xf32> -> vector<2x32xf32>
    %129 = arith.addf %125, %128 : vector<2x32xf32>
    %130 = math.tanh %129 : vector<2x32xf32>
    %131 = vector.extract_strided_slice %99 {offsets = [0, 0, 0], sizes = [2, 1, 32], strides = [1, 1, 1]} : vector<2x16x32xf32> to vector<2x1x32xf32>
    %132 = vector.shape_cast %131 : vector<2x1x32xf32> to vector<2x32xf32>
    %133 = vector.extract_strided_slice %65 {offsets = [3, 0, 0], sizes = [1, 32, 32], strides = [1, 1, 1]} : vector<4x32x32xf32> to vector<1x32x32xf32>
    %134 = vector.shape_cast %133 : vector<1x32x32xf32> to vector<32x32xf32>
    %cst_65 = arith.constant dense<0.000000e+00> : vector<2x32xf32>
    %135 = tpu.matmul %100, %134, %cst_65 {dimension_numbers = #tpu.dot_dimension_numbers<[1], [0], [0], [1], [0, 0, 1, 1], [], []>} : vector<2x32xf32>, vector<32x32xf32>, vector<2x32xf32> -> vector<2x32xf32>
    %136 = arith.addf %132, %135 : vector<2x32xf32>
    %137 = arith.negf %136 : vector<2x32xf32>
    %138 = math.exp %137 : vector<2x32xf32>
    %cst_66 = arith.constant 1.000000e+00 : f32
    %139 = vector.broadcast %cst_66 : f32 to vector<2x32xf32>
    %140 = arith.addf %139, %138 : vector<2x32xf32>
    %141 = arith.divf %139, %140 : vector<2x32xf32>
    %142 = arith.mulf %123, %101 : vector<2x32xf32>
    %143 = arith.mulf %112, %130 : vector<2x32xf32>
    %144 = arith.addf %142, %143 : vector<2x32xf32>
    %145 = math.tanh %144 : vector<2x32xf32>
    %146 = arith.mulf %141, %145 : vector<2x32xf32>
    %147 = vector.extract_strided_slice %75 {offsets = [0, 1, 0], sizes = [2, 1, 32], strides = [1, 1, 1]} : vector<2x16x32xf32> to vector<2x1x32xf32>
    %148 = vector.shape_cast %147 : vector<2x1x32xf32> to vector<2x32xf32>
    %149 = vector.extract_strided_slice %65 {offsets = [0, 0, 0], sizes = [1, 32, 32], strides = [1, 1, 1]} : vector<4x32x32xf32> to vector<1x32x32xf32>
    %150 = vector.shape_cast %149 : vector<1x32x32xf32> to vector<32x32xf32>
    %cst_67 = arith.constant dense<0.000000e+00> : vector<2x32xf32>
    %151 = tpu.matmul %146, %150, %cst_67 {dimension_numbers = #tpu.dot_dimension_numbers<[1], [0], [0], [1], [0, 0, 1, 1], [], []>} : vector<2x32xf32>, vector<32x32xf32>, vector<2x32xf32> -> vector<2x32xf32>
    %152 = arith.addf %148, %151 : vector<2x32xf32>
    %153 = arith.negf %152 : vector<2x32xf32>
    %154 = math.exp %153 : vector<2x32xf32>
    %cst_68 = arith.constant 1.000000e+00 : f32
    %155 = vector.broadcast %cst_68 : f32 to vector<2x32xf32>
    %156 = arith.addf %155, %154 : vector<2x32xf32>
    %157 = arith.divf %155, %156 : vector<2x32xf32>
    %158 = vector.extract_strided_slice %83 {offsets = [0, 1, 0], sizes = [2, 1, 32], strides = [1, 1, 1]} : vector<2x16x32xf32> to vector<2x1x32xf32>
    %159 = vector.shape_cast %158 : vector<2x1x32xf32> to vector<2x32xf32>
    %160 = vector.extract_strided_slice %65 {offsets = [1, 0, 0], sizes = [1, 32, 32], strides = [1, 1, 1]} : vector<4x32x32xf32> to vector<1x32x32xf32>
    %161 = vector.shape_cast %160 : vector<1x32x32xf32> to vector<32x32xf32>
    %cst_69 = arith.constant dense<0.000000e+00> : vector<2x32xf32>
    %162 = tpu.matmul %146, %161, %cst_69 {dimension_numbers = #tpu.dot_dimension_numbers<[1], [0], [0], [1], [0, 0, 1, 1], [], []>} : vector<2x32xf32>, vector<32x32xf32>, vector<2x32xf32> -> vector<2x32xf32>
    %163 = arith.addf %159, %162 : vector<2x32xf32>
    %164 = arith.negf %163 : vector<2x32xf32>
    %165 = math.exp %164 : vector<2x32xf32>
    %cst_70 = arith.constant 1.000000e+00 : f32
    %166 = vector.broadcast %cst_70 : f32 to vector<2x32xf32>
    %167 = arith.addf %166, %165 : vector<2x32xf32>
    %168 = arith.divf %166, %167 : vector<2x32xf32>
    %169 = vector.extract_strided_slice %91 {offsets = [0, 1, 0], sizes = [2, 1, 32], strides = [1, 1, 1]} : vector<2x16x32xf32> to vector<2x1x32xf32>
    %170 = vector.shape_cast %169 : vector<2x1x32xf32> to vector<2x32xf32>
    %171 = vector.extract_strided_slice %65 {offsets = [2, 0, 0], sizes = [1, 32, 32], strides = [1, 1, 1]} : vector<4x32x32xf32> to vector<1x32x32xf32>
    %172 = vector.shape_cast %171 : vector<1x32x32xf32> to vector<32x32xf32>
    %cst_71 = arith.constant dense<0.000000e+00> : vector<2x32xf32>
    %173 = tpu.matmul %146, %172, %cst_71 {dimension_numbers = #tpu.dot_dimension_numbers<[1], [0], [0], [1], [0, 0, 1, 1], [], []>} : vector<2x32xf32>, vector<32x32xf32>, vector<2x32xf32> -> vector<2x32xf32>
    %174 = arith.addf %170, %173 : vector<2x32xf32>
    %175 = math.tanh %174 : vector<2x32xf32>
    %176 = vector.extract_strided_slice %99 {offsets = [0, 1, 0], sizes = [2, 1, 32], strides = [1, 1, 1]} : vector<2x16x32xf32> to vector<2x1x32xf32>
    %177 = vector.shape_cast %176 : vector<2x1x32xf32> to vector<2x32xf32>
    %178 = vector.extract_strided_slice %65 {offsets = [3, 0, 0], sizes = [1, 32, 32], strides = [1, 1, 1]} : vector<4x32x32xf32> to vector<1x32x32xf32>
    %179 = vector.shape_cast %178 : vector<1x32x32xf32> to vector<32x32xf32>
    %cst_72 = arith.constant dense<0.000000e+00> : vector<2x32xf32>
    %180 = tpu.matmul %146, %179, %cst_72 {dimension_numbers = #tpu.dot_dimension_numbers<[1], [0], [0], [1], [0, 0, 1, 1], [], []>} : vector<2x32xf32>, vector<32x32xf32>, vector<2x32xf32> -> vector<2x32xf32>
    %181 = arith.addf %177, %180 : vector<2x32xf32>
    %182 = arith.negf %181 : vector<2x32xf32>
    %183 = math.exp %182 : vector<2x32xf32>
    %cst_73 = arith.constant 1.000000e+00 : f32
    %184 = vector.broadcast %cst_73 : f32 to vector<2x32xf32>
    %185 = arith.addf %184, %183 : vector<2x32xf32>
    %186 = arith.divf %184, %185 : vector<2x32xf32>
    %187 = arith.mulf %168, %144 : vector<2x32xf32>
    %188 = arith.mulf %157, %175 : vector<2x32xf32>
    %189 = arith.addf %187, %188 : vector<2x32xf32>
    %190 = math.tanh %189 : vector<2x32xf32>
    %191 = arith.mulf %186, %190 : vector<2x32xf32>
    %192 = vector.extract_strided_slice %75 {offsets = [0, 2, 0], sizes = [2, 1, 32], strides = [1, 1, 1]} : vector<2x16x32xf32> to vector<2x1x32xf32>
    %193 = vector.shape_cast %192 : vector<2x1x32xf32> to vector<2x32xf32>
    %194 = vector.extract_strided_slice %65 {offsets = [0, 0, 0], sizes = [1, 32, 32], strides = [1, 1, 1]} : vector<4x32x32xf32> to vector<1x32x32xf32>
    %195 = vector.shape_cast %194 : vector<1x32x32xf32> to vector<32x32xf32>
    %cst_74 = arith.constant dense<0.000000e+00> : vector<2x32xf32>
    %196 = tpu.matmul %191, %195, %cst_74 {dimension_numbers = #tpu.dot_dimension_numbers<[1], [0], [0], [1], [0, 0, 1, 1], [], []>} : vector<2x32xf32>, vector<32x32xf32>, vector<2x32xf32> -> vector<2x32xf32>
    %197 = arith.addf %193, %196 : vector<2x32xf32>
    %198 = arith.negf %197 : vector<2x32xf32>
    %199 = math.exp %198 : vector<2x32xf32>
    %cst_75 = arith.constant 1.000000e+00 : f32
    %200 = vector.broadcast %cst_75 : f32 to vector<2x32xf32>
    %201 = arith.addf %200, %199 : vector<2x32xf32>
    %202 = arith.divf %200, %201 : vector<2x32xf32>
    %203 = vector.extract_strided_slice %83 {offsets = [0, 2, 0], sizes = [2, 1, 32], strides = [1, 1, 1]} : vector<2x16x32xf32> to vector<2x1x32xf32>
    %204 = vector.shape_cast %203 : vector<2x1x32xf32> to vector<2x32xf32>
    %205 = vector.extract_strided_slice %65 {offsets = [1, 0, 0], sizes = [1, 32, 32], strides = [1, 1, 1]} : vector<4x32x32xf32> to vector<1x32x32xf32>
    %206 = vector.shape_cast %205 : vector<1x32x32xf32> to vector<32x32xf32>
    %cst_76 = arith.constant dense<0.000000e+00> : vector<2x32xf32>
    %207 = tpu.matmul %191, %206, %cst_76 {dimension_numbers = #tpu.dot_dimension_numbers<[1], [0], [0], [1], [0, 0, 1, 1], [], []>} : vector<2x32xf32>, vector<32x32xf32>, vector<2x32xf32> -> vector<2x32xf32>
    %208 = arith.addf %204, %207 : vector<2x32xf32>
    %209 = arith.negf %208 : vector<2x32xf32>
    %210 = math.exp %209 : vector<2x32xf32>
    %cst_77 = arith.constant 1.000000e+00 : f32
    %211 = vector.broadcast %cst_77 : f32 to vector<2x32xf32>
    %212 = arith.addf %211, %210 : vector<2x32xf32>
    %213 = arith.divf %211, %212 : vector<2x32xf32>
    %214 = vector.extract_strided_slice %91 {offsets = [0, 2, 0], sizes = [2, 1, 32], strides = [1, 1, 1]} : vector<2x16x32xf32> to vector<2x1x32xf32>
    %215 = vector.shape_cast %214 : vector<2x1x32xf32> to vector<2x32xf32>
    %216 = vector.extract_strided_slice %65 {offsets = [2, 0, 0], sizes = [1, 32, 32], strides = [1, 1, 1]} : vector<4x32x32xf32> to vector<1x32x32xf32>
    %217 = vector.shape_cast %216 : vector<1x32x32xf32> to vector<32x32xf32>
    %cst_78 = arith.constant dense<0.000000e+00> : vector<2x32xf32>
    %218 = tpu.matmul %191, %217, %cst_78 {dimension_numbers = #tpu.dot_dimension_numbers<[1], [0], [0], [1], [0, 0, 1, 1], [], []>} : vector<2x32xf32>, vector<32x32xf32>, vector<2x32xf32> -> vector<2x32xf32>
    %219 = arith.addf %215, %218 : vector<2x32xf32>
    %220 = math.tanh %219 : vector<2x32xf32>
    %221 = vector.extract_strided_slice %99 {offsets = [0, 2, 0], sizes = [2, 1, 32], strides = [1, 1, 1]} : vector<2x16x32xf32> to vector<2x1x32xf32>
    %222 = vector.shape_cast %221 : vector<2x1x32xf32> to vector<2x32xf32>
    %223 = vector.extract_strided_slice %65 {offsets = [3, 0, 0], sizes = [1, 32, 32], strides = [1, 1, 1]} : vector<4x32x32xf32> to vector<1x32x32xf32>
    %224 = vector.shape_cast %223 : vector<1x32x32xf32> to vector<32x32xf32>
    %cst_79 = arith.constant dense<0.000000e+00> : vector<2x32xf32>
    %225 = tpu.matmul %191, %224, %cst_79 {dimension_numbers = #tpu.dot_dimension_numbers<[1], [0], [0], [1], [0, 0, 1, 1], [], []>} : vector<2x32xf32>, vector<32x32xf32>, vector<2x32xf32> -> vector<2x32xf32>
    %226 = arith.addf %222, %225 : vector<2x32xf32>
    %227 = arith.negf %226 : vector<2x32xf32>
    %228 = math.exp %227 : vector<2x32xf32>
    %cst_80 = arith.constant 1.000000e+00 : f32
    %229 = vector.broadcast %cst_80 : f32 to vector<2x32xf32>
    %230 = arith.addf %229, %228 : vector<2x32xf32>
    %231 = arith.divf %229, %230 : vector<2x32xf32>
    %232 = arith.mulf %213, %189 : vector<2x32xf32>
    %233 = arith.mulf %202, %220 : vector<2x32xf32>
    %234 = arith.addf %232, %233 : vector<2x32xf32>
    %235 = math.tanh %234 : vector<2x32xf32>
    %236 = arith.mulf %231, %235 : vector<2x32xf32>
    %237 = vector.extract_strided_slice %75 {offsets = [0, 3, 0], sizes = [2, 1, 32], strides = [1, 1, 1]} : vector<2x16x32xf32> to vector<2x1x32xf32>
    %238 = vector.shape_cast %237 : vector<2x1x32xf32> to vector<2x32xf32>
    %239 = vector.extract_strided_slice %65 {offsets = [0, 0, 0], sizes = [1, 32, 32], strides = [1, 1, 1]} : vector<4x32x32xf32> to vector<1x32x32xf32>
    %240 = vector.shape_cast %239 : vector<1x32x32xf32> to vector<32x32xf32>
    %cst_81 = arith.constant dense<0.000000e+00> : vector<2x32xf32>
    %241 = tpu.matmul %236, %240, %cst_81 {dimension_numbers = #tpu.dot_dimension_numbers<[1], [0], [0], [1], [0, 0, 1, 1], [], []>} : vector<2x32xf32>, vector<32x32xf32>, vector<2x32xf32> -> vector<2x32xf32>
    %242 = arith.addf %238, %241 : vector<2x32xf32>
    %243 = arith.negf %242 : vector<2x32xf32>
    %244 = math.exp %243 : vector<2x32xf32>
    %cst_82 = arith.constant 1.000000e+00 : f32
    %245 = vector.broadcast %cst_82 : f32 to vector<2x32xf32>
    %246 = arith.addf %245, %244 : vector<2x32xf32>
    %247 = arith.divf %245, %246 : vector<2x32xf32>
    %248 = vector.extract_strided_slice %83 {offsets = [0, 3, 0], sizes = [2, 1, 32], strides = [1, 1, 1]} : vector<2x16x32xf32> to vector<2x1x32xf32>
    %249 = vector.shape_cast %248 : vector<2x1x32xf32> to vector<2x32xf32>
    %250 = vector.extract_strided_slice %65 {offsets = [1, 0, 0], sizes = [1, 32, 32], strides = [1, 1, 1]} : vector<4x32x32xf32> to vector<1x32x32xf32>
    %251 = vector.shape_cast %250 : vector<1x32x32xf32> to vector<32x32xf32>
    %cst_83 = arith.constant dense<0.000000e+00> : vector<2x32xf32>
    %252 = tpu.matmul %236, %251, %cst_83 {dimension_numbers = #tpu.dot_dimension_numbers<[1], [0], [0], [1], [0, 0, 1, 1], [], []>} : vector<2x32xf32>, vector<32x32xf32>, vector<2x32xf32> -> vector<2x32xf32>
    %253 = arith.addf %249, %252 : vector<2x32xf32>
    %254 = arith.negf %253 : vector<2x32xf32>
    %255 = math.exp %254 : vector<2x32xf32>
    %cst_84 = arith.constant 1.000000e+00 : f32
    %256 = vector.broadcast %cst_84 : f32 to vector<2x32xf32>
    %257 = arith.addf %256, %255 : vector<2x32xf32>
    %258 = arith.divf %256, %257 : vector<2x32xf32>
    %259 = vector.extract_strided_slice %91 {offsets = [0, 3, 0], sizes = [2, 1, 32], strides = [1, 1, 1]} : vector<2x16x32xf32> to vector<2x1x32xf32>
    %260 = vector.shape_cast %259 : vector<2x1x32xf32> to vector<2x32xf32>
    %261 = vector.extract_strided_slice %65 {offsets = [2, 0, 0], sizes = [1, 32, 32], strides = [1, 1, 1]} : vector<4x32x32xf32> to vector<1x32x32xf32>
    %262 = vector.shape_cast %261 : vector<1x32x32xf32> to vector<32x32xf32>
    %cst_85 = arith.constant dense<0.000000e+00> : vector<2x32xf32>
    %263 = tpu.matmul %236, %262, %cst_85 {dimension_numbers = #tpu.dot_dimension_numbers<[1], [0], [0], [1], [0, 0, 1, 1], [], []>} : vector<2x32xf32>, vector<32x32xf32>, vector<2x32xf32> -> vector<2x32xf32>
    %264 = arith.addf %260, %263 : vector<2x32xf32>
    %265 = math.tanh %264 : vector<2x32xf32>
    %266 = vector.extract_strided_slice %99 {offsets = [0, 3, 0], sizes = [2, 1, 32], strides = [1, 1, 1]} : vector<2x16x32xf32> to vector<2x1x32xf32>
    %267 = vector.shape_cast %266 : vector<2x1x32xf32> to vector<2x32xf32>
    %268 = vector.extract_strided_slice %65 {offsets = [3, 0, 0], sizes = [1, 32, 32], strides = [1, 1, 1]} : vector<4x32x32xf32> to vector<1x32x32xf32>
    %269 = vector.shape_cast %268 : vector<1x32x32xf32> to vector<32x32xf32>
    %cst_86 = arith.constant dense<0.000000e+00> : vector<2x32xf32>
    %270 = tpu.matmul %236, %269, %cst_86 {dimension_numbers = #tpu.dot_dimension_numbers<[1], [0], [0], [1], [0, 0, 1, 1], [], []>} : vector<2x32xf32>, vector<32x32xf32>, vector<2x32xf32> -> vector<2x32xf32>
    %271 = arith.addf %267, %270 : vector<2x32xf32>
    %272 = arith.negf %271 : vector<2x32xf32>
    %273 = math.exp %272 : vector<2x32xf32>
    %cst_87 = arith.constant 1.000000e+00 : f32
    %274 = vector.broadcast %cst_87 : f32 to vector<2x32xf32>
    %275 = arith.addf %274, %273 : vector<2x32xf32>
    %276 = arith.divf %274, %275 : vector<2x32xf32>
    %277 = arith.mulf %258, %234 : vector<2x32xf32>
    %278 = arith.mulf %247, %265 : vector<2x32xf32>
    %279 = arith.addf %277, %278 : vector<2x32xf32>
    %280 = math.tanh %279 : vector<2x32xf32>
    %281 = arith.mulf %276, %280 : vector<2x32xf32>
    %282 = vector.extract_strided_slice %75 {offsets = [0, 4, 0], sizes = [2, 1, 32], strides = [1, 1, 1]} : vector<2x16x32xf32> to vector<2x1x32xf32>
    %283 = vector.shape_cast %282 : vector<2x1x32xf32> to vector<2x32xf32>
    %284 = vector.extract_strided_slice %65 {offsets = [0, 0, 0], sizes = [1, 32, 32], strides = [1, 1, 1]} : vector<4x32x32xf32> to vector<1x32x32xf32>
    %285 = vector.shape_cast %284 : vector<1x32x32xf32> to vector<32x32xf32>
    %cst_88 = arith.constant dense<0.000000e+00> : vector<2x32xf32>
    %286 = tpu.matmul %281, %285, %cst_88 {dimension_numbers = #tpu.dot_dimension_numbers<[1], [0], [0], [1], [0, 0, 1, 1], [], []>} : vector<2x32xf32>, vector<32x32xf32>, vector<2x32xf32> -> vector<2x32xf32>
    %287 = arith.addf %283, %286 : vector<2x32xf32>
    %288 = arith.negf %287 : vector<2x32xf32>
    %289 = math.exp %288 : vector<2x32xf32>
    %cst_89 = arith.constant 1.000000e+00 : f32
    %290 = vector.broadcast %cst_89 : f32 to vector<2x32xf32>
    %291 = arith.addf %290, %289 : vector<2x32xf32>
    %292 = arith.divf %290, %291 : vector<2x32xf32>
    %293 = vector.extract_strided_slice %83 {offsets = [0, 4, 0], sizes = [2, 1, 32], strides = [1, 1, 1]} : vector<2x16x32xf32> to vector<2x1x32xf32>
    %294 = vector.shape_cast %293 : vector<2x1x32xf32> to vector<2x32xf32>
    %295 = vector.extract_strided_slice %65 {offsets = [1, 0, 0], sizes = [1, 32, 32], strides = [1, 1, 1]} : vector<4x32x32xf32> to vector<1x32x32xf32>
    %296 = vector.shape_cast %295 : vector<1x32x32xf32> to vector<32x32xf32>
    %cst_90 = arith.constant dense<0.000000e+00> : vector<2x32xf32>
    %297 = tpu.matmul %281, %296, %cst_90 {dimension_numbers = #tpu.dot_dimension_numbers<[1], [0], [0], [1], [0, 0, 1, 1], [], []>} : vector<2x32xf32>, vector<32x32xf32>, vector<2x32xf32> -> vector<2x32xf32>
    %298 = arith.addf %294, %297 : vector<2x32xf32>
    %299 = arith.negf %298 : vector<2x32xf32>
    %300 = math.exp %299 : vector<2x32xf32>
    %cst_91 = arith.constant 1.000000e+00 : f32
    %301 = vector.broadcast %cst_91 : f32 to vector<2x32xf32>
    %302 = arith.addf %301, %300 : vector<2x32xf32>
    %303 = arith.divf %301, %302 : vector<2x32xf32>
    %304 = vector.extract_strided_slice %91 {offsets = [0, 4, 0], sizes = [2, 1, 32], strides = [1, 1, 1]} : vector<2x16x32xf32> to vector<2x1x32xf32>
    %305 = vector.shape_cast %304 : vector<2x1x32xf32> to vector<2x32xf32>
    %306 = vector.extract_strided_slice %65 {offsets = [2, 0, 0], sizes = [1, 32, 32], strides = [1, 1, 1]} : vector<4x32x32xf32> to vector<1x32x32xf32>
    %307 = vector.shape_cast %306 : vector<1x32x32xf32> to vector<32x32xf32>
    %cst_92 = arith.constant dense<0.000000e+00> : vector<2x32xf32>
    %308 = tpu.matmul %281, %307, %cst_92 {dimension_numbers = #tpu.dot_dimension_numbers<[1], [0], [0], [1], [0, 0, 1, 1], [], []>} : vector<2x32xf32>, vector<32x32xf32>, vector<2x32xf32> -> vector<2x32xf32>
    %309 = arith.addf %305, %308 : vector<2x32xf32>
    %310 = math.tanh %309 : vector<2x32xf32>
    %311 = vector.extract_strided_slice %99 {offsets = [0, 4, 0], sizes = [2, 1, 32], strides = [1, 1, 1]} : vector<2x16x32xf32> to vector<2x1x32xf32>
    %312 = vector.shape_cast %311 : vector<2x1x32xf32> to vector<2x32xf32>
    %313 = vector.extract_strided_slice %65 {offsets = [3, 0, 0], sizes = [1, 32, 32], strides = [1, 1, 1]} : vector<4x32x32xf32> to vector<1x32x32xf32>
    %314 = vector.shape_cast %313 : vector<1x32x32xf32> to vector<32x32xf32>
    %cst_93 = arith.constant dense<0.000000e+00> : vector<2x32xf32>
    %315 = tpu.matmul %281, %314, %cst_93 {dimension_numbers = #tpu.dot_dimension_numbers<[1], [0], [0], [1], [0, 0, 1, 1], [], []>} : vector<2x32xf32>, vector<32x32xf32>, vector<2x32xf32> -> vector<2x32xf32>
    %316 = arith.addf %312, %315 : vector<2x32xf32>
    %317 = arith.negf %316 : vector<2x32xf32>
    %318 = math.exp %317 : vector<2x32xf32>
    %cst_94 = arith.constant 1.000000e+00 : f32
    %319 = vector.broadcast %cst_94 : f32 to vector<2x32xf32>
    %320 = arith.addf %319, %318 : vector<2x32xf32>
    %321 = arith.divf %319, %320 : vector<2x32xf32>
    %322 = arith.mulf %303, %279 : vector<2x32xf32>
    %323 = arith.mulf %292, %310 : vector<2x32xf32>
    %324 = arith.addf %322, %323 : vector<2x32xf32>
    %325 = math.tanh %324 : vector<2x32xf32>
    %326 = arith.mulf %321, %325 : vector<2x32xf32>
    %327 = vector.extract_strided_slice %75 {offsets = [0, 5, 0], sizes = [2, 1, 32], strides = [1, 1, 1]} : vector<2x16x32xf32> to vector<2x1x32xf32>
    %328 = vector.shape_cast %327 : vector<2x1x32xf32> to vector<2x32xf32>
    %329 = vector.extract_strided_slice %65 {offsets = [0, 0, 0], sizes = [1, 32, 32], strides = [1, 1, 1]} : vector<4x32x32xf32> to vector<1x32x32xf32>
    %330 = vector.shape_cast %329 : vector<1x32x32xf32> to vector<32x32xf32>
    %cst_95 = arith.constant dense<0.000000e+00> : vector<2x32xf32>
    %331 = tpu.matmul %326, %330, %cst_95 {dimension_numbers = #tpu.dot_dimension_numbers<[1], [0], [0], [1], [0, 0, 1, 1], [], []>} : vector<2x32xf32>, vector<32x32xf32>, vector<2x32xf32> -> vector<2x32xf32>
    %332 = arith.addf %328, %331 : vector<2x32xf32>
    %333 = arith.negf %332 : vector<2x32xf32>
    %334 = math.exp %333 : vector<2x32xf32>
    %cst_96 = arith.constant 1.000000e+00 : f32
    %335 = vector.broadcast %cst_96 : f32 to vector<2x32xf32>
    %336 = arith.addf %335, %334 : vector<2x32xf32>
    %337 = arith.divf %335, %336 : vector<2x32xf32>
    %338 = vector.extract_strided_slice %83 {offsets = [0, 5, 0], sizes = [2, 1, 32], strides = [1, 1, 1]} : vector<2x16x32xf32> to vector<2x1x32xf32>
    %339 = vector.shape_cast %338 : vector<2x1x32xf32> to vector<2x32xf32>
    %340 = vector.extract_strided_slice %65 {offsets = [1, 0, 0], sizes = [1, 32, 32], strides = [1, 1, 1]} : vector<4x32x32xf32> to vector<1x32x32xf32>
    %341 = vector.shape_cast %340 : vector<1x32x32xf32> to vector<32x32xf32>
    %cst_97 = arith.constant dense<0.000000e+00> : vector<2x32xf32>
    %342 = tpu.matmul %326, %341, %cst_97 {dimension_numbers = #tpu.dot_dimension_numbers<[1], [0], [0], [1], [0, 0, 1, 1], [], []>} : vector<2x32xf32>, vector<32x32xf32>, vector<2x32xf32> -> vector<2x32xf32>
    %343 = arith.addf %339, %342 : vector<2x32xf32>
    %344 = arith.negf %343 : vector<2x32xf32>
    %345 = math.exp %344 : vector<2x32xf32>
    %cst_98 = arith.constant 1.000000e+00 : f32
    %346 = vector.broadcast %cst_98 : f32 to vector<2x32xf32>
    %347 = arith.addf %346, %345 : vector<2x32xf32>
    %348 = arith.divf %346, %347 : vector<2x32xf32>
    %349 = vector.extract_strided_slice %91 {offsets = [0, 5, 0], sizes = [2, 1, 32], strides = [1, 1, 1]} : vector<2x16x32xf32> to vector<2x1x32xf32>
    %350 = vector.shape_cast %349 : vector<2x1x32xf32> to vector<2x32xf32>
    %351 = vector.extract_strided_slice %65 {offsets = [2, 0, 0], sizes = [1, 32, 32], strides = [1, 1, 1]} : vector<4x32x32xf32> to vector<1x32x32xf32>
    %352 = vector.shape_cast %351 : vector<1x32x32xf32> to vector<32x32xf32>
    %cst_99 = arith.constant dense<0.000000e+00> : vector<2x32xf32>
    %353 = tpu.matmul %326, %352, %cst_99 {dimension_numbers = #tpu.dot_dimension_numbers<[1], [0], [0], [1], [0, 0, 1, 1], [], []>} : vector<2x32xf32>, vector<32x32xf32>, vector<2x32xf32> -> vector<2x32xf32>
    %354 = arith.addf %350, %353 : vector<2x32xf32>
    %355 = math.tanh %354 : vector<2x32xf32>
    %356 = vector.extract_strided_slice %99 {offsets = [0, 5, 0], sizes = [2, 1, 32], strides = [1, 1, 1]} : vector<2x16x32xf32> to vector<2x1x32xf32>
    %357 = vector.shape_cast %356 : vector<2x1x32xf32> to vector<2x32xf32>
    %358 = vector.extract_strided_slice %65 {offsets = [3, 0, 0], sizes = [1, 32, 32], strides = [1, 1, 1]} : vector<4x32x32xf32> to vector<1x32x32xf32>
    %359 = vector.shape_cast %358 : vector<1x32x32xf32> to vector<32x32xf32>
    %cst_100 = arith.constant dense<0.000000e+00> : vector<2x32xf32>
    %360 = tpu.matmul %326, %359, %cst_100 {dimension_numbers = #tpu.dot_dimension_numbers<[1], [0], [0], [1], [0, 0, 1, 1], [], []>} : vector<2x32xf32>, vector<32x32xf32>, vector<2x32xf32> -> vector<2x32xf32>
    %361 = arith.addf %357, %360 : vector<2x32xf32>
    %362 = arith.negf %361 : vector<2x32xf32>
    %363 = math.exp %362 : vector<2x32xf32>
    %cst_101 = arith.constant 1.000000e+00 : f32
    %364 = vector.broadcast %cst_101 : f32 to vector<2x32xf32>
    %365 = arith.addf %364, %363 : vector<2x32xf32>
    %366 = arith.divf %364, %365 : vector<2x32xf32>
    %367 = arith.mulf %348, %324 : vector<2x32xf32>
    %368 = arith.mulf %337, %355 : vector<2x32xf32>
    %369 = arith.addf %367, %368 : vector<2x32xf32>
    %370 = math.tanh %369 : vector<2x32xf32>
    %371 = arith.mulf %366, %370 : vector<2x32xf32>
    %372 = vector.extract_strided_slice %75 {offsets = [0, 6, 0], sizes = [2, 1, 32], strides = [1, 1, 1]} : vector<2x16x32xf32> to vector<2x1x32xf32>
    %373 = vector.shape_cast %372 : vector<2x1x32xf32> to vector<2x32xf32>
    %374 = vector.extract_strided_slice %65 {offsets = [0, 0, 0], sizes = [1, 32, 32], strides = [1, 1, 1]} : vector<4x32x32xf32> to vector<1x32x32xf32>
    %375 = vector.shape_cast %374 : vector<1x32x32xf32> to vector<32x32xf32>
    %cst_102 = arith.constant dense<0.000000e+00> : vector<2x32xf32>
    %376 = tpu.matmul %371, %375, %cst_102 {dimension_numbers = #tpu.dot_dimension_numbers<[1], [0], [0], [1], [0, 0, 1, 1], [], []>} : vector<2x32xf32>, vector<32x32xf32>, vector<2x32xf32> -> vector<2x32xf32>
    %377 = arith.addf %373, %376 : vector<2x32xf32>
    %378 = arith.negf %377 : vector<2x32xf32>
    %379 = math.exp %378 : vector<2x32xf32>
    %cst_103 = arith.constant 1.000000e+00 : f32
    %380 = vector.broadcast %cst_103 : f32 to vector<2x32xf32>
    %381 = arith.addf %380, %379 : vector<2x32xf32>
    %382 = arith.divf %380, %381 : vector<2x32xf32>
    %383 = vector.extract_strided_slice %83 {offsets = [0, 6, 0], sizes = [2, 1, 32], strides = [1, 1, 1]} : vector<2x16x32xf32> to vector<2x1x32xf32>
    %384 = vector.shape_cast %383 : vector<2x1x32xf32> to vector<2x32xf32>
    %385 = vector.extract_strided_slice %65 {offsets = [1, 0, 0], sizes = [1, 32, 32], strides = [1, 1, 1]} : vector<4x32x32xf32> to vector<1x32x32xf32>
    %386 = vector.shape_cast %385 : vector<1x32x32xf32> to vector<32x32xf32>
    %cst_104 = arith.constant dense<0.000000e+00> : vector<2x32xf32>
    %387 = tpu.matmul %371, %386, %cst_104 {dimension_numbers = #tpu.dot_dimension_numbers<[1], [0], [0], [1], [0, 0, 1, 1], [], []>} : vector<2x32xf32>, vector<32x32xf32>, vector<2x32xf32> -> vector<2x32xf32>
    %388 = arith.addf %384, %387 : vector<2x32xf32>
    %389 = arith.negf %388 : vector<2x32xf32>
    %390 = math.exp %389 : vector<2x32xf32>
    %cst_105 = arith.constant 1.000000e+00 : f32
    %391 = vector.broadcast %cst_105 : f32 to vector<2x32xf32>
    %392 = arith.addf %391, %390 : vector<2x32xf32>
    %393 = arith.divf %391, %392 : vector<2x32xf32>
    %394 = vector.extract_strided_slice %91 {offsets = [0, 6, 0], sizes = [2, 1, 32], strides = [1, 1, 1]} : vector<2x16x32xf32> to vector<2x1x32xf32>
    %395 = vector.shape_cast %394 : vector<2x1x32xf32> to vector<2x32xf32>
    %396 = vector.extract_strided_slice %65 {offsets = [2, 0, 0], sizes = [1, 32, 32], strides = [1, 1, 1]} : vector<4x32x32xf32> to vector<1x32x32xf32>
    %397 = vector.shape_cast %396 : vector<1x32x32xf32> to vector<32x32xf32>
    %cst_106 = arith.constant dense<0.000000e+00> : vector<2x32xf32>
    %398 = tpu.matmul %371, %397, %cst_106 {dimension_numbers = #tpu.dot_dimension_numbers<[1], [0], [0], [1], [0, 0, 1, 1], [], []>} : vector<2x32xf32>, vector<32x32xf32>, vector<2x32xf32> -> vector<2x32xf32>
    %399 = arith.addf %395, %398 : vector<2x32xf32>
    %400 = math.tanh %399 : vector<2x32xf32>
    %401 = vector.extract_strided_slice %99 {offsets = [0, 6, 0], sizes = [2, 1, 32], strides = [1, 1, 1]} : vector<2x16x32xf32> to vector<2x1x32xf32>
    %402 = vector.shape_cast %401 : vector<2x1x32xf32> to vector<2x32xf32>
    %403 = vector.extract_strided_slice %65 {offsets = [3, 0, 0], sizes = [1, 32, 32], strides = [1, 1, 1]} : vector<4x32x32xf32> to vector<1x32x32xf32>
    %404 = vector.shape_cast %403 : vector<1x32x32xf32> to vector<32x32xf32>
    %cst_107 = arith.constant dense<0.000000e+00> : vector<2x32xf32>
    %405 = tpu.matmul %371, %404, %cst_107 {dimension_numbers = #tpu.dot_dimension_numbers<[1], [0], [0], [1], [0, 0, 1, 1], [], []>} : vector<2x32xf32>, vector<32x32xf32>, vector<2x32xf32> -> vector<2x32xf32>
    %406 = arith.addf %402, %405 : vector<2x32xf32>
    %407 = arith.negf %406 : vector<2x32xf32>
    %408 = math.exp %407 : vector<2x32xf32>
    %cst_108 = arith.constant 1.000000e+00 : f32
    %409 = vector.broadcast %cst_108 : f32 to vector<2x32xf32>
    %410 = arith.addf %409, %408 : vector<2x32xf32>
    %411 = arith.divf %409, %410 : vector<2x32xf32>
    %412 = arith.mulf %393, %369 : vector<2x32xf32>
    %413 = arith.mulf %382, %400 : vector<2x32xf32>
    %414 = arith.addf %412, %413 : vector<2x32xf32>
    %415 = math.tanh %414 : vector<2x32xf32>
    %416 = arith.mulf %411, %415 : vector<2x32xf32>
    %417 = vector.extract_strided_slice %75 {offsets = [0, 7, 0], sizes = [2, 1, 32], strides = [1, 1, 1]} : vector<2x16x32xf32> to vector<2x1x32xf32>
    %418 = vector.shape_cast %417 : vector<2x1x32xf32> to vector<2x32xf32>
    %419 = vector.extract_strided_slice %65 {offsets = [0, 0, 0], sizes = [1, 32, 32], strides = [1, 1, 1]} : vector<4x32x32xf32> to vector<1x32x32xf32>
    %420 = vector.shape_cast %419 : vector<1x32x32xf32> to vector<32x32xf32>
    %cst_109 = arith.constant dense<0.000000e+00> : vector<2x32xf32>
    %421 = tpu.matmul %416, %420, %cst_109 {dimension_numbers = #tpu.dot_dimension_numbers<[1], [0], [0], [1], [0, 0, 1, 1], [], []>} : vector<2x32xf32>, vector<32x32xf32>, vector<2x32xf32> -> vector<2x32xf32>
    %422 = arith.addf %418, %421 : vector<2x32xf32>
    %423 = arith.negf %422 : vector<2x32xf32>
    %424 = math.exp %423 : vector<2x32xf32>
    %cst_110 = arith.constant 1.000000e+00 : f32
    %425 = vector.broadcast %cst_110 : f32 to vector<2x32xf32>
    %426 = arith.addf %425, %424 : vector<2x32xf32>
    %427 = arith.divf %425, %426 : vector<2x32xf32>
    %428 = vector.extract_strided_slice %83 {offsets = [0, 7, 0], sizes = [2, 1, 32], strides = [1, 1, 1]} : vector<2x16x32xf32> to vector<2x1x32xf32>
    %429 = vector.shape_cast %428 : vector<2x1x32xf32> to vector<2x32xf32>
    %430 = vector.extract_strided_slice %65 {offsets = [1, 0, 0], sizes = [1, 32, 32], strides = [1, 1, 1]} : vector<4x32x32xf32> to vector<1x32x32xf32>
    %431 = vector.shape_cast %430 : vector<1x32x32xf32> to vector<32x32xf32>
    %cst_111 = arith.constant dense<0.000000e+00> : vector<2x32xf32>
    %432 = tpu.matmul %416, %431, %cst_111 {dimension_numbers = #tpu.dot_dimension_numbers<[1], [0], [0], [1], [0, 0, 1, 1], [], []>} : vector<2x32xf32>, vector<32x32xf32>, vector<2x32xf32> -> vector<2x32xf32>
    %433 = arith.addf %429, %432 : vector<2x32xf32>
    %434 = arith.negf %433 : vector<2x32xf32>
    %435 = math.exp %434 : vector<2x32xf32>
    %cst_112 = arith.constant 1.000000e+00 : f32
    %436 = vector.broadcast %cst_112 : f32 to vector<2x32xf32>
    %437 = arith.addf %436, %435 : vector<2x32xf32>
    %438 = arith.divf %436, %437 : vector<2x32xf32>
    %439 = vector.extract_strided_slice %91 {offsets = [0, 7, 0], sizes = [2, 1, 32], strides = [1, 1, 1]} : vector<2x16x32xf32> to vector<2x1x32xf32>
    %440 = vector.shape_cast %439 : vector<2x1x32xf32> to vector<2x32xf32>
    %441 = vector.extract_strided_slice %65 {offsets = [2, 0, 0], sizes = [1, 32, 32], strides = [1, 1, 1]} : vector<4x32x32xf32> to vector<1x32x32xf32>
    %442 = vector.shape_cast %441 : vector<1x32x32xf32> to vector<32x32xf32>
    %cst_113 = arith.constant dense<0.000000e+00> : vector<2x32xf32>
    %443 = tpu.matmul %416, %442, %cst_113 {dimension_numbers = #tpu.dot_dimension_numbers<[1], [0], [0], [1], [0, 0, 1, 1], [], []>} : vector<2x32xf32>, vector<32x32xf32>, vector<2x32xf32> -> vector<2x32xf32>
    %444 = arith.addf %440, %443 : vector<2x32xf32>
    %445 = math.tanh %444 : vector<2x32xf32>
    %446 = vector.extract_strided_slice %99 {offsets = [0, 7, 0], sizes = [2, 1, 32], strides = [1, 1, 1]} : vector<2x16x32xf32> to vector<2x1x32xf32>
    %447 = vector.shape_cast %446 : vector<2x1x32xf32> to vector<2x32xf32>
    %448 = vector.extract_strided_slice %65 {offsets = [3, 0, 0], sizes = [1, 32, 32], strides = [1, 1, 1]} : vector<4x32x32xf32> to vector<1x32x32xf32>
    %449 = vector.shape_cast %448 : vector<1x32x32xf32> to vector<32x32xf32>
    %cst_114 = arith.constant dense<0.000000e+00> : vector<2x32xf32>
    %450 = tpu.matmul %416, %449, %cst_114 {dimension_numbers = #tpu.dot_dimension_numbers<[1], [0], [0], [1], [0, 0, 1, 1], [], []>} : vector<2x32xf32>, vector<32x32xf32>, vector<2x32xf32> -> vector<2x32xf32>
    %451 = arith.addf %447, %450 : vector<2x32xf32>
    %452 = arith.negf %451 : vector<2x32xf32>
    %453 = math.exp %452 : vector<2x32xf32>
    %cst_115 = arith.constant 1.000000e+00 : f32
    %454 = vector.broadcast %cst_115 : f32 to vector<2x32xf32>
    %455 = arith.addf %454, %453 : vector<2x32xf32>
    %456 = arith.divf %454, %455 : vector<2x32xf32>
    %457 = arith.mulf %438, %414 : vector<2x32xf32>
    %458 = arith.mulf %427, %445 : vector<2x32xf32>
    %459 = arith.addf %457, %458 : vector<2x32xf32>
    %460 = math.tanh %459 : vector<2x32xf32>
    %461 = arith.mulf %456, %460 : vector<2x32xf32>
    %462 = vector.extract_strided_slice %75 {offsets = [0, 8, 0], sizes = [2, 1, 32], strides = [1, 1, 1]} : vector<2x16x32xf32> to vector<2x1x32xf32>
    %463 = vector.shape_cast %462 : vector<2x1x32xf32> to vector<2x32xf32>
    %464 = vector.extract_strided_slice %65 {offsets = [0, 0, 0], sizes = [1, 32, 32], strides = [1, 1, 1]} : vector<4x32x32xf32> to vector<1x32x32xf32>
    %465 = vector.shape_cast %464 : vector<1x32x32xf32> to vector<32x32xf32>
    %cst_116 = arith.constant dense<0.000000e+00> : vector<2x32xf32>
    %466 = tpu.matmul %461, %465, %cst_116 {dimension_numbers = #tpu.dot_dimension_numbers<[1], [0], [0], [1], [0, 0, 1, 1], [], []>} : vector<2x32xf32>, vector<32x32xf32>, vector<2x32xf32> -> vector<2x32xf32>
    %467 = arith.addf %463, %466 : vector<2x32xf32>
    %468 = arith.negf %467 : vector<2x32xf32>
    %469 = math.exp %468 : vector<2x32xf32>
    %cst_117 = arith.constant 1.000000e+00 : f32
    %470 = vector.broadcast %cst_117 : f32 to vector<2x32xf32>
    %471 = arith.addf %470, %469 : vector<2x32xf32>
    %472 = arith.divf %470, %471 : vector<2x32xf32>
    %473 = vector.extract_strided_slice %83 {offsets = [0, 8, 0], sizes = [2, 1, 32], strides = [1, 1, 1]} : vector<2x16x32xf32> to vector<2x1x32xf32>
    %474 = vector.shape_cast %473 : vector<2x1x32xf32> to vector<2x32xf32>
    %475 = vector.extract_strided_slice %65 {offsets = [1, 0, 0], sizes = [1, 32, 32], strides = [1, 1, 1]} : vector<4x32x32xf32> to vector<1x32x32xf32>
    %476 = vector.shape_cast %475 : vector<1x32x32xf32> to vector<32x32xf32>
    %cst_118 = arith.constant dense<0.000000e+00> : vector<2x32xf32>
    %477 = tpu.matmul %461, %476, %cst_118 {dimension_numbers = #tpu.dot_dimension_numbers<[1], [0], [0], [1], [0, 0, 1, 1], [], []>} : vector<2x32xf32>, vector<32x32xf32>, vector<2x32xf32> -> vector<2x32xf32>
    %478 = arith.addf %474, %477 : vector<2x32xf32>
    %479 = arith.negf %478 : vector<2x32xf32>
    %480 = math.exp %479 : vector<2x32xf32>
    %cst_119 = arith.constant 1.000000e+00 : f32
    %481 = vector.broadcast %cst_119 : f32 to vector<2x32xf32>
    %482 = arith.addf %481, %480 : vector<2x32xf32>
    %483 = arith.divf %481, %482 : vector<2x32xf32>
    %484 = vector.extract_strided_slice %91 {offsets = [0, 8, 0], sizes = [2, 1, 32], strides = [1, 1, 1]} : vector<2x16x32xf32> to vector<2x1x32xf32>
    %485 = vector.shape_cast %484 : vector<2x1x32xf32> to vector<2x32xf32>
    %486 = vector.extract_strided_slice %65 {offsets = [2, 0, 0], sizes = [1, 32, 32], strides = [1, 1, 1]} : vector<4x32x32xf32> to vector<1x32x32xf32>
    %487 = vector.shape_cast %486 : vector<1x32x32xf32> to vector<32x32xf32>
    %cst_120 = arith.constant dense<0.000000e+00> : vector<2x32xf32>
    %488 = tpu.matmul %461, %487, %cst_120 {dimension_numbers = #tpu.dot_dimension_numbers<[1], [0], [0], [1], [0, 0, 1, 1], [], []>} : vector<2x32xf32>, vector<32x32xf32>, vector<2x32xf32> -> vector<2x32xf32>
    %489 = arith.addf %485, %488 : vector<2x32xf32>
    %490 = math.tanh %489 : vector<2x32xf32>
    %491 = vector.extract_strided_slice %99 {offsets = [0, 8, 0], sizes = [2, 1, 32], strides = [1, 1, 1]} : vector<2x16x32xf32> to vector<2x1x32xf32>
    %492 = vector.shape_cast %491 : vector<2x1x32xf32> to vector<2x32xf32>
    %493 = vector.extract_strided_slice %65 {offsets = [3, 0, 0], sizes = [1, 32, 32], strides = [1, 1, 1]} : vector<4x32x32xf32> to vector<1x32x32xf32>
    %494 = vector.shape_cast %493 : vector<1x32x32xf32> to vector<32x32xf32>
    %cst_121 = arith.constant dense<0.000000e+00> : vector<2x32xf32>
    %495 = tpu.matmul %461, %494, %cst_121 {dimension_numbers = #tpu.dot_dimension_numbers<[1], [0], [0], [1], [0, 0, 1, 1], [], []>} : vector<2x32xf32>, vector<32x32xf32>, vector<2x32xf32> -> vector<2x32xf32>
    %496 = arith.addf %492, %495 : vector<2x32xf32>
    %497 = arith.negf %496 : vector<2x32xf32>
    %498 = math.exp %497 : vector<2x32xf32>
    %cst_122 = arith.constant 1.000000e+00 : f32
    %499 = vector.broadcast %cst_122 : f32 to vector<2x32xf32>
    %500 = arith.addf %499, %498 : vector<2x32xf32>
    %501 = arith.divf %499, %500 : vector<2x32xf32>
    %502 = arith.mulf %483, %459 : vector<2x32xf32>
    %503 = arith.mulf %472, %490 : vector<2x32xf32>
    %504 = arith.addf %502, %503 : vector<2x32xf32>
    %505 = math.tanh %504 : vector<2x32xf32>
    %506 = arith.mulf %501, %505 : vector<2x32xf32>
    %507 = vector.extract_strided_slice %75 {offsets = [0, 9, 0], sizes = [2, 1, 32], strides = [1, 1, 1]} : vector<2x16x32xf32> to vector<2x1x32xf32>
    %508 = vector.shape_cast %507 : vector<2x1x32xf32> to vector<2x32xf32>
    %509 = vector.extract_strided_slice %65 {offsets = [0, 0, 0], sizes = [1, 32, 32], strides = [1, 1, 1]} : vector<4x32x32xf32> to vector<1x32x32xf32>
    %510 = vector.shape_cast %509 : vector<1x32x32xf32> to vector<32x32xf32>
    %cst_123 = arith.constant dense<0.000000e+00> : vector<2x32xf32>
    %511 = tpu.matmul %506, %510, %cst_123 {dimension_numbers = #tpu.dot_dimension_numbers<[1], [0], [0], [1], [0, 0, 1, 1], [], []>} : vector<2x32xf32>, vector<32x32xf32>, vector<2x32xf32> -> vector<2x32xf32>
    %512 = arith.addf %508, %511 : vector<2x32xf32>
    %513 = arith.negf %512 : vector<2x32xf32>
    %514 = math.exp %513 : vector<2x32xf32>
    %cst_124 = arith.constant 1.000000e+00 : f32
    %515 = vector.broadcast %cst_124 : f32 to vector<2x32xf32>
    %516 = arith.addf %515, %514 : vector<2x32xf32>
    %517 = arith.divf %515, %516 : vector<2x32xf32>
    %518 = vector.extract_strided_slice %83 {offsets = [0, 9, 0], sizes = [2, 1, 32], strides = [1, 1, 1]} : vector<2x16x32xf32> to vector<2x1x32xf32>
    %519 = vector.shape_cast %518 : vector<2x1x32xf32> to vector<2x32xf32>
    %520 = vector.extract_strided_slice %65 {offsets = [1, 0, 0], sizes = [1, 32, 32], strides = [1, 1, 1]} : vector<4x32x32xf32> to vector<1x32x32xf32>
    %521 = vector.shape_cast %520 : vector<1x32x32xf32> to vector<32x32xf32>
    %cst_125 = arith.constant dense<0.000000e+00> : vector<2x32xf32>
    %522 = tpu.matmul %506, %521, %cst_125 {dimension_numbers = #tpu.dot_dimension_numbers<[1], [0], [0], [1], [0, 0, 1, 1], [], []>} : vector<2x32xf32>, vector<32x32xf32>, vector<2x32xf32> -> vector<2x32xf32>
    %523 = arith.addf %519, %522 : vector<2x32xf32>
    %524 = arith.negf %523 : vector<2x32xf32>
    %525 = math.exp %524 : vector<2x32xf32>
    %cst_126 = arith.constant 1.000000e+00 : f32
    %526 = vector.broadcast %cst_126 : f32 to vector<2x32xf32>
    %527 = arith.addf %526, %525 : vector<2x32xf32>
    %528 = arith.divf %526, %527 : vector<2x32xf32>
    %529 = vector.extract_strided_slice %91 {offsets = [0, 9, 0], sizes = [2, 1, 32], strides = [1, 1, 1]} : vector<2x16x32xf32> to vector<2x1x32xf32>
    %530 = vector.shape_cast %529 : vector<2x1x32xf32> to vector<2x32xf32>
    %531 = vector.extract_strided_slice %65 {offsets = [2, 0, 0], sizes = [1, 32, 32], strides = [1, 1, 1]} : vector<4x32x32xf32> to vector<1x32x32xf32>
    %532 = vector.shape_cast %531 : vector<1x32x32xf32> to vector<32x32xf32>
    %cst_127 = arith.constant dense<0.000000e+00> : vector<2x32xf32>
    %533 = tpu.matmul %506, %532, %cst_127 {dimension_numbers = #tpu.dot_dimension_numbers<[1], [0], [0], [1], [0, 0, 1, 1], [], []>} : vector<2x32xf32>, vector<32x32xf32>, vector<2x32xf32> -> vector<2x32xf32>
    %534 = arith.addf %530, %533 : vector<2x32xf32>
    %535 = math.tanh %534 : vector<2x32xf32>
    %536 = vector.extract_strided_slice %99 {offsets = [0, 9, 0], sizes = [2, 1, 32], strides = [1, 1, 1]} : vector<2x16x32xf32> to vector<2x1x32xf32>
    %537 = vector.shape_cast %536 : vector<2x1x32xf32> to vector<2x32xf32>
    %538 = vector.extract_strided_slice %65 {offsets = [3, 0, 0], sizes = [1, 32, 32], strides = [1, 1, 1]} : vector<4x32x32xf32> to vector<1x32x32xf32>
    %539 = vector.shape_cast %538 : vector<1x32x32xf32> to vector<32x32xf32>
    %cst_128 = arith.constant dense<0.000000e+00> : vector<2x32xf32>
    %540 = tpu.matmul %506, %539, %cst_128 {dimension_numbers = #tpu.dot_dimension_numbers<[1], [0], [0], [1], [0, 0, 1, 1], [], []>} : vector<2x32xf32>, vector<32x32xf32>, vector<2x32xf32> -> vector<2x32xf32>
    %541 = arith.addf %537, %540 : vector<2x32xf32>
    %542 = arith.negf %541 : vector<2x32xf32>
    %543 = math.exp %542 : vector<2x32xf32>
    %cst_129 = arith.constant 1.000000e+00 : f32
    %544 = vector.broadcast %cst_129 : f32 to vector<2x32xf32>
    %545 = arith.addf %544, %543 : vector<2x32xf32>
    %546 = arith.divf %544, %545 : vector<2x32xf32>
    %547 = arith.mulf %528, %504 : vector<2x32xf32>
    %548 = arith.mulf %517, %535 : vector<2x32xf32>
    %549 = arith.addf %547, %548 : vector<2x32xf32>
    %550 = math.tanh %549 : vector<2x32xf32>
    %551 = arith.mulf %546, %550 : vector<2x32xf32>
    %552 = vector.extract_strided_slice %75 {offsets = [0, 10, 0], sizes = [2, 1, 32], strides = [1, 1, 1]} : vector<2x16x32xf32> to vector<2x1x32xf32>
    %553 = vector.shape_cast %552 : vector<2x1x32xf32> to vector<2x32xf32>
    %554 = vector.extract_strided_slice %65 {offsets = [0, 0, 0], sizes = [1, 32, 32], strides = [1, 1, 1]} : vector<4x32x32xf32> to vector<1x32x32xf32>
    %555 = vector.shape_cast %554 : vector<1x32x32xf32> to vector<32x32xf32>
    %cst_130 = arith.constant dense<0.000000e+00> : vector<2x32xf32>
    %556 = tpu.matmul %551, %555, %cst_130 {dimension_numbers = #tpu.dot_dimension_numbers<[1], [0], [0], [1], [0, 0, 1, 1], [], []>} : vector<2x32xf32>, vector<32x32xf32>, vector<2x32xf32> -> vector<2x32xf32>
    %557 = arith.addf %553, %556 : vector<2x32xf32>
    %558 = arith.negf %557 : vector<2x32xf32>
    %559 = math.exp %558 : vector<2x32xf32>
    %cst_131 = arith.constant 1.000000e+00 : f32
    %560 = vector.broadcast %cst_131 : f32 to vector<2x32xf32>
    %561 = arith.addf %560, %559 : vector<2x32xf32>
    %562 = arith.divf %560, %561 : vector<2x32xf32>
    %563 = vector.extract_strided_slice %83 {offsets = [0, 10, 0], sizes = [2, 1, 32], strides = [1, 1, 1]} : vector<2x16x32xf32> to vector<2x1x32xf32>
    %564 = vector.shape_cast %563 : vector<2x1x32xf32> to vector<2x32xf32>
    %565 = vector.extract_strided_slice %65 {offsets = [1, 0, 0], sizes = [1, 32, 32], strides = [1, 1, 1]} : vector<4x32x32xf32> to vector<1x32x32xf32>
    %566 = vector.shape_cast %565 : vector<1x32x32xf32> to vector<32x32xf32>
    %cst_132 = arith.constant dense<0.000000e+00> : vector<2x32xf32>
    %567 = tpu.matmul %551, %566, %cst_132 {dimension_numbers = #tpu.dot_dimension_numbers<[1], [0], [0], [1], [0, 0, 1, 1], [], []>} : vector<2x32xf32>, vector<32x32xf32>, vector<2x32xf32> -> vector<2x32xf32>
    %568 = arith.addf %564, %567 : vector<2x32xf32>
    %569 = arith.negf %568 : vector<2x32xf32>
    %570 = math.exp %569 : vector<2x32xf32>
    %cst_133 = arith.constant 1.000000e+00 : f32
    %571 = vector.broadcast %cst_133 : f32 to vector<2x32xf32>
    %572 = arith.addf %571, %570 : vector<2x32xf32>
    %573 = arith.divf %571, %572 : vector<2x32xf32>
    %574 = vector.extract_strided_slice %91 {offsets = [0, 10, 0], sizes = [2, 1, 32], strides = [1, 1, 1]} : vector<2x16x32xf32> to vector<2x1x32xf32>
    %575 = vector.shape_cast %574 : vector<2x1x32xf32> to vector<2x32xf32>
    %576 = vector.extract_strided_slice %65 {offsets = [2, 0, 0], sizes = [1, 32, 32], strides = [1, 1, 1]} : vector<4x32x32xf32> to vector<1x32x32xf32>
    %577 = vector.shape_cast %576 : vector<1x32x32xf32> to vector<32x32xf32>
    %cst_134 = arith.constant dense<0.000000e+00> : vector<2x32xf32>
    %578 = tpu.matmul %551, %577, %cst_134 {dimension_numbers = #tpu.dot_dimension_numbers<[1], [0], [0], [1], [0, 0, 1, 1], [], []>} : vector<2x32xf32>, vector<32x32xf32>, vector<2x32xf32> -> vector<2x32xf32>
    %579 = arith.addf %575, %578 : vector<2x32xf32>
    %580 = math.tanh %579 : vector<2x32xf32>
    %581 = vector.extract_strided_slice %99 {offsets = [0, 10, 0], sizes = [2, 1, 32], strides = [1, 1, 1]} : vector<2x16x32xf32> to vector<2x1x32xf32>
    %582 = vector.shape_cast %581 : vector<2x1x32xf32> to vector<2x32xf32>
    %583 = vector.extract_strided_slice %65 {offsets = [3, 0, 0], sizes = [1, 32, 32], strides = [1, 1, 1]} : vector<4x32x32xf32> to vector<1x32x32xf32>
    %584 = vector.shape_cast %583 : vector<1x32x32xf32> to vector<32x32xf32>
    %cst_135 = arith.constant dense<0.000000e+00> : vector<2x32xf32>
    %585 = tpu.matmul %551, %584, %cst_135 {dimension_numbers = #tpu.dot_dimension_numbers<[1], [0], [0], [1], [0, 0, 1, 1], [], []>} : vector<2x32xf32>, vector<32x32xf32>, vector<2x32xf32> -> vector<2x32xf32>
    %586 = arith.addf %582, %585 : vector<2x32xf32>
    %587 = arith.negf %586 : vector<2x32xf32>
    %588 = math.exp %587 : vector<2x32xf32>
    %cst_136 = arith.constant 1.000000e+00 : f32
    %589 = vector.broadcast %cst_136 : f32 to vector<2x32xf32>
    %590 = arith.addf %589, %588 : vector<2x32xf32>
    %591 = arith.divf %589, %590 : vector<2x32xf32>
    %592 = arith.mulf %573, %549 : vector<2x32xf32>
    %593 = arith.mulf %562, %580 : vector<2x32xf32>
    %594 = arith.addf %592, %593 : vector<2x32xf32>
    %595 = math.tanh %594 : vector<2x32xf32>
    %596 = arith.mulf %591, %595 : vector<2x32xf32>
    %597 = vector.extract_strided_slice %75 {offsets = [0, 11, 0], sizes = [2, 1, 32], strides = [1, 1, 1]} : vector<2x16x32xf32> to vector<2x1x32xf32>
    %598 = vector.shape_cast %597 : vector<2x1x32xf32> to vector<2x32xf32>
    %599 = vector.extract_strided_slice %65 {offsets = [0, 0, 0], sizes = [1, 32, 32], strides = [1, 1, 1]} : vector<4x32x32xf32> to vector<1x32x32xf32>
    %600 = vector.shape_cast %599 : vector<1x32x32xf32> to vector<32x32xf32>
    %cst_137 = arith.constant dense<0.000000e+00> : vector<2x32xf32>
    %601 = tpu.matmul %596, %600, %cst_137 {dimension_numbers = #tpu.dot_dimension_numbers<[1], [0], [0], [1], [0, 0, 1, 1], [], []>} : vector<2x32xf32>, vector<32x32xf32>, vector<2x32xf32> -> vector<2x32xf32>
    %602 = arith.addf %598, %601 : vector<2x32xf32>
    %603 = arith.negf %602 : vector<2x32xf32>
    %604 = math.exp %603 : vector<2x32xf32>
    %cst_138 = arith.constant 1.000000e+00 : f32
    %605 = vector.broadcast %cst_138 : f32 to vector<2x32xf32>
    %606 = arith.addf %605, %604 : vector<2x32xf32>
    %607 = arith.divf %605, %606 : vector<2x32xf32>
    %608 = vector.extract_strided_slice %83 {offsets = [0, 11, 0], sizes = [2, 1, 32], strides = [1, 1, 1]} : vector<2x16x32xf32> to vector<2x1x32xf32>
    %609 = vector.shape_cast %608 : vector<2x1x32xf32> to vector<2x32xf32>
    %610 = vector.extract_strided_slice %65 {offsets = [1, 0, 0], sizes = [1, 32, 32], strides = [1, 1, 1]} : vector<4x32x32xf32> to vector<1x32x32xf32>
    %611 = vector.shape_cast %610 : vector<1x32x32xf32> to vector<32x32xf32>
    %cst_139 = arith.constant dense<0.000000e+00> : vector<2x32xf32>
    %612 = tpu.matmul %596, %611, %cst_139 {dimension_numbers = #tpu.dot_dimension_numbers<[1], [0], [0], [1], [0, 0, 1, 1], [], []>} : vector<2x32xf32>, vector<32x32xf32>, vector<2x32xf32> -> vector<2x32xf32>
    %613 = arith.addf %609, %612 : vector<2x32xf32>
    %614 = arith.negf %613 : vector<2x32xf32>
    %615 = math.exp %614 : vector<2x32xf32>
    %cst_140 = arith.constant 1.000000e+00 : f32
    %616 = vector.broadcast %cst_140 : f32 to vector<2x32xf32>
    %617 = arith.addf %616, %615 : vector<2x32xf32>
    %618 = arith.divf %616, %617 : vector<2x32xf32>
    %619 = vector.extract_strided_slice %91 {offsets = [0, 11, 0], sizes = [2, 1, 32], strides = [1, 1, 1]} : vector<2x16x32xf32> to vector<2x1x32xf32>
    %620 = vector.shape_cast %619 : vector<2x1x32xf32> to vector<2x32xf32>
    %621 = vector.extract_strided_slice %65 {offsets = [2, 0, 0], sizes = [1, 32, 32], strides = [1, 1, 1]} : vector<4x32x32xf32> to vector<1x32x32xf32>
    %622 = vector.shape_cast %621 : vector<1x32x32xf32> to vector<32x32xf32>
    %cst_141 = arith.constant dense<0.000000e+00> : vector<2x32xf32>
    %623 = tpu.matmul %596, %622, %cst_141 {dimension_numbers = #tpu.dot_dimension_numbers<[1], [0], [0], [1], [0, 0, 1, 1], [], []>} : vector<2x32xf32>, vector<32x32xf32>, vector<2x32xf32> -> vector<2x32xf32>
    %624 = arith.addf %620, %623 : vector<2x32xf32>
    %625 = math.tanh %624 : vector<2x32xf32>
    %626 = vector.extract_strided_slice %99 {offsets = [0, 11, 0], sizes = [2, 1, 32], strides = [1, 1, 1]} : vector<2x16x32xf32> to vector<2x1x32xf32>
    %627 = vector.shape_cast %626 : vector<2x1x32xf32> to vector<2x32xf32>
    %628 = vector.extract_strided_slice %65 {offsets = [3, 0, 0], sizes = [1, 32, 32], strides = [1, 1, 1]} : vector<4x32x32xf32> to vector<1x32x32xf32>
    %629 = vector.shape_cast %628 : vector<1x32x32xf32> to vector<32x32xf32>
    %cst_142 = arith.constant dense<0.000000e+00> : vector<2x32xf32>
    %630 = tpu.matmul %596, %629, %cst_142 {dimension_numbers = #tpu.dot_dimension_numbers<[1], [0], [0], [1], [0, 0, 1, 1], [], []>} : vector<2x32xf32>, vector<32x32xf32>, vector<2x32xf32> -> vector<2x32xf32>
    %631 = arith.addf %627, %630 : vector<2x32xf32>
    %632 = arith.negf %631 : vector<2x32xf32>
    %633 = math.exp %632 : vector<2x32xf32>
    %cst_143 = arith.constant 1.000000e+00 : f32
    %634 = vector.broadcast %cst_143 : f32 to vector<2x32xf32>
    %635 = arith.addf %634, %633 : vector<2x32xf32>
    %636 = arith.divf %634, %635 : vector<2x32xf32>
    %637 = arith.mulf %618, %594 : vector<2x32xf32>
    %638 = arith.mulf %607, %625 : vector<2x32xf32>
    %639 = arith.addf %637, %638 : vector<2x32xf32>
    %640 = math.tanh %639 : vector<2x32xf32>
    %641 = arith.mulf %636, %640 : vector<2x32xf32>
    %642 = vector.extract_strided_slice %75 {offsets = [0, 12, 0], sizes = [2, 1, 32], strides = [1, 1, 1]} : vector<2x16x32xf32> to vector<2x1x32xf32>
    %643 = vector.shape_cast %642 : vector<2x1x32xf32> to vector<2x32xf32>
    %644 = vector.extract_strided_slice %65 {offsets = [0, 0, 0], sizes = [1, 32, 32], strides = [1, 1, 1]} : vector<4x32x32xf32> to vector<1x32x32xf32>
    %645 = vector.shape_cast %644 : vector<1x32x32xf32> to vector<32x32xf32>
    %cst_144 = arith.constant dense<0.000000e+00> : vector<2x32xf32>
    %646 = tpu.matmul %641, %645, %cst_144 {dimension_numbers = #tpu.dot_dimension_numbers<[1], [0], [0], [1], [0, 0, 1, 1], [], []>} : vector<2x32xf32>, vector<32x32xf32>, vector<2x32xf32> -> vector<2x32xf32>
    %647 = arith.addf %643, %646 : vector<2x32xf32>
    %648 = arith.negf %647 : vector<2x32xf32>
    %649 = math.exp %648 : vector<2x32xf32>
    %cst_145 = arith.constant 1.000000e+00 : f32
    %650 = vector.broadcast %cst_145 : f32 to vector<2x32xf32>
    %651 = arith.addf %650, %649 : vector<2x32xf32>
    %652 = arith.divf %650, %651 : vector<2x32xf32>
    %653 = vector.extract_strided_slice %83 {offsets = [0, 12, 0], sizes = [2, 1, 32], strides = [1, 1, 1]} : vector<2x16x32xf32> to vector<2x1x32xf32>
    %654 = vector.shape_cast %653 : vector<2x1x32xf32> to vector<2x32xf32>
    %655 = vector.extract_strided_slice %65 {offsets = [1, 0, 0], sizes = [1, 32, 32], strides = [1, 1, 1]} : vector<4x32x32xf32> to vector<1x32x32xf32>
    %656 = vector.shape_cast %655 : vector<1x32x32xf32> to vector<32x32xf32>
    %cst_146 = arith.constant dense<0.000000e+00> : vector<2x32xf32>
    %657 = tpu.matmul %641, %656, %cst_146 {dimension_numbers = #tpu.dot_dimension_numbers<[1], [0], [0], [1], [0, 0, 1, 1], [], []>} : vector<2x32xf32>, vector<32x32xf32>, vector<2x32xf32> -> vector<2x32xf32>
    %658 = arith.addf %654, %657 : vector<2x32xf32>
    %659 = arith.negf %658 : vector<2x32xf32>
    %660 = math.exp %659 : vector<2x32xf32>
    %cst_147 = arith.constant 1.000000e+00 : f32
    %661 = vector.broadcast %cst_147 : f32 to vector<2x32xf32>
    %662 = arith.addf %661, %660 : vector<2x32xf32>
    %663 = arith.divf %661, %662 : vector<2x32xf32>
    %664 = vector.extract_strided_slice %91 {offsets = [0, 12, 0], sizes = [2, 1, 32], strides = [1, 1, 1]} : vector<2x16x32xf32> to vector<2x1x32xf32>
    %665 = vector.shape_cast %664 : vector<2x1x32xf32> to vector<2x32xf32>
    %666 = vector.extract_strided_slice %65 {offsets = [2, 0, 0], sizes = [1, 32, 32], strides = [1, 1, 1]} : vector<4x32x32xf32> to vector<1x32x32xf32>
    %667 = vector.shape_cast %666 : vector<1x32x32xf32> to vector<32x32xf32>
    %cst_148 = arith.constant dense<0.000000e+00> : vector<2x32xf32>
    %668 = tpu.matmul %641, %667, %cst_148 {dimension_numbers = #tpu.dot_dimension_numbers<[1], [0], [0], [1], [0, 0, 1, 1], [], []>} : vector<2x32xf32>, vector<32x32xf32>, vector<2x32xf32> -> vector<2x32xf32>
    %669 = arith.addf %665, %668 : vector<2x32xf32>
    %670 = math.tanh %669 : vector<2x32xf32>
    %671 = vector.extract_strided_slice %99 {offsets = [0, 12, 0], sizes = [2, 1, 32], strides = [1, 1, 1]} : vector<2x16x32xf32> to vector<2x1x32xf32>
    %672 = vector.shape_cast %671 : vector<2x1x32xf32> to vector<2x32xf32>
    %673 = vector.extract_strided_slice %65 {offsets = [3, 0, 0], sizes = [1, 32, 32], strides = [1, 1, 1]} : vector<4x32x32xf32> to vector<1x32x32xf32>
    %674 = vector.shape_cast %673 : vector<1x32x32xf32> to vector<32x32xf32>
    %cst_149 = arith.constant dense<0.000000e+00> : vector<2x32xf32>
    %675 = tpu.matmul %641, %674, %cst_149 {dimension_numbers = #tpu.dot_dimension_numbers<[1], [0], [0], [1], [0, 0, 1, 1], [], []>} : vector<2x32xf32>, vector<32x32xf32>, vector<2x32xf32> -> vector<2x32xf32>
    %676 = arith.addf %672, %675 : vector<2x32xf32>
    %677 = arith.negf %676 : vector<2x32xf32>
    %678 = math.exp %677 : vector<2x32xf32>
    %cst_150 = arith.constant 1.000000e+00 : f32
    %679 = vector.broadcast %cst_150 : f32 to vector<2x32xf32>
    %680 = arith.addf %679, %678 : vector<2x32xf32>
    %681 = arith.divf %679, %680 : vector<2x32xf32>
    %682 = arith.mulf %663, %639 : vector<2x32xf32>
    %683 = arith.mulf %652, %670 : vector<2x32xf32>
    %684 = arith.addf %682, %683 : vector<2x32xf32>
    %685 = math.tanh %684 : vector<2x32xf32>
    %686 = arith.mulf %681, %685 : vector<2x32xf32>
    %687 = vector.extract_strided_slice %75 {offsets = [0, 13, 0], sizes = [2, 1, 32], strides = [1, 1, 1]} : vector<2x16x32xf32> to vector<2x1x32xf32>
    %688 = vector.shape_cast %687 : vector<2x1x32xf32> to vector<2x32xf32>
    %689 = vector.extract_strided_slice %65 {offsets = [0, 0, 0], sizes = [1, 32, 32], strides = [1, 1, 1]} : vector<4x32x32xf32> to vector<1x32x32xf32>
    %690 = vector.shape_cast %689 : vector<1x32x32xf32> to vector<32x32xf32>
    %cst_151 = arith.constant dense<0.000000e+00> : vector<2x32xf32>
    %691 = tpu.matmul %686, %690, %cst_151 {dimension_numbers = #tpu.dot_dimension_numbers<[1], [0], [0], [1], [0, 0, 1, 1], [], []>} : vector<2x32xf32>, vector<32x32xf32>, vector<2x32xf32> -> vector<2x32xf32>
    %692 = arith.addf %688, %691 : vector<2x32xf32>
    %693 = arith.negf %692 : vector<2x32xf32>
    %694 = math.exp %693 : vector<2x32xf32>
    %cst_152 = arith.constant 1.000000e+00 : f32
    %695 = vector.broadcast %cst_152 : f32 to vector<2x32xf32>
    %696 = arith.addf %695, %694 : vector<2x32xf32>
    %697 = arith.divf %695, %696 : vector<2x32xf32>
    %698 = vector.extract_strided_slice %83 {offsets = [0, 13, 0], sizes = [2, 1, 32], strides = [1, 1, 1]} : vector<2x16x32xf32> to vector<2x1x32xf32>
    %699 = vector.shape_cast %698 : vector<2x1x32xf32> to vector<2x32xf32>
    %700 = vector.extract_strided_slice %65 {offsets = [1, 0, 0], sizes = [1, 32, 32], strides = [1, 1, 1]} : vector<4x32x32xf32> to vector<1x32x32xf32>
    %701 = vector.shape_cast %700 : vector<1x32x32xf32> to vector<32x32xf32>
    %cst_153 = arith.constant dense<0.000000e+00> : vector<2x32xf32>
    %702 = tpu.matmul %686, %701, %cst_153 {dimension_numbers = #tpu.dot_dimension_numbers<[1], [0], [0], [1], [0, 0, 1, 1], [], []>} : vector<2x32xf32>, vector<32x32xf32>, vector<2x32xf32> -> vector<2x32xf32>
    %703 = arith.addf %699, %702 : vector<2x32xf32>
    %704 = arith.negf %703 : vector<2x32xf32>
    %705 = math.exp %704 : vector<2x32xf32>
    %cst_154 = arith.constant 1.000000e+00 : f32
    %706 = vector.broadcast %cst_154 : f32 to vector<2x32xf32>
    %707 = arith.addf %706, %705 : vector<2x32xf32>
    %708 = arith.divf %706, %707 : vector<2x32xf32>
    %709 = vector.extract_strided_slice %91 {offsets = [0, 13, 0], sizes = [2, 1, 32], strides = [1, 1, 1]} : vector<2x16x32xf32> to vector<2x1x32xf32>
    %710 = vector.shape_cast %709 : vector<2x1x32xf32> to vector<2x32xf32>
    %711 = vector.extract_strided_slice %65 {offsets = [2, 0, 0], sizes = [1, 32, 32], strides = [1, 1, 1]} : vector<4x32x32xf32> to vector<1x32x32xf32>
    %712 = vector.shape_cast %711 : vector<1x32x32xf32> to vector<32x32xf32>
    %cst_155 = arith.constant dense<0.000000e+00> : vector<2x32xf32>
    %713 = tpu.matmul %686, %712, %cst_155 {dimension_numbers = #tpu.dot_dimension_numbers<[1], [0], [0], [1], [0, 0, 1, 1], [], []>} : vector<2x32xf32>, vector<32x32xf32>, vector<2x32xf32> -> vector<2x32xf32>
    %714 = arith.addf %710, %713 : vector<2x32xf32>
    %715 = math.tanh %714 : vector<2x32xf32>
    %716 = vector.extract_strided_slice %99 {offsets = [0, 13, 0], sizes = [2, 1, 32], strides = [1, 1, 1]} : vector<2x16x32xf32> to vector<2x1x32xf32>
    %717 = vector.shape_cast %716 : vector<2x1x32xf32> to vector<2x32xf32>
    %718 = vector.extract_strided_slice %65 {offsets = [3, 0, 0], sizes = [1, 32, 32], strides = [1, 1, 1]} : vector<4x32x32xf32> to vector<1x32x32xf32>
    %719 = vector.shape_cast %718 : vector<1x32x32xf32> to vector<32x32xf32>
    %cst_156 = arith.constant dense<0.000000e+00> : vector<2x32xf32>
    %720 = tpu.matmul %686, %719, %cst_156 {dimension_numbers = #tpu.dot_dimension_numbers<[1], [0], [0], [1], [0, 0, 1, 1], [], []>} : vector<2x32xf32>, vector<32x32xf32>, vector<2x32xf32> -> vector<2x32xf32>
    %721 = arith.addf %717, %720 : vector<2x32xf32>
    %722 = arith.negf %721 : vector<2x32xf32>
    %723 = math.exp %722 : vector<2x32xf32>
    %cst_157 = arith.constant 1.000000e+00 : f32
    %724 = vector.broadcast %cst_157 : f32 to vector<2x32xf32>
    %725 = arith.addf %724, %723 : vector<2x32xf32>
    %726 = arith.divf %724, %725 : vector<2x32xf32>
    %727 = arith.mulf %708, %684 : vector<2x32xf32>
    %728 = arith.mulf %697, %715 : vector<2x32xf32>
    %729 = arith.addf %727, %728 : vector<2x32xf32>
    %730 = math.tanh %729 : vector<2x32xf32>
    %731 = arith.mulf %726, %730 : vector<2x32xf32>
    %732 = vector.extract_strided_slice %75 {offsets = [0, 14, 0], sizes = [2, 1, 32], strides = [1, 1, 1]} : vector<2x16x32xf32> to vector<2x1x32xf32>
    %733 = vector.shape_cast %732 : vector<2x1x32xf32> to vector<2x32xf32>
    %734 = vector.extract_strided_slice %65 {offsets = [0, 0, 0], sizes = [1, 32, 32], strides = [1, 1, 1]} : vector<4x32x32xf32> to vector<1x32x32xf32>
    %735 = vector.shape_cast %734 : vector<1x32x32xf32> to vector<32x32xf32>
    %cst_158 = arith.constant dense<0.000000e+00> : vector<2x32xf32>
    %736 = tpu.matmul %731, %735, %cst_158 {dimension_numbers = #tpu.dot_dimension_numbers<[1], [0], [0], [1], [0, 0, 1, 1], [], []>} : vector<2x32xf32>, vector<32x32xf32>, vector<2x32xf32> -> vector<2x32xf32>
    %737 = arith.addf %733, %736 : vector<2x32xf32>
    %738 = arith.negf %737 : vector<2x32xf32>
    %739 = math.exp %738 : vector<2x32xf32>
    %cst_159 = arith.constant 1.000000e+00 : f32
    %740 = vector.broadcast %cst_159 : f32 to vector<2x32xf32>
    %741 = arith.addf %740, %739 : vector<2x32xf32>
    %742 = arith.divf %740, %741 : vector<2x32xf32>
    %743 = vector.extract_strided_slice %83 {offsets = [0, 14, 0], sizes = [2, 1, 32], strides = [1, 1, 1]} : vector<2x16x32xf32> to vector<2x1x32xf32>
    %744 = vector.shape_cast %743 : vector<2x1x32xf32> to vector<2x32xf32>
    %745 = vector.extract_strided_slice %65 {offsets = [1, 0, 0], sizes = [1, 32, 32], strides = [1, 1, 1]} : vector<4x32x32xf32> to vector<1x32x32xf32>
    %746 = vector.shape_cast %745 : vector<1x32x32xf32> to vector<32x32xf32>
    %cst_160 = arith.constant dense<0.000000e+00> : vector<2x32xf32>
    %747 = tpu.matmul %731, %746, %cst_160 {dimension_numbers = #tpu.dot_dimension_numbers<[1], [0], [0], [1], [0, 0, 1, 1], [], []>} : vector<2x32xf32>, vector<32x32xf32>, vector<2x32xf32> -> vector<2x32xf32>
    %748 = arith.addf %744, %747 : vector<2x32xf32>
    %749 = arith.negf %748 : vector<2x32xf32>
    %750 = math.exp %749 : vector<2x32xf32>
    %cst_161 = arith.constant 1.000000e+00 : f32
    %751 = vector.broadcast %cst_161 : f32 to vector<2x32xf32>
    %752 = arith.addf %751, %750 : vector<2x32xf32>
    %753 = arith.divf %751, %752 : vector<2x32xf32>
    %754 = vector.extract_strided_slice %91 {offsets = [0, 14, 0], sizes = [2, 1, 32], strides = [1, 1, 1]} : vector<2x16x32xf32> to vector<2x1x32xf32>
    %755 = vector.shape_cast %754 : vector<2x1x32xf32> to vector<2x32xf32>
    %756 = vector.extract_strided_slice %65 {offsets = [2, 0, 0], sizes = [1, 32, 32], strides = [1, 1, 1]} : vector<4x32x32xf32> to vector<1x32x32xf32>
    %757 = vector.shape_cast %756 : vector<1x32x32xf32> to vector<32x32xf32>
    %cst_162 = arith.constant dense<0.000000e+00> : vector<2x32xf32>
    %758 = tpu.matmul %731, %757, %cst_162 {dimension_numbers = #tpu.dot_dimension_numbers<[1], [0], [0], [1], [0, 0, 1, 1], [], []>} : vector<2x32xf32>, vector<32x32xf32>, vector<2x32xf32> -> vector<2x32xf32>
    %759 = arith.addf %755, %758 : vector<2x32xf32>
    %760 = math.tanh %759 : vector<2x32xf32>
    %761 = vector.extract_strided_slice %99 {offsets = [0, 14, 0], sizes = [2, 1, 32], strides = [1, 1, 1]} : vector<2x16x32xf32> to vector<2x1x32xf32>
    %762 = vector.shape_cast %761 : vector<2x1x32xf32> to vector<2x32xf32>
    %763 = vector.extract_strided_slice %65 {offsets = [3, 0, 0], sizes = [1, 32, 32], strides = [1, 1, 1]} : vector<4x32x32xf32> to vector<1x32x32xf32>
    %764 = vector.shape_cast %763 : vector<1x32x32xf32> to vector<32x32xf32>
    %cst_163 = arith.constant dense<0.000000e+00> : vector<2x32xf32>
    %765 = tpu.matmul %731, %764, %cst_163 {dimension_numbers = #tpu.dot_dimension_numbers<[1], [0], [0], [1], [0, 0, 1, 1], [], []>} : vector<2x32xf32>, vector<32x32xf32>, vector<2x32xf32> -> vector<2x32xf32>
    %766 = arith.addf %762, %765 : vector<2x32xf32>
    %767 = arith.negf %766 : vector<2x32xf32>
    %768 = math.exp %767 : vector<2x32xf32>
    %cst_164 = arith.constant 1.000000e+00 : f32
    %769 = vector.broadcast %cst_164 : f32 to vector<2x32xf32>
    %770 = arith.addf %769, %768 : vector<2x32xf32>
    %771 = arith.divf %769, %770 : vector<2x32xf32>
    %772 = arith.mulf %753, %729 : vector<2x32xf32>
    %773 = arith.mulf %742, %760 : vector<2x32xf32>
    %774 = arith.addf %772, %773 : vector<2x32xf32>
    %775 = math.tanh %774 : vector<2x32xf32>
    %776 = arith.mulf %771, %775 : vector<2x32xf32>
    %777 = vector.extract_strided_slice %75 {offsets = [0, 15, 0], sizes = [2, 1, 32], strides = [1, 1, 1]} : vector<2x16x32xf32> to vector<2x1x32xf32>
    %778 = vector.shape_cast %777 : vector<2x1x32xf32> to vector<2x32xf32>
    %779 = vector.extract_strided_slice %65 {offsets = [0, 0, 0], sizes = [1, 32, 32], strides = [1, 1, 1]} : vector<4x32x32xf32> to vector<1x32x32xf32>
    %780 = vector.shape_cast %779 : vector<1x32x32xf32> to vector<32x32xf32>
    %cst_165 = arith.constant dense<0.000000e+00> : vector<2x32xf32>
    %781 = tpu.matmul %776, %780, %cst_165 {dimension_numbers = #tpu.dot_dimension_numbers<[1], [0], [0], [1], [0, 0, 1, 1], [], []>} : vector<2x32xf32>, vector<32x32xf32>, vector<2x32xf32> -> vector<2x32xf32>
    %782 = arith.addf %778, %781 : vector<2x32xf32>
    %783 = arith.negf %782 : vector<2x32xf32>
    %784 = math.exp %783 : vector<2x32xf32>
    %cst_166 = arith.constant 1.000000e+00 : f32
    %785 = vector.broadcast %cst_166 : f32 to vector<2x32xf32>
    %786 = arith.addf %785, %784 : vector<2x32xf32>
    %787 = arith.divf %785, %786 : vector<2x32xf32>
    %788 = vector.extract_strided_slice %83 {offsets = [0, 15, 0], sizes = [2, 1, 32], strides = [1, 1, 1]} : vector<2x16x32xf32> to vector<2x1x32xf32>
    %789 = vector.shape_cast %788 : vector<2x1x32xf32> to vector<2x32xf32>
    %790 = vector.extract_strided_slice %65 {offsets = [1, 0, 0], sizes = [1, 32, 32], strides = [1, 1, 1]} : vector<4x32x32xf32> to vector<1x32x32xf32>
    %791 = vector.shape_cast %790 : vector<1x32x32xf32> to vector<32x32xf32>
    %cst_167 = arith.constant dense<0.000000e+00> : vector<2x32xf32>
    %792 = tpu.matmul %776, %791, %cst_167 {dimension_numbers = #tpu.dot_dimension_numbers<[1], [0], [0], [1], [0, 0, 1, 1], [], []>} : vector<2x32xf32>, vector<32x32xf32>, vector<2x32xf32> -> vector<2x32xf32>
    %793 = arith.addf %789, %792 : vector<2x32xf32>
    %794 = arith.negf %793 : vector<2x32xf32>
    %795 = math.exp %794 : vector<2x32xf32>
    %cst_168 = arith.constant 1.000000e+00 : f32
    %796 = vector.broadcast %cst_168 : f32 to vector<2x32xf32>
    %797 = arith.addf %796, %795 : vector<2x32xf32>
    %798 = arith.divf %796, %797 : vector<2x32xf32>
    %799 = vector.extract_strided_slice %91 {offsets = [0, 15, 0], sizes = [2, 1, 32], strides = [1, 1, 1]} : vector<2x16x32xf32> to vector<2x1x32xf32>
    %800 = vector.shape_cast %799 : vector<2x1x32xf32> to vector<2x32xf32>
    %801 = vector.extract_strided_slice %65 {offsets = [2, 0, 0], sizes = [1, 32, 32], strides = [1, 1, 1]} : vector<4x32x32xf32> to vector<1x32x32xf32>
    %802 = vector.shape_cast %801 : vector<1x32x32xf32> to vector<32x32xf32>
    %cst_169 = arith.constant dense<0.000000e+00> : vector<2x32xf32>
    %803 = tpu.matmul %776, %802, %cst_169 {dimension_numbers = #tpu.dot_dimension_numbers<[1], [0], [0], [1], [0, 0, 1, 1], [], []>} : vector<2x32xf32>, vector<32x32xf32>, vector<2x32xf32> -> vector<2x32xf32>
    %804 = arith.addf %800, %803 : vector<2x32xf32>
    %805 = math.tanh %804 : vector<2x32xf32>
    %806 = vector.extract_strided_slice %99 {offsets = [0, 15, 0], sizes = [2, 1, 32], strides = [1, 1, 1]} : vector<2x16x32xf32> to vector<2x1x32xf32>
    %807 = vector.shape_cast %806 : vector<2x1x32xf32> to vector<2x32xf32>
    %808 = vector.extract_strided_slice %65 {offsets = [3, 0, 0], sizes = [1, 32, 32], strides = [1, 1, 1]} : vector<4x32x32xf32> to vector<1x32x32xf32>
    %809 = vector.shape_cast %808 : vector<1x32x32xf32> to vector<32x32xf32>
    %cst_170 = arith.constant dense<0.000000e+00> : vector<2x32xf32>
    %810 = tpu.matmul %776, %809, %cst_170 {dimension_numbers = #tpu.dot_dimension_numbers<[1], [0], [0], [1], [0, 0, 1, 1], [], []>} : vector<2x32xf32>, vector<32x32xf32>, vector<2x32xf32> -> vector<2x32xf32>
    %811 = arith.addf %807, %810 : vector<2x32xf32>
    %812 = arith.negf %811 : vector<2x32xf32>
    %813 = math.exp %812 : vector<2x32xf32>
    %cst_171 = arith.constant 1.000000e+00 : f32
    %814 = vector.broadcast %cst_171 : f32 to vector<2x32xf32>
    %815 = arith.addf %814, %813 : vector<2x32xf32>
    %816 = arith.divf %814, %815 : vector<2x32xf32>
    %817 = arith.mulf %798, %774 : vector<2x32xf32>
    %818 = arith.mulf %787, %805 : vector<2x32xf32>
    %819 = arith.addf %817, %818 : vector<2x32xf32>
    %820 = math.tanh %819 : vector<2x32xf32>
    %821 = arith.mulf %816, %820 : vector<2x32xf32>
    %c0_172 = arith.constant 0 : index
    %c0_173 = arith.constant 0 : index
    %c0_174 = arith.constant 0 : index
    %822 = vector.load %arg11[%c0_172, %c0_173, %c0_174] : memref<1x2x32xf32, #tpu.memory_space<vmem>>, vector<1x2x32xf32>
    %823 = vector.shape_cast %822 : vector<1x2x32xf32> to vector<2x32xf32>
    %824 = vector.shape_cast %821 : vector<2x32xf32> to vector<1x2x32xf32>
    tpu.vector_store %arg11[%c0_172, %c0_173, %c0_174], %824 {strides = array<i32>} : memref<1x2x32xf32, #tpu.memory_space<vmem>>, vector<1x2x32xf32>,
    return
  }
  func.func @transform_0(%arg0: i32) -> (i32, i32, i32, i32) {
    %c0_i32 = arith.constant 0 : i32
    %c0_i32_0 = arith.constant 0 : i32
    %c0_i32_1 = arith.constant 0 : i32
    %c0_i32_2 = arith.constant 0 : i32
    return %arg0, %c0_i32, %c0_i32_0, %c0_i32_1 : i32, i32, i32, i32
  }
  func.func @transform_1(%arg0: i32) -> (i32, i32, i32, i32) {
    %c0_i32 = arith.constant 0 : i32
    %c0_i32_0 = arith.constant 0 : i32
    %c0_i32_1 = arith.constant 0 : i32
    %c0_i32_2 = arith.constant 0 : i32
    return %arg0, %c0_i32, %c0_i32_0, %c0_i32_1 : i32, i32, i32, i32
  }
  func.func @transform_2(%arg0: i32) -> (i32, i32, i32) {
    %c0_i32 = arith.constant 0 : i32
    %c0_i32_0 = arith.constant 0 : i32
    %c0_i32_1 = arith.constant 0 : i32
    return %arg0, %c0_i32, %c0_i32_0 : i32, i32, i32
  }
  func.func @transform_3(%arg0: i32) -> (i32, i32, i32, i32) {
    %c0_i32 = arith.constant 0 : i32
    %c0_i32_0 = arith.constant 0 : i32
    %c0_i32_1 = arith.constant 0 : i32
    %c0_i32_2 = arith.constant 0 : i32
    return %arg0, %c0_i32, %c0_i32_0, %c0_i32_1 : i32, i32, i32, i32
  }
  func.func @transform_4(%arg0: i32) -> (i32, i32, i32) {
    %c0_i32 = arith.constant 0 : i32
    %c0_i32_0 = arith.constant 0 : i32
    %c0_i32_1 = arith.constant 0 : i32
    return %arg0, %c0_i32, %c0_i32_0 : i32, i32, i32
  }
  func.func @transform_5(%arg0: i32) -> (i32, i32, i32) {
    %c0_i32 = arith.constant 0 : i32
    %c0_i32_0 = arith.constant 0 : i32
    %c0_i32_1 = arith.constant 0 : i32
    return %arg0, %c0_i32, %c0_i32_0 : i32, i32, i32
  }
  func.func @transform_6(%arg0: i32) -> (i32, i32, i32) {
    %c0_i32 = arith.constant 0 : i32
    %c0_i32_0 = arith.constant 0 : i32
    %c0_i32_1 = arith.constant 0 : i32
    return %arg0, %c0_i32, %c0_i32_0 : i32, i32, i32
  }
  func.func @transform_7(%arg0: i32) -> (i32, i32, i32, i32) {
    %c0_i32 = arith.constant 0 : i32
    %c0_i32_0 = arith.constant 0 : i32
    %c0_i32_1 = arith.constant 0 : i32
    %c0_i32_2 = arith.constant 0 : i32
    return %arg0, %c0_i32, %c0_i32_0, %c0_i32_1 : i32, i32, i32, i32
  }
  func.func @transform_8(%arg0: i32) -> (i32, i32, i32, i32) {
    %c0_i32 = arith.constant 0 : i32
    %c0_i32_0 = arith.constant 0 : i32
    %c0_i32_1 = arith.constant 0 : i32
    %c0_i32_2 = arith.constant 0 : i32
    return %arg0, %c0_i32, %c0_i32_0, %c0_i32_1 : i32, i32, i32, i32
  }
  func.func @transform_9(%arg0: i32) -> (i32, i32, i32, i32) {
    %c0_i32 = arith.constant 0 : i32
    %c0_i32_0 = arith.constant 0 : i32
    %c0_i32_1 = arith.constant 0 : i32
    %c0_i32_2 = arith.constant 0 : i32
    return %arg0, %c0_i32, %c0_i32_0, %c0_i32_1 : i32, i32, i32, i32
  }
  func.func @transform_10(%arg0: i32) -> (i32, i32, i32) {
    %c0_i32 = arith.constant 0 : i32
    %c0_i32_0 = arith.constant 0 : i32
    %c0_i32_1 = arith.constant 0 : i32
    return %arg0, %c0_i32, %c0_i32_0 : i32, i32, i32
  }
}

</mosaic_0001>

<bundles_post_ra>
// kernel: model_forward.1
= control target key start
LH: loop header
LB: loop body
LE: loop exit
PB: predicated region body
PF: predicated region fallthrough
CT: control target
= control target key end

     0   :  { %s11815_s0 = inlined_call_operand.vmem [shape: f32[2,2,18,4], index: 0, kind: input, shape index: {}]   ;;  %s11816_s1 = inlined_call_operand.vmem [shape: f32[2,3,4,8], index: 1, kind: input, shape index: {}]   ;;  %s11817_s2 = inlined_call_operand.hbm [shape: f32[2,1,8], index: 2, kind: input, shape index: {}]   ;;  %s11818_s3 = inlined_call_operand.hbm [shape: f32[2,3,8,8], index: 3, kind: input, shape index: {}]   ;;  %s11819_s4 = inlined_call_operand.hbm [shape: f32[2,1,8], index: 4, kind: input, shape index: {}]   ;;  %s11820_s5 = inlined_call_operand.vmem [shape: f32[2,4,8], index: 5, kind: input, shape index: {}]   ;;  %s11821_s6 = inlined_call_operand.hbm [shape: f32[2,1,8], index: 6, kind: input, shape index: {}]   ;;  %s11822_s7 = inlined_call_operand.hbm [shape: f32[2,4,8,32], index: 7, kind: input, shape index: {}]   ;;  %s11823_s8 = inlined_call_operand.vmem [shape: f32[2,4,32,32], index: 8, kind: input, shape index: {}]   ;;  %s11824_s9 = inlined_call_operand.hbm [shape: f32[2,4,1,32], index: 9, kind: input, shape index: {}]   ;;  %s11825_s10 = inlined_call_operand.vmem [shape: f32[2,2,32], index: 10, kind: output, shape index: {}]  }
   0x1   :  { %11833 = sst [smem:[#allocation20_spill]] %s11818_s3 }
   0x2   :  { %11834 = sst [smem:[#allocation21_spill]] %s11821_s6 }
   0x3   :  { %11835 = sst [smem:[#allocation22_spill]] %s11823_s8 }
   0x4   :  { %11836 = sst [smem:[#allocation23_spill]] %s11825_s10 }
   0x5   :  { %15 = vsyncpa [#allocation4], 0 }
   0x6   :  { %17 = vsyncpa [#allocation4 + $0x1], 0 }
   0x7   :  { %18 = vsyncpa [#allocation6], 0 }
   0x8   :  { %20 = vsyncpa [#allocation6 + $0x1], 0 }
   0x9   :  { %21 = vsyncpa [#allocation9], 0 }
   0xa   :  { %23 = vsyncpa [#allocation9 + $0x1], 0 }
   0xb   :  { %24 = vsyncpa [#allocation12], 0 }
   0xc   :  { %26 = vsyncpa [#allocation12 + $0x1], 0  ;;  %s10233_s13 = smov 0   ;;  %s10235_s14 = smov 0  }
   0xd   :  { %s10237_s15 = smov 0   ;;  %s10239_s16 = smov 0  }
   0xe LB: > { %11837 = sst [smem:[#allocation17_spill]] %s10160_s15  ;;  %s10252_s17 = sadd.s32 4294967295, %s10164_s16   ;;  %s10164_s16 = sphi %s10239_s16, %s11853_s16   ;;  %s10160_s15 = sphi %s10237_s15, %s11855_s15   ;;  %s10156_s14 = sphi %s10235_s14, %s11857_s14   ;;  %s10152_s13 = sphi %s10233_s13, %s11856_s13  }
   0xf   : > { %s10255_s18 = sadd.s32 1, %s10164_s16   ;;  %s91_s20 = sadd.s32 1, %s10160_s15 }
  0x10   : > { %11838 = sst [smem:[#allocation18_spill]] %s10255_s18  ;;  %s88_s19 = ssub.s32 %s10164_s16, %s10255_s18 }
  0x11   : > { %p89_p0 = scmp.eq.s32.totalorder %s88_s19, 0  ;;  %p98_p1 = scmp.ne.s32.totalorder %s10160_s15, %s10156_s14 }
  0x12   : > { %p99_p2 = scmp.eq.s32.totalorder %s10164_s16, 0  ;;  %p104_p3 = scmp.ne.s32.totalorder %s10156_s14, %s10152_s13 }
  0x13   : > { %s10265_s21 = scalar_select %p89_p0, %s10160_s15, %s91_s20  }
  0x14   : > { %p100_p4 = por %p99_p2, %p98_p1  ;;  %p105_p5 = scmp.eq.s32.totalorder %s10252_s17, 0 }
  0x15   : > { %11839 = sst [smem:[#allocation19_spill]] %s10265_s21  ;;  %p9351_p6 = scmp.lt.s32.totalorder %s10164_s16, 2 }
  0x16   : > { %p10269_p7 = por %p105_p5, %p104_p3  ;;  %s10274_s23 = sand.u32 1, %s10160_s15  }
  0x17   : > { %p10276_p8 = pnand %p9351_p6, %p100_p4  ;;  %s11826_s25 = sand.u32 1, %s10164_s16  }
  0x18   : > { %s11840_s22 = scalar_select %p10269_p7, 1, 0 }
  0x19   : > { %s9315_s26 = smul.u32 24, %s10274_s23  ;;  %s11842_s3 = sld [smem:[#allocation20_spill]] }
  0x1a   : > { %s9316_s27 = smul.u32 384, %s10164_s16  ;;  %s10292_s13 = scalar_lea.sflag [#allocation6], %s11826_s25 }
  0x1b   : > { %s373_s11 = scalar_lea.vmem [#allocation5], %s9315_s26  ;;  %p10298_p10 = pneg %p10276_p8 }
  0x1c   : > { %s380_s12 = sshll.u32 %s373_s11, 4  ;;  %s10288_s12 = int_to_ptr.vmem [resolvable:$true] %s380_s12 }
  0x1f   : > { %s10286_s30 = scalar_lea.hbm %s11842_s3, %s9316_s27  ;;  %s9955_s26 = scalar_lea.hbm %s11842_s3, 768 }
  0x20   : > { %s9950_s19 = scalar_lea.hbm %s10286_s30, 384  ;;  %p9956_p13 = scmp.lt.s32.totalorder %s10286_s30, %s11842_s3 }
  0x21   : > { %p9951_p9 = scmp.ne.s32.totalorder %s10286_s30, %s9950_s19  ;;  %p9957_p0 = scmp.lt.s32.totalorder %s9955_s26, %s9950_s19 }
  0x23   : > { %p9953_p11 = pnand %p10298_p10, %p9951_p9  ;;  %p9958_p1 = por %p9957_p0, %p9956_p13 }
  0x25   : > { %p9954_p12 = pneg %p9953_p11 }
  0x27   : > { %p9959_p2 = pnand %p9958_p1, %p9954_p12 }
  0x29   : > { %9962 = shalt.err (!%p9959_p2)
}
  0x2a   : > { %s9963_s25 = scalar_lea.vmem %s10288_s12, 384  ;;  %s10166_s21 = smov [#allocation5]  }
  0x2b   : > { %p9964_p3 = scmp.ne.s32.totalorder %s10288_s12, %s9963_s25  ;;  %s9968_s27 = sshll.u32 %s10166_s21, 4  ;;  %s9969_s27 = int_to_ptr.vmem [resolvable:$false] %s9968_s27 }
  0x2c   : > { %s9970_s28 = scalar_lea.vmem %s9969_s27, 768  ;;  %p9971_p6 = scmp.lt.s32.totalorder %s10288_s12, %s9969_s27 }
  0x2d   : > { %p9966_p4 = pnand %p9964_p3, %p10298_p10  ;;  %p9972_p9 = scmp.lt.s32.totalorder %s9970_s28, %s9963_s25 }
  0x2f   : > { %p9967_p5 = pneg %p9966_p4  ;;  %p9973_p11 = por %p9972_p9, %p9971_p6 }
  0x31   : > { %p9974_p7 = pnand %p9973_p11, %p9967_p5 }
  0x33   : > { %9977 = shalt.err (!%p9974_p7)
}
  0x34   : > { %s11828_s19 = smov 128   ;;  %s11829_s26 = smov 8  }
  0x35   : > { %9338 = dma.hbm_to_vmem [thread:$0]  (!%p10276_p8), %s10286_s30, 384, %s10288_s12, %s10292_s13, %s11828_s19, %s11828_s19, %s11829_s26  }
  0x36   : > { %p7921_p12 = scmp.ge.s32.totalorder %s10164_s16, 1  ;;  %p479_p13 = scmp.lt.s32.totalorder %s10164_s16, 3 }
  0x37   : > { %s10327_s21 = sshll.u32 %s10164_s16, 4  ;;  %s11845_s6 = sld [smem:[#allocation21_spill]] }
  0x38   : > { %p10329_p7 = pnand %p7921_p12, %p479_p13  ;;  %s417_s28 = scalar_lea.vmem [#allocation8], %s10274_s23 }
  0x39   : > { %s424_s3 = sshll.u32 %s417_s28, 4  ;;  %s11846_s30 = sand.u32 1, %s10164_s16   ;;  %s425_s3 = int_to_ptr.vmem [resolvable:$true] %s424_s3 }
  0x3a   : > { %s11844_s25 = scalar_select %p10329_p7, 1, 0 }
  0x3b   : > { %s10342_s12 = scalar_lea.sflag [#allocation9], %s11846_s30 }
  0x3d   : > { %s10337_s27 = scalar_lea.hbm %s11845_s6, %s10327_s21  ;;  %s9983_s29 = scalar_lea.hbm %s11845_s6, 32 }
  0x3e   : > { %s9978_s19 = scalar_lea.hbm %s10337_s27, 16  ;;  %p9984_p3 = scmp.lt.s32.totalorder %s10337_s27, %s11845_s6 }
  0x3f   : > { %p9979_p0 = scmp.ne.s32.totalorder %s10337_s27, %s9978_s19  ;;  %p9985_p4 = scmp.lt.s32.totalorder %s9983_s29, %s9978_s19 }
  0x41   : > { %p9981_p1 = pnand %p9979_p0, %p10298_p10  ;;  %p9986_p5 = por %p9985_p4, %p9984_p3 }
  0x43   : > { %p9982_p2 = pneg %p9981_p1 }
  0x45   : > { %p9987_p6 = pnand %p9986_p5, %p9982_p2 }
  0x47   : > { %9990 = shalt.err (!%p9987_p6)
}
  0x48   : > { %s9991_s28 = scalar_lea.vmem %s425_s3, 16  ;;  %s10169_s30 = smov [#allocation8]  }
  0x49   : > { %p9992_p9 = scmp.ne.s32.totalorder %s425_s3, %s9991_s28  ;;  %s9996_s10 = sshll.u32 %s10169_s30, 4  ;;  %s9997_s10 = int_to_ptr.vmem [resolvable:$false] %s9996_s10 }
  0x4a   : > { %s9998_s8 = scalar_lea.vmem %s9997_s10, 32  ;;  %p9999_p13 = scmp.lt.s32.totalorder %s425_s3, %s9997_s10 }
  0x4b   : > { %p9994_p11 = pnand %p9992_p9, %p10298_p10  ;;  %p10000_p0 = scmp.lt.s32.totalorder %s9998_s8, %s9991_s28 }
  0x4d   : > { %p9995_p12 = pneg %p9994_p11  ;;  %p10001_p1 = por %p10000_p0, %p9999_p13 }
  0x4f   : > { %p10002_p7 = pnand %p10001_p1, %p9995_p12 }
  0x51   : > { %10005 = shalt.err (!%p10002_p7)
}
  0x52   : > { %9344 = dma.hbm_to_vmem [thread:$0]  (!%p10276_p8), %s10337_s27, 16, %s425_s3, %s10342_s12  }
  0x53   : > { %s10365_s19 = scalar_lea.hbm %s11817_s2, %s10327_s21  ;;  %s355_s8 = scalar_lea.vmem [#allocation3], %s10274_s23 }
  0x54   : > { %s362_s10 = sshll.u32 %s355_s8, 4  ;;  %s10372_s11 = scalar_lea.hbm %s11819_s4, %s10327_s21  ;;  %s363_s10 = int_to_ptr.vmem [resolvable:$true] %s362_s10 }
  0x55   : > { %s353_s28 = scalar_lea.sflag [#allocation4], %s10274_s23  ;;  %s10006_s30 = scalar_lea.hbm %s10365_s19, 16 }
  0x56   : > { %p10007_p7 = scmp.ne.s32.totalorder %s10365_s19, %s10006_s30  ;;  %s10011_s15 = scalar_lea.hbm %s11817_s2, 32 }
  0x57   : > { %p10012_p4 = scmp.lt.s32.totalorder %s10365_s19, %s11817_s2  ;;  %p10013_p5 = scmp.lt.s32.totalorder %s10011_s15, %s10006_s30 }
  0x58   : > { %p10009_p2 = pnand %p10007_p7, %p10298_p10 }
  0x59   : > { %p10014_p6 = por %p10013_p5, %p10012_p4 }
  0x5a   : > { %p10010_p3 = pneg %p10009_p2 }
  0x5c   : > { %p10015_p9 = pnand %p10014_p6, %p10010_p3 }
  0x5e   : > { %10018 = shalt.err (!%p10015_p9)
}
  0x5f   : > { %s10019_s21 = scalar_lea.vmem %s363_s10, 16  ;;  %s10170_s8 = smov [#allocation3]  }
  0x60   : > { %p10020_p11 = scmp.ne.s32.totalorder %s363_s10, %s10019_s21  ;;  %s10024_s26 = sshll.u32 %s10170_s8, 4  ;;  %s10025_s26 = int_to_ptr.vmem [resolvable:$false] %s10024_s26 }
  0x61   : > { %s10026_s29 = scalar_lea.vmem %s10025_s26, 32  ;;  %p10027_p0 = scmp.lt.s32.totalorder %s363_s10, %s10025_s26 }
  0x62   : > { %p10022_p12 = pnand %p10020_p11, %p10298_p10  ;;  %p10028_p1 = scmp.lt.s32.totalorder %s10026_s29, %s10019_s21 }
  0x64   : > { %p10023_p13 = pneg %p10022_p12  ;;  %p10029_p7 = por %p10028_p1, %p10027_p0 }
  0x66   : > { %p10030_p2 = pnand %p10029_p7, %p10023_p13 }
  0x68   : > { %10033 = shalt.err (!%p10030_p2)
}
  0x69   : > { %9335 = dma.hbm_to_vmem [thread:$0]  (!%p10276_p8), %s10365_s19, 16, %s363_s10, %s353_s28  }
  0x6a   : > { %s393_s6 = scalar_lea.vmem [#allocation7], %s10274_s23  ;;  %s7915_s3 = sshll.u32 %s10274_s23, 5 }
  0x6b   : > { %s400_s30 = sshll.u32 %s393_s6, 4  ;;  %s10034_s27 = scalar_lea.hbm %s10372_s11, 16  ;;  %s401_s30 = int_to_ptr.vmem [resolvable:$true] %s400_s30 }
  0x6c   : > { %p10035_p3 = scmp.ne.s32.totalorder %s10372_s11, %s10034_s27  ;;  %s10039_s21 = scalar_lea.hbm %s11819_s4, 32 }
  0x6d   : > { %p10040_p6 = scmp.lt.s32.totalorder %s10372_s11, %s11819_s4  ;;  %p10041_p9 = scmp.lt.s32.totalorder %s10039_s21, %s10034_s27 }
  0x6e   : > { %p10037_p4 = pnand %p10035_p3, %p10298_p10 }
  0x6f   : > { %p10042_p11 = por %p10041_p9, %p10040_p6 }
  0x70   : > { %p10038_p5 = pneg %p10037_p4 }
  0x72   : > { %p10043_p12 = pnand %p10042_p11, %p10038_p5 }
  0x74   : > { %10046 = shalt.err (!%p10043_p12)
}
  0x75   : > { %s10047_s19 = scalar_lea.vmem %s401_s30, 16  ;;  %s10171_s10 = smov [#allocation7]  }
  0x76   : > { %p10048_p13 = scmp.ne.s32.totalorder %s401_s30, %s10047_s19  ;;  %s10052_s28 = sshll.u32 %s10171_s10, 4  ;;  %s10053_s28 = int_to_ptr.vmem [resolvable:$false] %s10052_s28 }
  0x77   : > { %s10054_s29 = scalar_lea.vmem %s10053_s28, 32  ;;  %p10055_p7 = scmp.lt.s32.totalorder %s401_s30, %s10053_s28 }
  0x78   : > { %p10050_p0 = pnand %p10048_p13, %p10298_p10  ;;  %p10056_p2 = scmp.lt.s32.totalorder %s10054_s29, %s10047_s19 }
  0x7a   : > { %p10051_p1 = pneg %p10050_p0  ;;  %p10057_p3 = por %p10056_p2, %p10055_p7 }
  0x7c   : > { %p10058_p4 = pnand %p10057_p3, %p10051_p1 }
  0x7e   : > { %10061 = shalt.err (!%p10058_p4)
}
  0x7f   : > { %9341 = dma.hbm_to_vmem [thread:$0]  (!%p10276_p8), %s10372_s11, 16, %s401_s30, %s10292_s13  }
  0x80   : > { %s8143_s6 = sshll.u32 %s10164_s16, 9  ;;  %s435_s27 = scalar_lea.vmem [#allocation10], %s7915_s3 }
  0x81   : > { %s442_s15 = sshll.u32 %s435_s27, 4  ;;  %s10414_s8 = scalar_lea.hbm %s11822_s7, %s8143_s6  ;;  %s443_s15 = int_to_ptr.vmem [resolvable:$true] %s442_s15 }
  0x82   : > { %s10062_s26 = scalar_lea.hbm %s10414_s8, 512  ;;  %s10067_s13 = scalar_lea.hbm %s11822_s7, 1024 }
  0x83   : > { %p10063_p5 = scmp.ne.s32.totalorder %s10414_s8, %s10062_s26  ;;  %p10068_p11 = scmp.lt.s32.totalorder %s10414_s8, %s11822_s7 }
  0x84   : > { %p10069_p12 = scmp.lt.s32.totalorder %s10067_s13, %s10062_s26 }
  0x85   : > { %p10065_p6 = pnand %p10063_p5, %p10298_p10 }
  0x86   : > { %p10070_p13 = por %p10069_p12, %p10068_p11 }
  0x87   : > { %p10066_p9 = pneg %p10065_p6 }
  0x89   : > { %p10071_p0 = pnand %p10070_p13, %p10066_p9 }
  0x8b   : > { %10074 = shalt.err (!%p10071_p0)
}
  0x8c   : > { %s10075_s3 = scalar_lea.vmem %s443_s15, 512  ;;  %s10172_s28 = smov [#allocation10]  }
  0x8d   : > { %p10076_p1 = scmp.ne.s32.totalorder %s443_s15, %s10075_s3  ;;  %s10080_s29 = sshll.u32 %s10172_s28, 4  ;;  %s10081_s29 = int_to_ptr.vmem [resolvable:$false] %s10080_s29 }
  0x8e   : > { %s10082_s6 = scalar_lea.vmem %s10081_s29, 1024  ;;  %p10083_p3 = scmp.lt.s32.totalorder %s443_s15, %s10081_s29 }
  0x8f   : > { %p10078_p7 = pnand %p10076_p1, %p10298_p10  ;;  %p10084_p4 = scmp.lt.s32.totalorder %s10082_s6, %s10075_s3 }
  0x91   : > { %p10079_p2 = pneg %p10078_p7  ;;  %p10085_p5 = por %p10084_p4, %p10083_p3 }
  0x93   : > { %p10086_p6 = pnand %p10085_p5, %p10079_p2 }
  0x95   : > { %10089 = shalt.err (!%p10086_p6)
}
  0x96   : > { %s11847_s27 = smov 8   ;;  %s11848_s18 = smov 128  }
  0x97   : > { %9347 = dma.hbm_to_vmem [thread:$0]  (!%p10276_p8), %s10414_s8, 512, %s443_s15, %s10342_s12, %s11848_s18, %s11848_s18, %s11847_s27  }
  0x98   : > { %s7918_s21 = sshll.u32 %s10274_s23, 2  ;;  %s8144_s26 = sshll.u32 %s10164_s16, 6 }
  0x99   : > { %s10441_s13 = scalar_lea.hbm %s11824_s9, %s8144_s26  ;;  %s464_s11 = scalar_lea.vmem [#allocation11], %s7918_s21 }
  0x9a   : > { %s471_s30 = sshll.u32 %s464_s11, 4  ;;  %s461_s3 = scalar_lea.sflag [#allocation12], %s10274_s23  ;;  %s10443_s30 = int_to_ptr.vmem [resolvable:$true] %s471_s30 }
  0x9b   : > { %s10090_s28 = scalar_lea.hbm %s10441_s13, 64  ;;  %s10095_s15 = scalar_lea.hbm %s11824_s9, 128 }
  0x9c   : > { %p10091_p9 = scmp.ne.s32.totalorder %s10441_s13, %s10090_s28  ;;  %p10096_p13 = scmp.lt.s32.totalorder %s10441_s13, %s11824_s9 }
  0x9d   : > { %p10097_p0 = scmp.lt.s32.totalorder %s10095_s15, %s10090_s28 }
  0x9e   : > { %p10093_p11 = pnand %p10091_p9, %p10298_p10 }
  0x9f   : > { %p10098_p1 = por %p10097_p0, %p10096_p13 }
  0xa0   : > { %p10094_p12 = pneg %p10093_p11 }
  0xa2   : > { %p10099_p7 = pnand %p10098_p1, %p10094_p12 }
  0xa4   : > { %10102 = shalt.err (!%p10099_p7)
}
  0xa5   : > { %s10103_s6 = scalar_lea.vmem %s10443_s30, 64  ;;  %s10173_s27 = smov [#allocation11]  }
  0xa6   : > { %p10104_p2 = scmp.ne.s32.totalorder %s10443_s30, %s10103_s6  ;;  %s10108_s18 = sshll.u32 %s10173_s27, 4  ;;  %s10109_s18 = int_to_ptr.vmem [resolvable:$false] %s10108_s18 }
  0xa7   : > { %s10110_s21 = scalar_lea.vmem %s10109_s18, 128  ;;  %p10111_p5 = scmp.lt.s32.totalorder %s10443_s30, %s10109_s18 }
  0xa8   : > { %p10106_p3 = pnand %p10104_p2, %p10298_p10  ;;  %p10112_p6 = scmp.lt.s32.totalorder %s10110_s21, %s10103_s6 }
  0xaa   : > { %p10107_p4 = pneg %p10106_p3  ;;  %p10113_p9 = por %p10112_p6, %p10111_p5 }
  0xac   : > { %p10114_p11 = pnand %p10113_p9, %p10107_p4 }
  0xae   : > { %10117 = shalt.err (!%p10114_p11)
}
  0xaf   : > { %s10174_s26 = smov 16   ;;  %s10175_s19 = smov 1  }
  0xb0   : > { %9350 = dma.hbm_to_vmem [thread:$0]  (!%p10276_p8), %s10441_s13, 64, %s10443_s30, %s461_s3, %s10174_s26, %s10174_s26, %s10175_s19  }
  0xb1   : > { %p11849_p10 = scmp.ne.s32.totalorder %s11844_s25, 0 }
  0xb2   : > { %s10471_s20 = sand.u32 (!%p11849_p10), 1, %s10156_s14   ;;  %p11850_p12 = scmp.ne.s32.totalorder (!%p11849_p10), %s11840_s22, 0 }
  0xb3   : > { %483 = sbr.rel (%p11849_p10) target bundleno = 4728 (0x1278), region = 60  ;;  %s486_s10 = scalar_lea.sflag (!%p11849_p10), [#allocation4], %s10471_s20 }
  0xb4   : > { %s488_s11 = scalar_lea.vmem (!%p11849_p10), [#allocation3], %s10471_s20 }
  0xb8   : > { %10135 = dma.done.wait (%p11850_p12), %s486_s10, 16  }
  0xb9   : > { %10137 = vsyncadd (%p11850_p12), %s486_s10, 4294967280  ;;  %s493_s23 = sand.u32 1, %s10252_s17   ;;  %s9317_s24 = smul.u32 24, %s10471_s20 }
  0xba   : > { %s494_s25 = scalar_lea.sflag [#allocation6], %s493_s23 }
  0xbb   : > { %s10481_s13 = scalar_lea.vmem [#allocation5], %s9317_s24 }
  0xbc   : > { %10139 = dma.done.wait (%p11850_p12), %s494_s25, 400  }
  0xbd   : > { %10141 = vsyncadd (%p11850_p12), %s494_s25, 4294966896  ;;  %s505_s30 = scalar_lea.vmem [#allocation7], %s10471_s20  ;;  %s511_s3 = scalar_lea.sflag [#allocation9], %s493_s23 }
  0xbe   : > { %s513_s28 = scalar_lea.vmem [#allocation8], %s10471_s20 }
  0xbf   : > { %10143 = dma.done.wait (%p11850_p12), %s511_s3, 528  }
  0xc0   : > { %10145 = vsyncadd (%p11850_p12), %s511_s3, 4294966768  ;;  %s7922_s12 = sshll.u32 %s10471_s20, 5  ;;  %s7923_s16 = sshll.u32 %s10471_s20, 2 }
  0xc1   : > { %s10495_s15 = scalar_lea.vmem [#allocation10], %s7922_s12  ;;  %s528_s8 = scalar_lea.sflag [#allocation12], %s10471_s20 }
  0xc2   : > { %s10498_s29 = scalar_lea.vmem [#allocation11], %s7923_s16 }
  0xc3   : > { %10147 = dma.done.wait (%p11850_p12), %s528_s8, 64  }
  0xc4   : > { %10149 = vsyncadd (%p11850_p12), %s528_s8, 4294967232  ;;  %p608_p8 = scmp.lt.s32.totalorder %s10252_s17, 1  ;;  %vm688_vm0 = vcmask 1043456   ;;  %vm649_vm1 = vcmask 1046528   ;;  %vm679_vm2 = vcmask 31744   ;;  %vm660_vm3 = vcmask 1045504  }
  0xc5   : > { %vm1076_vm4 = vcmask 64512   ;;  %vm1079_vm5 = vcmask 58368   ;;  %v10176_v30 = vmov 0.0   ;;  %v641_v31 = vld [vmem:[%s10481_s13 + $0x8] sm:$0xff]  ;;  %v640_v32 = vld [vmem:[%s10481_s13] sm:$0xff]  ;;  %v642_v33 = vld [vmem:[%s10481_s13 + $0x10] sm:$0xff] }
  0xc6   : > { %s11859_s17 = smov (!%p608_p8, %s10252_s17), 1  ;;  %1078 = vst.msk [vmem:[#allocation2 + $0x8] sm:$0xff] %vm1076_vm4, %v10176_v30  ;;  %1077 = vst.msk [vmem:[#allocation2] sm:$0xff] %vm1076_vm4, %v10176_v30  ;;  %v7951_v47 = vld [vmem:[%s488_s11] ss:$0 sm:$0xff]  ;;  %vm10177_vm6 = vmmov 0  }
  0xc7   : > { %s7926_s6 = sshll.u32 %s11859_s17, 2  ;;  %s9318_s26 = smul.u32 48, %s11859_s17  ;;  %1080 = vst.msk [vmem:[#allocation2 + $0x10] sm:$0x3] %vm1079_vm5, %v10176_v30  ;;  %1083 = vst.msk [vmem:[#allocation2 + $0x28] sm:$0x3] %vm1079_vm5, %v10176_v30 }
  0xc8   : > { %s621_s21 = scalar_lea.vmem %s11820_s5, %s7926_s6  ;;  %s9319_s19 = smul.u32 12, %s11859_s17  ;;  %1081 = vst.msk [vmem:[#allocation2 + $0x18] sm:$0xff] %vm1076_vm4, %v10176_v30  ;;  %1082 = vst.msk [vmem:[#allocation2 + $0x20] sm:$0xff] %vm1076_vm4, %v10176_v30  ;;  %vm2169_vm7 = vcmask 1041409   ;;  %vm1810_vm8 = vcmask 261120   ;;  %vm7691_vm9 = vcmask 261127  }
  0xc9   : > { %v671_v0 = vld [vmem:[%s621_s21] sm:$0xf]  ;;  %s612_s23 = scalar_lea.vmem %s11815_s0, %s9318_s26  ;;  %s8145_s20 = sshll.u32 %s11859_s17, 7  ;;  %vm7693_vm10 = vcmask 253952  }
  0xca   : > { %9313 = vmatprep.subr.msk.mxu1 %vm688_vm0, %v671_v0  ;;  %8521 = vmatprep.subr.msk.mxu0 %vm688_vm0, %v671_v0  ;;  %v631_v1 = vld [vmem:[%s612_s23] sm:$0xff]  ;;  %v632_v2 = vld [vmem:[%s612_s23 + $0x8] sm:$0xff]  ;;  %v634_v3 = vld [vmem:[%s612_s23 + $0x18] sm:$0xff]  ;;  %s617_s3 = scalar_lea.vmem %s11816_s1, %s9319_s19  ;;  %s7929_s12 = sshll.u32 %s11859_s17, 1 }
  0xcb   : > { %9314 = vmatpush3.msk.msra.mxu1 %vm688_vm0, %v671_v0  ;;  %8522 = vmatpush3.msk.msra.mxu0 %vm688_vm0, %v671_v0  ;;  %v650_v4 = vrot.slane %v631_v1, 1  ;;  %v651_v5 = vrot.slane %v632_v2, 1  ;;  %v635_v6 = vld [vmem:[%s612_s23 + $0x20] sm:$0xff]  ;;  %v655_v7 = vrot.slane %v634_v3, 1  ;;  %v633_v10 = vld [vmem:[%s612_s23 + $0x10] sm:$0x3] }
  0xcc   : > { %v638_v8 = vld [vmem:[%s617_s3 + $0x4] sm:$0xf]  ;;  %v656_v9 = vrot.slane %v635_v6, 1  ;;  %v636_v11 = vld [vmem:[%s612_s23 + $0x28] sm:$0x3]  ;;  %v653_v13 = vrot.slane %v633_v10, 1 }
  0xcd   : > { %8529 = vmatprep.subr.msk.mxu1 %vm688_vm0, %v638_v8  ;;  %v652_v12 = vsel %vm649_vm1, %v650_v4, %v651_v5  ;;  %v658_v14 = vrot.slane %v636_v11, 1  ;;  %v637_v15 = vld [vmem:[%s617_s3] sm:$0xf]  ;;  %v639_v19 = vld [vmem:[%s617_s3 + $0x8] sm:$0xf]  ;;  %v661_v20 = vrot.slane %v631_v1, 2 }
  0xce   : > { %8523 = vmatprep.mubr.msk.f32.mxu0 %vm679_vm2, %v652_v12  ;;  %v657_v16 = vsel %vm649_vm1, %v655_v7, %v656_v9  ;;  %8537 = vmatprep.subr.msk.mxu0 %vm688_vm0, %v637_v15  ;;  %v654_v17 = vsel %vm649_vm1, %v651_v5, %v653_v13  ;;  %v662_v21 = vrot.slane %v632_v2, 2  ;;  %v664_v22 = vrot.slane %v633_v10, 2  ;;  %v1412_v13 = vld [vmem:[%s10495_s15 + $0x10] sm:$0xff]  ;;  %s11852_s8 = sld [smem:[#allocation23_spill]] }
  0xcf   : > { %8526 = vmatprep.mubr.msk.f32.mxu1 %vm679_vm2, %v657_v16  ;;  %v659_v18 = vsel %vm649_vm1, %v656_v9, %v658_v14  ;;  %8524 = vmatmul.mubr.msk.f32.vlgmr.msra.gmra.mxu0 %vm679_vm2, %v654_v17  ;;  %v666_v24 = vrot.slane %v634_v3, 2  ;;  %v667_v25 = vrot.slane %v635_v6, 2  ;;  %v669_v27 = vrot.slane %v636_v11, 2  ;;  %v1410_v11 = vld [vmem:[%s10495_s15] sm:$0xff]  ;;  %v1413_v14 = vld [vmem:[%s10495_s15 + $0x18] sm:$0xff] }
  0xd0   : > { %8527 = vmatmul.mubr.msk.f32.vlgmr.msra.gmra.mxu1 %vm679_vm2, %v659_v18  ;;  %8538 = vmatpush3.msk.msra.mxu0 %vm688_vm0, %v637_v15  ;;  %v663_v23 = vsel %vm660_vm3, %v661_v20, %v662_v21  ;;  %v665_v26 = vsel %vm660_vm3, %v662_v21, %v664_v22  ;;  %v7964_v22 = vld [vmem:[%s505_s30] ss:$0 sm:$0xff]  ;;  %s11851_s30 = sld [smem:[#allocation22_spill]] }
  0xd1   : > { %8530 = vmatpush3.msk.msra.mxu1 %vm688_vm0, %v638_v8  ;;  %8531 = vmatprep.mubr.msk.f32.mxu1 %vm679_vm2, %v652_v12  ;;  %v668_v28 = vsel %vm660_vm3, %v666_v24, %v667_v25  ;;  %v670_v29 = vsel %vm660_vm3, %v667_v25, %v669_v27  ;;  %v1411_v12 = vld [vmem:[%s10495_s15 + $0x8] sm:$0xff] }
  0xd2   : > { %8539 = vmatprep.mubr.msk.f32.mxu0 %vm679_vm2, %v631_v1  ;;  %8545 = vmatprep.subr.msk.mxu1 %vm688_vm0, %v639_v19 }
  0xd3   : > { %8540 = vmatmul.mubr.msk.f32.vlgmr.msra.gmra.mxu0 %vm679_vm2, %v632_v2  ;;  %8553 = vmatprep.subr.mxu0 %v641_v31 }
  0xd4   : > { %8532 = vmatmul.mubr.msk.f32.vlgmr.msra.gmra.mxu1 %vm679_vm2, %v654_v17  ;;  %8542 = vmatprep.mubr.msk.f32.mxu0 %vm679_vm2, %v634_v3 }
  0xd5   : > { %8546 = vmatpush3.msk.msra.mxu1 %vm688_vm0, %v639_v19  ;;  %8534 = vmatprep.mubr.msk.f32.mxu1 %vm679_vm2, %v657_v16 }
  0xd6   : > { %8554 = vmatpush3.msra.mxu0 %v641_v31  ;;  %8561 = vmatprep.subr.mxu1 %v640_v32 }
  0xd7   : > { %8543 = vmatmul.mubr.msk.f32.gmra.mxu0 %vm679_vm2, %v635_v6  ;;  %8569 = vmatprep.subr.mxu0 %v642_v33 }
  0xd8   : > { %8535 = vmatmul.mubr.msk.f32.gmra.mxu1 %vm679_vm2, %v659_v18 }
  0xd9   : > { %8547 = vmatprep.mubr.msk.f32.mxu1 %vm679_vm2, %v663_v23 }
  0xdc   : > { %8548 = vmatmul.mubr.msk.f32.vlgmr.msra.gmra.mxu1 %vm679_vm2, %v665_v26 }
  0xdd   : > { %8550 = vmatprep.mubr.msk.f32.mxu1 %vm679_vm2, %v668_v28  ;;  %8562 = vmatpush3.msra.mxu1 %v640_v32 }
  0xde   : > { %8577 = vmatprep.subr.mxu1 %v1410_v11 }
  0xe0   : > { %8551 = vmatmul.mubr.msk.f32.gmra.mxu1 %vm679_vm2, %v670_v29  ;;  %v7930_v29 = vld [vmem:[%s513_s28] ss:$0 sm:$0xff]  ;;  %s10615_s28 = scalar_lea.vmem %s11851_s30, %s8145_s20 }
 0x18f   : > { %v10567_v34 = vpop.f32.mrf.mxu0 }
 0x190   : > { %v10569_v35 = vpop.f32.mrf.mxu1 }
 0x191   : > { %v10571_v36 = vpop.f32.mrf.mxu0 }
 0x192   : > { %v10573_v37 = vpop.f32.mrf.mxu1 }
 0x193   : > { %v8541_v39 = vpop.f32.mrf.mxu0 }
 0x194   : > { %v8533_v38 = vpop.f32.mrf.mxu1 }
 0x195   : > { %v942_v41 = vpop.f32.mrf.mxu0  ;;  %v948_v45 = vadd.f32 %v8541_v39, %v8533_v38  ;;  %v764_v38 = vadd.f32 %v10567_v34, %v7930_v29 }
 0x196   : > { %v846_v40 = vpop.f32.mrf.mxu1 }
 0x197   : > { %v8544_v43 = vpop.f32.mrf.mxu0  ;;  %v943_v48 = vadd.f32 %v942_v41, %v846_v40  ;;  %v759_v40 = vadd.f32 %v7930_v29, %v10571_v36 }
 0x198   : > { %v8536_v42 = vpop.f32.mrf.mxu1 }
 0x199   : > { %v952_v50 = vpop.f32.mrf.mxu0  ;;  %v958_v52 = vadd.f32 %v8544_v43, %v8536_v42 }
 0x19a   : > { %v856_v44 = vpop.f32.mrf.mxu1 }
 0x19b   : > { %v953_v56 = vadd.f32 %v952_v50, %v856_v44  ;;  %v769_v50 = vadd.f32 %v7930_v29, %v10573_v37  ;;  %v10624_v37 = vld [vmem:[%s10615_s28 + $0x18] sm:$0xff] }
 0x19c   : > { %v8549_v46 = vpop.f32.mrf.mxu1 }
 0x19d   : > { %v1058_v49 = vadd.f32 %v8549_v46, %v948_v45 }
 0x19e   : > { %v1038_v51 = vpop.f32.mrf.mxu1 }
 0x19f   : > { %v1069_v53 = vadd.f32 %v7951_v47, %v1058_v49  ;;  %v1057_v54 = vadd.f32 %v1038_v51, %v943_v48  ;;  %v774_v49 = vadd.f32 %v10569_v35, %v7930_v29 }
 0x1a0   : > { %v8552_v55 = vpop.f32.mrf.mxu1 }
 0x1a1   : > { %v1073_v57 = vmax.f32 %v1069_v53, 0.0  ;;  %v1068_v58 = vadd.f32 %v7951_v47, %v1057_v54  ;;  %v1060_v59 = vadd.f32 %v8552_v55, %v958_v52  ;;  %v10627_v55 = vld [vmem:[%s10615_s28 + $0x38] sm:$0xff] }
 0x1a2   : > { %v1048_v60 = vpop.f32.mrf.mxu1 }
 0x1a3   : > { %1085 = vst.msk [vmem:[#allocation2 + $0x9] sm:$0xff] %vm1076_vm4, %v1073_v57  ;;  %v1072_v61 = vmax.f32 %v1068_v58, 0.0  ;;  %v1071_v62 = vadd.f32 %v7951_v47, %v1060_v59  ;;  %v1059_v63 = vadd.f32 %v1048_v60, %v953_v56  ;;  %v10634_v56 = vld [vmem:[%s10615_s28 + $0x10] sm:$0xff]  ;;  %v10646_v58 = vld [vmem:[%s10615_s28 + $0x8] sm:$0xff]  ;;  %v10656_v60 = vld [vmem:[%s10615_s28] sm:$0xff] }
 0x1a4   : > { %v10649_v59 = vld [vmem:[%s10615_s28 + $0x28] sm:$0xff] }
 0x1a5   : > { %1084 = vst.msk [vmem:[#allocation2 + $0x1] sm:$0xff] %vm1076_vm4, %v1072_v61  ;;  %v1075_v0 = vmax.f32 %v1071_v62, 0.0  ;;  %v1070_v1 = vadd.f32 %v7951_v47, %v1059_v63  ;;  %8555 = vmatprep.mubr.msk.f32.mxu0 %vm1076_vm4, %v1072_v61  ;;  %v10659_v61 = vld [vmem:[%s10615_s28 + $0x20] sm:$0xff]  ;;  %v10672_v62 = vld [vmem:[%s10615_s28 + $0x58] sm:$0xff] }
 0x1a6   : > { %8556 = vmatmul.mubr.msk.f32.vlgmr.msra.gmra.mxu0 %vm1076_vm4, %v1073_v57  ;;  %v10637_v57 = vld [vmem:[%s10615_s28 + $0x30] sm:$0xff]  ;;  %v10675_v63 = vld [vmem:[%s10615_s28 + $0x78] sm:$0xff] }
 0x1a7   : > { %1087 = vst.msk [vmem:[#allocation2 + $0x21] sm:$0xff] %vm1076_vm4, %v1075_v0  ;;  %v1074_v2 = vmax.f32 %v1070_v1, 0.0  ;;  %8570 = vmatpush3.msra.mxu0 %v642_v33  ;;  %v10685_v1 = vld [vmem:[%s10615_s28 + $0x70] sm:$0xff] }
 0x1a8   : > { %8585 = vmatprep.subr.mxu0 %v1411_v12 }
 0x1a9   : > { %1086 = vst.msk [vmem:[#allocation2 + $0x19] sm:$0xff] %vm1076_vm4, %v1074_v2  ;;  %8558 = vmatprep.mubr.msk.f32.mxu0 %vm1076_vm4, %v1074_v2  ;;  %v10692_v2 = vld [vmem:[%s10615_s28 + $0x48] sm:$0xff] }
 0x1aa   : > { %8559 = vmatmul.mubr.msk.f32.gmra.mxu0 %vm1076_vm4, %v1075_v0  ;;  %v1093_v6 = vld [vmem:[#allocation2 + $0xa] sm:$0xff] }
 0x1ab   : > { %v10682_v0 = vld [vmem:[%s10615_s28 + $0x50] sm:$0xff] }
 0x1ac   : > { %v1088_v3 = vld [vmem:[#allocation2] sm:$0xff]  ;;  %v1089_v5 = vld [vmem:[#allocation2 + $0x8] sm:$0xff] }
 0x1ad   : > { %v1092_v4 = vld [vmem:[#allocation2 + $0x2] sm:$0xff]  ;;  %8563 = vmatprep.mubr.msk.f32.mxu1 %vm1076_vm4, %v1088_v3 }
 0x1ae   : > { %8571 = vmatprep.mubr.msk.f32.mxu0 %vm1076_vm4, %v1092_v4  ;;  %8564 = vmatmul.mubr.msk.f32.vlgmr.msra.gmra.mxu1 %vm1076_vm4, %v1089_v5  ;;  %v1095_v10 = vld [vmem:[#allocation2 + $0x22] sm:$0xff] }
 0x1af   : > { %8572 = vmatmul.mubr.msk.f32.vlgmr.msra.gmra.mxu0 %vm1076_vm4, %v1093_v6  ;;  %8578 = vmatpush3.msra.mxu1 %v1410_v11  ;;  %v10695_v3 = vld [vmem:[%s10615_s28 + $0x68] sm:$0xff]  ;;  %v10702_v4 = vld [vmem:[%s10615_s28 + $0x40] sm:$0xff] }
 0x1b0   : > { %v1090_v7 = vld [vmem:[#allocation2 + $0x18] sm:$0xff]  ;;  %v1091_v9 = vld [vmem:[#allocation2 + $0x20] sm:$0xff]  ;;  %8586 = vmatpush3.msra.mxu0 %v1411_v12  ;;  %8593 = vmatprep.subr.mxu1 %v1412_v13 }
 0x1b1   : > { %v1094_v8 = vld [vmem:[#allocation2 + $0x1a] sm:$0xff]  ;;  %8566 = vmatprep.mubr.msk.f32.mxu1 %vm1076_vm4, %v1090_v7  ;;  %8601 = vmatprep.subr.mxu0 %v1413_v14  ;;  %v7965_v6 = vld [vmem:[%s10498_s29] ss:$0 sm:$0xff]  ;;  %v7970_v7 = vld [vmem:[%s10498_s29 + $0x1] ss:$0 sm:$0xff] }
 0x1b2   : > { %8574 = vmatprep.mubr.msk.f32.mxu0 %vm1076_vm4, %v1094_v8  ;;  %8567 = vmatmul.mubr.msk.f32.gmra.mxu1 %vm1076_vm4, %v1091_v9  ;;  %v10707_v5 = vld [vmem:[%s10615_s28 + $0x60] sm:$0xff] }
 0x1b3   : > { %8575 = vmatmul.mubr.msk.f32.gmra.mxu0 %vm1076_vm4, %v1095_v10 }
 0x266   : > { %v8557_v15 = vpop.f32.mrf.mxu0 }
 0x268   : > { %v1174_v16 = vpop.f32.mrf.mxu0 }
 0x26a   : > { %v8560_v17 = vpop.f32.mrf.mxu0 }
 0x26c   : > { %v1184_v18 = vpop.f32.mrf.mxu0 }
 0x26e   : > { %v8565_v19 = vpop.f32.mrf.mxu1 }
 0x26f   : > { %v8573_v20 = vpop.f32.mrf.mxu0  ;;  %v1277_v21 = vadd.f32 %v8565_v19, %v8557_v15 }
 0x270   : > { %v1271_v23 = vpop.f32.mrf.mxu1 }
 0x271   : > { %v1368_v24 = vpop.f32.mrf.mxu0  ;;  %v1388_v25 = vadd.f32 %v8573_v20, %v1277_v21  ;;  %v1272_v26 = vadd.f32 %v1271_v23, %v1174_v16  ;;  %v7975_v20 = vld [vmem:[%s10498_s29 + $0x2] ss:$0 sm:$0xff]  ;;  %v7980_v21 = vld [vmem:[%s10498_s29 + $0x3] ss:$0 sm:$0xff]  ;;  %s630_s29 = scalar_lea.vmem %s11852_s8, %s7929_s12 }
 0x272   : > { %v8568_v27 = vpop.f32.mrf.mxu1 }
 0x273   : > { %v8576_v28 = vpop.f32.mrf.mxu0  ;;  %v1399_v31 = vadd.f32 %v7964_v22, %v1388_v25  ;;  %v1387_v32 = vadd.f32 %v1368_v24, %v1272_v26  ;;  %v1287_v33 = vadd.f32 %v8568_v27, %v8560_v17 }
 0x274   : > { %v1281_v39 = vpop.f32.mrf.mxu1 }
 0x275   : > { %v1398_v41 = vadd.f32 %v7964_v22, %v1387_v32  ;;  %v1390_v42 = vadd.f32 %v8576_v28, %v1287_v33  ;;  %v1282_v43 = vadd.f32 %v1281_v39, %v1184_v18  ;;  %v1403_v44 = vadd.f32 %v1399_v31, %v764_v38  ;;  %v1378_v45 = vpop.f32.mrf.mxu0 }
 0x277   : > { %v1402_v46 = vadd.f32 %v1398_v41, %v759_v40  ;;  %v1401_v47 = vadd.f32 %v7964_v22, %v1390_v42  ;;  %v1389_v48 = vadd.f32 %v1378_v45, %v1282_v43  ;;  %v1407_v53 = vmax.f32 %v1403_v44, 0.0 }
 0x279   : > { %v1406_v51 = vmax.f32 %v1402_v46, 0.0  ;;  %v1400_v52 = vadd.f32 %v7964_v22, %v1389_v48  ;;  %v1405_v34 = vadd.f32 %v1401_v47, %v774_v49 }
 0x27b   : > { %v1404_v54 = vadd.f32 %v1400_v52, %v769_v50  ;;  %8579 = vmatprep.mubr.msk.f32.mxu1 %vm1076_vm4, %v1406_v51  ;;  %8587 = vmatprep.mubr.msk.f32.mxu0 %vm1076_vm4, %v1406_v51  ;;  %v1409_v35 = vmax.f32 %v1405_v34, 0.0 }
 0x27c   : > { %8580 = vmatmul.mubr.msk.f32.vlgmr.msra.gmra.mxu1 %vm1076_vm4, %v1407_v53  ;;  %8588 = vmatmul.mubr.msk.f32.vlgmr.msra.gmra.mxu0 %vm1076_vm4, %v1407_v53 }
 0x27d   : > { %v1408_v36 = vmax.f32 %v1404_v54, 0.0  ;;  %8594 = vmatpush3.msra.mxu1 %v1412_v13  ;;  %8602 = vmatpush3.msra.mxu0 %v1413_v14 }
 0x27e   : > { %8609 = vmatprep.subr.mxu1 %v10176_v30  ;;  %8620 = vmatprep.subr.mxu0 %v10176_v30 }
 0x27f   : > { %8582 = vmatprep.mubr.msk.f32.mxu1 %vm1076_vm4, %v1408_v36  ;;  %8590 = vmatprep.mubr.msk.f32.mxu0 %vm1076_vm4, %v1408_v36 }
 0x280   : > { %8583 = vmatmul.mubr.msk.f32.gmra.mxu1 %vm1076_vm4, %v1409_v35  ;;  %8591 = vmatmul.mubr.msk.f32.gmra.mxu0 %vm1076_vm4, %v1409_v35 }
 0x281   : > { %8595 = vmatprep.mubr.msk.f32.mxu1 %vm1076_vm4, %v1406_v51  ;;  %8603 = vmatprep.mubr.msk.f32.mxu0 %vm1076_vm4, %v1406_v51 }
 0x284   : > { %8596 = vmatmul.mubr.msk.f32.vlgmr.msra.gmra.mxu1 %vm1076_vm4, %v1407_v53  ;;  %8604 = vmatmul.mubr.msk.f32.vlgmr.msra.gmra.mxu0 %vm1076_vm4, %v1407_v53 }
 0x285   : > { %8610 = vmatpush3.msra.mxu1 %v10624_v37  ;;  %8621 = vmatpush3.msra.mxu0 %v10627_v55 }
 0x286   : > { %8598 = vmatprep.mubr.msk.f32.mxu1 %vm1076_vm4, %v1408_v36  ;;  %8606 = vmatprep.mubr.msk.f32.mxu0 %vm1076_vm4, %v1408_v36 }
 0x287   : > { %8611 = vmatprep.subr.mxu1 %v10176_v30  ;;  %8622 = vmatprep.subr.mxu0 %v10176_v30 }
 0x288   : > { %8612 = vmatpush3.msra.mxu1 %v10634_v56  ;;  %8623 = vmatpush3.msra.mxu0 %v10637_v57 }
 0x289   : > { %8613 = vmatprep.subr.mxu1 %v10176_v30  ;;  %8624 = vmatprep.subr.mxu0 %v10176_v30 }
 0x28a   : > { %8599 = vmatmul.mubr.msk.f32.gmra.mxu1 %vm1076_vm4, %v1409_v35  ;;  %8607 = vmatmul.mubr.msk.f32.gmra.mxu0 %vm1076_vm4, %v1409_v35 }
 0x28b   : > { %8614 = vmatpush3.msra.mxu1 %v10646_v58  ;;  %8625 = vmatpush3.msra.mxu0 %v10649_v59 }
 0x28c   : > { %8615 = vmatprep.subr.mxu1 %v10176_v30  ;;  %8626 = vmatprep.subr.mxu0 %v10176_v30 }
 0x28d   : > { %8616 = vmatpush3.msra.mxu1 %v10656_v60  ;;  %8627 = vmatpush3.msra.mxu0 %v10659_v61 }
 0x28e   : > { %8617 = vmatprep.mubr.msk.f32.mxu1 %vm10177_vm6, %v10176_v30  ;;  %8628 = vmatprep.mubr.msk.f32.mxu0 %vm10177_vm6, %v10176_v30 }
 0x28f   : > { %8631 = vmatprep.subr.mxu1 %v10176_v30  ;;  %8642 = vmatprep.subr.mxu0 %v10176_v30 }
 0x290   : > { %8618 = vmatmul.mubr.f32.vlgmr.msra.gmra.mxu1 %v10176_v30  ;;  %8629 = vmatmul.mubr.f32.vlgmr.msra.gmra.mxu0 %v10176_v30 }
 0x291   : > { %8632 = vmatpush3.msra.mxu1 %v10672_v62  ;;  %8643 = vmatpush3.msra.mxu0 %v10675_v63 }
 0x292   : > { %8633 = vmatprep.subr.mxu1 %v10176_v30  ;;  %8644 = vmatprep.subr.mxu0 %v10176_v30 }
 0x293   : > { %8634 = vmatpush3.msra.mxu1 %v10682_v0  ;;  %8645 = vmatpush3.msra.mxu0 %v10685_v1 }
 0x294   : > { %8635 = vmatprep.subr.mxu1 %v10176_v30  ;;  %8646 = vmatprep.subr.mxu0 %v10176_v30 }
 0x295   : > { %8636 = vmatpush3.msra.mxu1 %v10692_v2  ;;  %8647 = vmatpush3.msra.mxu0 %v10695_v3 }
 0x296   : > { %8637 = vmatprep.subr.mxu1 %v10176_v30  ;;  %8648 = vmatprep.subr.mxu0 %v10176_v30 }
 0x297   : > { %8638 = vmatpush3.msra.mxu1 %v10702_v4  ;;  %8639 = vmatprep.mubr.msk.f32.mxu1 %vm10177_vm6, %v10176_v30 }
 0x298   : > { %8649 = vmatpush3.msra.mxu0 %v10707_v5  ;;  %8650 = vmatprep.mubr.msk.f32.mxu0 %vm10177_vm6, %v10176_v30 }
 0x299   : > { %8640 = vmatmul.mubr.f32.vlgmr.msra.gmra.mxu1 %v10176_v30  ;;  %8651 = vmatmul.mubr.f32.vlgmr.msra.gmra.mxu0 %v10176_v30 }
 0x29a   : > { %8653 = vmatprep.subr.mxu1 %v10176_v30  ;;  %8664 = vmatprep.subr.mxu0 %v10176_v30 }
 0x29b   : > { %8654 = vmatpush3.msra.mxu1 %v10624_v37  ;;  %8665 = vmatpush3.msra.mxu0 %v10627_v55 }
 0x29c   : > { %8655 = vmatprep.subr.mxu1 %v10176_v30  ;;  %8666 = vmatprep.subr.mxu0 %v10176_v30 }
 0x29d   : > { %8656 = vmatpush3.msra.mxu1 %v10634_v56  ;;  %8667 = vmatpush3.msra.mxu0 %v10637_v57 }
 0x29e   : > { %8657 = vmatprep.subr.mxu1 %v10176_v30  ;;  %8668 = vmatprep.subr.mxu0 %v10176_v30 }
 0x29f   : > { %8658 = vmatpush3.msra.mxu1 %v10646_v58  ;;  %8669 = vmatpush3.msra.mxu0 %v10649_v59 }
 0x2a0   : > { %8659 = vmatprep.subr.mxu1 %v10176_v30  ;;  %8670 = vmatprep.subr.mxu0 %v10176_v30 }
 0x2a1   : > { %8660 = vmatpush3.msra.mxu1 %v10656_v60  ;;  %8671 = vmatpush3.msra.mxu0 %v10659_v61 }
 0x2a2   : > { %8661 = vmatprep.mubr.msk.f32.mxu1 %vm10177_vm6, %v10176_v30  ;;  %8672 = vmatprep.mubr.msk.f32.mxu0 %vm10177_vm6, %v10176_v30 }
 0x2a3   : > { %8675 = vmatprep.subr.mxu1 %v10176_v30  ;;  %8686 = vmatprep.subr.mxu0 %v10176_v30 }
 0x33c   : > { %v8581_v8 = vpop.f32.mrf.mxu1  ;;  %v8589_v9 = vpop.f32.mrf.mxu0 }
 0x33d   : > { %v10743_v10 = vadd.f32 %v8581_v8, %v7965_v6  ;;  %v10745_v11 = vadd.f32 %v8589_v9, %v7970_v7 }
 0x33e   : > { %v1518_v12 = vpop.f32.mrf.mxu1  ;;  %v1609_v13 = vpop.f32.mrf.mxu0 }
 0x33f   : > { %v10761_v39 = vadd.f32 %v7965_v6, %v1518_v12  ;;  %v10763_v40 = vadd.f32 %v7970_v7, %v1609_v13 }
 0x340   : > { %v8584_v14 = vpop.f32.mrf.mxu1  ;;  %v8592_v15 = vpop.f32.mrf.mxu0 }
 0x341   : > { %v10747_v16 = vadd.f32 %v8584_v14, %v7965_v6  ;;  %v10749_v17 = vadd.f32 %v8592_v15, %v7970_v7 }
 0x342   : > { %v1528_v18 = vpop.f32.mrf.mxu1  ;;  %v1619_v19 = vpop.f32.mrf.mxu0 }
 0x343   : > { %v10765_v41 = vadd.f32 %v7965_v6, %v1528_v18  ;;  %v10767_v42 = vadd.f32 %v7970_v7, %v1619_v19 }
 0x344   : > { %v8597_v22 = vpop.f32.mrf.mxu1  ;;  %v8605_v23 = vpop.f32.mrf.mxu0 }
 0x345   : > { %v10753_v24 = vadd.f32 %v8597_v22, %v7975_v20  ;;  %v10755_v25 = vadd.f32 %v8605_v23, %v7980_v21 }
 0x346   : > { %v1700_v26 = vpop.f32.mrf.mxu1  ;;  %v1791_v27 = vpop.f32.mrf.mxu0 }
 0x347   : > { %v10773_v35 = vadd.f32 %v7980_v21, %v1791_v27  ;;  %v10777_v13 = vadd.f32 %v7975_v20, %v1700_v26 }
 0x34a   : > { %v8600_v28 = vpop.f32.mrf.mxu1  ;;  %v8608_v29 = vpop.f32.mrf.mxu0 }
 0x34b   : > { %v10757_v31 = vadd.f32 %v8600_v28, %v7975_v20  ;;  %v10759_v32 = vadd.f32 %v8608_v29, %v7980_v21 }
 0x34c   : > { %v1710_v33 = vpop.f32.mrf.mxu1  ;;  %v1801_v38 = vpop.f32.mrf.mxu0 }
 0x34d   : > { %v10775_v8 = vadd.f32 %v7980_v21, %v1801_v38  ;;  %v10780_v19 = vadd.f32 %v7975_v20, %v1710_v33 }
 0x350   : > { %v1880_v43 = vpop.f32.mrf.mxu1  ;;  %v1968_v44 = vpop.f32.mrf.mxu0 }
 0x351   : > { %v1885_v45 = vrot.slane %v1880_v43, 1  ;;  %v1888_v46 = vadd.f32 %v1880_v43, %v10761_v39  ;;  %v1973_v47 = vrot.slane %v1968_v44, 1  ;;  %v1976_v48 = vadd.f32 %v1968_v44, %v10763_v40 }
 0x352   : > { %v8619_v49 = vpop.f32.mrf.mxu1  ;;  %v8630_v50 = vpop.f32.mrf.mxu0 }
 0x353   : > { %v1889_v51 = vadd.f32 %v1885_v45, %v10765_v41  ;;  %v7985_v52 = vmul.f32 -1.442695, %v1888_v46  ;;  %v1977_v53 = vadd.f32 %v1973_v47, %v10767_v42  ;;  %v7987_v34 = vmul.f32 -1.442695, %v1976_v48 }
 0x355   : > { %9390 = vpow2.f32 %v7985_v52  ;;  %v7986_v54 = vmul.f32 -1.442695, %v1889_v51  ;;  %v7988_v36 = vmul.f32 -1.442695, %v1977_v53 }
 0x356   : > { %9392 = vpow2.f32 %v7987_v34 }
 0x357   : > { %9394 = vpow2.f32 %v7986_v54 }
 0x358   : > { %9396 = vpow2.f32 %v7988_v36 }
 0x359   : > { %v2056_v6 = vpop.f32.mrf.mxu1  ;;  %v2134_v7 = vpop.f32.mrf.mxu0 }
 0x35a   : > { %v2061_v9 = vrot.slane %v2056_v6, 1  ;;  %v2139_v12 = vrot.slane %v2134_v7, 1  ;;  %v2142_v14 = vadd.f32 %v2134_v7, %v10773_v35  ;;  %v2064_v23 = vadd.f32 %v2056_v6, %v10777_v13 }
 0x35b   : > { %v8641_v15 = vpop.f32.mrf.mxu1  ;;  %v8652_v18 = vpop.f32.mrf.mxu0 }
 0x35c   : > { %v2143_v22 = vadd.f32 %v2139_v12, %v10775_v8  ;;  %v2065_v27 = vadd.f32 %v2061_v9, %v10780_v19  ;;  %v7989_v28 = vmul.f32 -1.442695, %v2142_v14  ;;  %9398 = vtanh.f32 %v2064_v23 }
 0x35e   : > { %v7990_v29 = vmul.f32 -1.442695, %v2143_v22  ;;  %9400 = vtanh.f32 %v2065_v27 }
 0x35f   : > { %9402 = vpow2.f32 %v7989_v28 }
 0x360   : > { %9404 = vpow2.f32 %v7990_v29 }
 0x362   : > { %v9391_v21 = vpop.eup %9390 }
 0x363   : > { %v9393_v38 = vpop.eup %9392  ;;  %v1896_v26 = vadd.f32 1.0, %v9391_v21 }
 0x364   : > { %v9395_v43 = vpop.eup %9394  ;;  %v1984_v44 = vadd.f32 1.0, %v9393_v38 }
 0x365   : > { %v9397_v45 = vpop.eup %9396  ;;  %v1897_v20 = vadd.f32 1.0, %v9395_v43  ;;  %9406 = vrcp.f32 %v1896_v26 }
 0x366   : > { %v1985_v33 = vadd.f32 1.0, %v9397_v45  ;;  %9408 = vrcp.f32 %v1984_v44 }
 0x367   : > { %9410 = vrcp.f32 %v1897_v20 }
 0x368   : > { %9412 = vrcp.f32 %v1985_v33 }
 0x369   : > { %v9399_v46 = vpop.eup %9398 }
 0x36b   : > { %v9401_v47 = vpop.eup %9400 }
 0x36c   : > { %v9403_v48 = vpop.eup %9402 }
 0x36d   : > { %v9405_v49 = vpop.eup %9404  ;;  %v2150_v14 = vadd.f32 1.0, %v9403_v48 }
 0x36e   : > { %v2151_v54 = vadd.f32 1.0, %v9405_v49 }
 0x370   : > { %9414 = vrcp.f32 %v2151_v54 }
 0x372   : > { %v9407_v50 = vpop.eup %9406 }
 0x373   : > { %v9409_v51 = vpop.eup %9408  ;;  %v2158_v52 = vmul.f32 %v9407_v50, %v9399_v46 }
 0x374   : > { %v9411_v53 = vpop.eup %9410  ;;  %v2156_v34 = vmul.f32 0.0, %v9409_v51 }
 0x375   : > { %v9413_v36 = vpop.eup %9412  ;;  %v2159_v6 = vmul.f32 %v9411_v53, %v9401_v47 }
 0x376   : > { %v2157_v7 = vmul.f32 0.0, %v9413_v36  ;;  %v10785_v9 = vadd.f32 %v2158_v52, %v2156_v34 }
 0x378   : > { %v10787_v12 = vadd.f32 %v2159_v6, %v2157_v7  ;;  %9416 = vtanh.f32 %v10785_v9 }
 0x37a   : > { %9418 = vtanh.f32 %v10787_v12 }
 0x37b   : > { %9420 = vrcp.f32 %v2150_v14 }
 0x37d   : > { %v9415_v15 = vpop.eup %9414 }
 0x385   : > { %v9417_v18 = vpop.eup %9416 }
 0x387   : > { %v9419_v22 = vpop.eup %9418 }
 0x388   : > { %v2165_v23 = vmul.f32 %v9419_v22, %v9415_v15  ;;  %v9421_v27 = vpop.eup %9420 }
 0x389   : > { %v2164_v28 = vmul.f32 %v9421_v27, %v9417_v18 }
 0x38a   : > { %v2168_v29 = vrot.slane %v2165_v23, 7 }
 0x38c   : > { %v2170_v21 = vsel %vm2169_vm7, %v2168_v29, %v2164_v28 }
 0x38d   : > { %8662 = vmatmul.mubr.msk.f32.vlgmr.msra.gmra.mxu1 %vm1810_vm8, %v2170_v21  ;;  %8673 = vmatmul.mubr.msk.f32.vlgmr.msra.gmra.mxu0 %vm1810_vm8, %v2170_v21 }
 0x38e   : > { %8676 = vmatpush3.msra.mxu1 %v10672_v62  ;;  %8687 = vmatpush3.msra.mxu0 %v10675_v63 }
 0x38f   : > { %8677 = vmatprep.subr.mxu1 %v10176_v30  ;;  %8688 = vmatprep.subr.mxu0 %v10176_v30 }
 0x390   : > { %8678 = vmatpush3.msra.mxu1 %v10682_v0  ;;  %8689 = vmatpush3.msra.mxu0 %v10685_v1 }
 0x391   : > { %8679 = vmatprep.subr.mxu1 %v10176_v30  ;;  %8690 = vmatprep.subr.mxu0 %v10176_v30 }
 0x392   : > { %8680 = vmatpush3.msra.mxu1 %v10692_v2  ;;  %8691 = vmatpush3.msra.mxu0 %v10695_v3 }
 0x393   : > { %8681 = vmatprep.subr.mxu1 %v10176_v30  ;;  %8692 = vmatprep.subr.mxu0 %v10176_v30 }
 0x394   : > { %8682 = vmatpush3.msra.mxu1 %v10702_v4  ;;  %8683 = vmatprep.mubr.msk.f32.mxu1 %vm10177_vm6, %v10176_v30 }
 0x395   : > { %8693 = vmatpush3.msra.mxu0 %v10707_v5  ;;  %8694 = vmatprep.mubr.msk.f32.mxu0 %vm10177_vm6, %v10176_v30 }
 0x396   : > { %8684 = vmatmul.mubr.msk.f32.vlgmr.msra.gmra.mxu1 %vm1810_vm8, %v2170_v21  ;;  %8695 = vmatmul.mubr.msk.f32.vlgmr.msra.gmra.mxu0 %vm1810_vm8, %v2170_v21 }
 0x397   : > { %8697 = vmatprep.subr.mxu1 %v10176_v30  ;;  %8708 = vmatprep.subr.mxu0 %v10176_v30 }
 0x398   : > { %8698 = vmatpush3.msra.mxu1 %v10624_v37  ;;  %8709 = vmatpush3.msra.mxu0 %v10627_v55 }
 0x399   : > { %8699 = vmatprep.subr.mxu1 %v10176_v30  ;;  %8710 = vmatprep.subr.mxu0 %v10176_v30 }
 0x39a   : > { %8700 = vmatpush3.msra.mxu1 %v10634_v56  ;;  %8711 = vmatpush3.msra.mxu0 %v10637_v57 }
 0x39b   : > { %8701 = vmatprep.subr.mxu1 %v10176_v30  ;;  %8712 = vmatprep.subr.mxu0 %v10176_v30 }
 0x39c   : > { %8702 = vmatpush3.msra.mxu1 %v10646_v58  ;;  %8713 = vmatpush3.msra.mxu0 %v10649_v59 }
 0x39d   : > { %8703 = vmatprep.subr.mxu1 %v10176_v30  ;;  %8714 = vmatprep.subr.mxu0 %v10176_v30 }
 0x39e   : > { %8704 = vmatpush3.msra.mxu1 %v10656_v60  ;;  %8715 = vmatpush3.msra.mxu0 %v10659_v61 }
 0x39f   : > { %8705 = vmatprep.mubr.msk.f32.mxu1 %vm10177_vm6, %v10176_v30  ;;  %8716 = vmatprep.mubr.msk.f32.mxu0 %vm10177_vm6, %v10176_v30 }
 0x3a0   : > { %8719 = vmatprep.subr.mxu1 %v10176_v30  ;;  %8730 = vmatprep.subr.mxu0 %v10176_v30 }
 0x44d   : > { %v2239_v38 = vpop.f32.mrf.mxu1  ;;  %v2327_v26 = vpop.f32.mrf.mxu0 }
 0x44e   : > { %v2244_v43 = vrot.slane %v2239_v38, 7  ;;  %v2248_v44 = vadd.f32 %v2239_v38, %v10765_v41  ;;  %v2332_v45 = vrot.slane %v2327_v26, 7  ;;  %v2336_v20 = vadd.f32 %v2327_v26, %v10767_v42 }
 0x44f   : > { %v8663_v33 = vpop.f32.mrf.mxu1  ;;  %v8674_v46 = vpop.f32.mrf.mxu0 }
 0x450   : > { %v2247_v47 = vadd.f32 %v2244_v43, %v10761_v39  ;;  %v7993_v48 = vmul.f32 -1.442695, %v2248_v44  ;;  %v2335_v49 = vadd.f32 %v2332_v45, %v10763_v40  ;;  %v7996_v50 = vmul.f32 -1.442695, %v2336_v20 }
 0x452   : > { %v7992_v51 = vmul.f32 -1.442695, %v2247_v47  ;;  %9422 = vpow2.f32 %v7993_v48  ;;  %v7995_v52 = vmul.f32 -1.442695, %v2335_v49  ;;  %v2518_v49 = vrot.slane %v10787_v12, 7 }
 0x453   : > { %9424 = vpow2.f32 %v7996_v50 }
 0x454   : > { %9426 = vpow2.f32 %v7992_v51 }
 0x455   : > { %9428 = vpow2.f32 %v7995_v52 }
 0x456   : > { %v2415_v53 = vpop.f32.mrf.mxu1  ;;  %v2493_v34 = vpop.f32.mrf.mxu0 }
 0x457   : > { %v2420_v54 = vrot.slane %v2415_v53, 7  ;;  %v2498_v36 = vrot.slane %v2493_v34, 7  ;;  %v2502_v6 = vadd.f32 %v2493_v34, %v10775_v8  ;;  %v2424_v18 = vadd.f32 %v2415_v53, %v10780_v19 }
 0x458   : > { %v8685_v7 = vpop.f32.mrf.mxu1  ;;  %v8696_v14 = vpop.f32.mrf.mxu0  ;;  %v2517_v53 = vrot.slane %v10785_v9, 7 }
 0x459   : > { %v2501_v15 = vadd.f32 %v2498_v36, %v10773_v35  ;;  %v2423_v22 = vadd.f32 %v2420_v54, %v10777_v13  ;;  %v8000_v23 = vmul.f32 -1.442695, %v2502_v6  ;;  %9430 = vtanh.f32 %v2424_v18 }
 0x45b   : > { %v7999_v27 = vmul.f32 -1.442695, %v2501_v15  ;;  %9432 = vtanh.f32 %v2423_v22 }
 0x45c   : > { %9434 = vpow2.f32 %v8000_v23 }
 0x45d   : > { %9436 = vpow2.f32 %v7999_v27 }
 0x45f   : > { %v9423_v28 = vpop.eup %9422 }
 0x460   : > { %v9425_v29 = vpop.eup %9424  ;;  %v2256_v21 = vadd.f32 1.0, %v9423_v28 }
 0x461   : > { %v9427_v38 = vpop.eup %9426  ;;  %v2344_v26 = vadd.f32 1.0, %v9425_v29 }
 0x462   : > { %v9429_v43 = vpop.eup %9428  ;;  %v2255_v44 = vadd.f32 1.0, %v9427_v38  ;;  %9438 = vrcp.f32 %v2256_v21 }
 0x463   : > { %v2343_v45 = vadd.f32 1.0, %v9429_v43  ;;  %9440 = vrcp.f32 %v2344_v26 }
 0x464   : > { %9442 = vrcp.f32 %v2255_v44 }
 0x465   : > { %9444 = vrcp.f32 %v2343_v45 }
 0x466   : > { %v9431_v20 = vpop.eup %9430 }
 0x468   : > { %v9433_v33 = vpop.eup %9432 }
 0x469   : > { %v9435_v46 = vpop.eup %9434 }
 0x46a   : > { %v9437_v47 = vpop.eup %9436  ;;  %v2510_v18 = vadd.f32 1.0, %v9435_v46 }
 0x46b   : > { %v2509_v54 = vadd.f32 1.0, %v9437_v47 }
 0x46d   : > { %9446 = vrcp.f32 %v2509_v54 }
 0x46f   : > { %v9439_v48 = vpop.eup %9438 }
 0x470   : > { %v9441_v50 = vpop.eup %9440  ;;  %v2524_v51 = vmul.f32 %v9439_v48, %v9431_v20 }
 0x471   : > { %v9443_v52 = vpop.eup %9442  ;;  %v2522_v34 = vmul.f32 %v9441_v50, %v2518_v49 }
 0x472   : > { %v9445_v36 = vpop.eup %9444  ;;  %v2523_v6 = vmul.f32 %v9443_v52, %v9433_v33 }
 0x473   : > { %v2521_v7 = vmul.f32 %v9445_v36, %v2517_v53  ;;  %v10846_v14 = vadd.f32 %v2524_v51, %v2522_v34 }
 0x475   : > { %v10848_v15 = vadd.f32 %v2523_v6, %v2521_v7  ;;  %9448 = vtanh.f32 %v10846_v14 }
 0x477   : > { %9450 = vtanh.f32 %v10848_v15 }
 0x478   : > { %9452 = vrcp.f32 %v2510_v18 }
 0x47a   : > { %v9447_v12 = vpop.eup %9446 }
 0x482   : > { %v9449_v22 = vpop.eup %9448 }
 0x484   : > { %v9451_v23 = vpop.eup %9450 }
 0x485   : > { %v2529_v9 = vmul.f32 %v9451_v23, %v9447_v12  ;;  %v9453_v27 = vpop.eup %9452 }
 0x486   : > { %v2530_v28 = vmul.f32 %v9453_v27, %v9449_v22 }
 0x487   : > { %v2533_v29 = vrot.slane %v2529_v9, 1 }
 0x489   : > { %v2534_v21 = vsel %vm2169_vm7, %v2530_v28, %v2533_v29 }
 0x48a   : > { %8706 = vmatmul.mubr.msk.f32.vlgmr.msra.gmra.mxu1 %vm1810_vm8, %v2534_v21  ;;  %8717 = vmatmul.mubr.msk.f32.vlgmr.msra.gmra.mxu0 %vm1810_vm8, %v2534_v21 }
 0x48b   : > { %8720 = vmatpush3.msra.mxu1 %v10672_v62  ;;  %8731 = vmatpush3.msra.mxu0 %v10675_v63 }
 0x48c   : > { %8721 = vmatprep.subr.mxu1 %v10176_v30  ;;  %8732 = vmatprep.subr.mxu0 %v10176_v30 }
 0x48d   : > { %8722 = vmatpush3.msra.mxu1 %v10682_v0  ;;  %8733 = vmatpush3.msra.mxu0 %v10685_v1 }
 0x48e   : > { %8723 = vmatprep.subr.mxu1 %v10176_v30  ;;  %8734 = vmatprep.subr.mxu0 %v10176_v30 }
 0x48f   : > { %8724 = vmatpush3.msra.mxu1 %v10692_v2  ;;  %8735 = vmatpush3.msra.mxu0 %v10695_v3 }
 0x490   : > { %8725 = vmatprep.subr.mxu1 %v10176_v30  ;;  %8736 = vmatprep.subr.mxu0 %v10176_v30 }
 0x491   : > { %8726 = vmatpush3.msra.mxu1 %v10702_v4  ;;  %8727 = vmatprep.mubr.msk.f32.mxu1 %vm10177_vm6, %v10176_v30 }
 0x492   : > { %8737 = vmatpush3.msra.mxu0 %v10707_v5  ;;  %8738 = vmatprep.mubr.msk.f32.mxu0 %vm10177_vm6, %v10176_v30 }
 0x493   : > { %8728 = vmatmul.mubr.msk.f32.vlgmr.msra.gmra.mxu1 %vm1810_vm8, %v2534_v21  ;;  %8739 = vmatmul.mubr.msk.f32.vlgmr.msra.gmra.mxu0 %vm1810_vm8, %v2534_v21 }
 0x494   : > { %8741 = vmatprep.subr.mxu1 %v10176_v30  ;;  %8752 = vmatprep.subr.mxu0 %v10176_v30 }
 0x495   : > { %8742 = vmatpush3.msra.mxu1 %v10624_v37  ;;  %8753 = vmatpush3.msra.mxu0 %v10627_v55 }
 0x496   : > { %8743 = vmatprep.subr.mxu1 %v10176_v30  ;;  %8754 = vmatprep.subr.mxu0 %v10176_v30 }
 0x497   : > { %8744 = vmatpush3.msra.mxu1 %v10634_v56  ;;  %8755 = vmatpush3.msra.mxu0 %v10637_v57 }
 0x498   : > { %8745 = vmatprep.subr.mxu1 %v10176_v30  ;;  %8756 = vmatprep.subr.mxu0 %v10176_v30 }
 0x499   : > { %8746 = vmatpush3.msra.mxu1 %v10646_v58  ;;  %8757 = vmatpush3.msra.mxu0 %v10649_v59 }
 0x49a   : > { %8747 = vmatprep.subr.mxu1 %v10176_v30  ;;  %8758 = vmatprep.subr.mxu0 %v10176_v30 }
 0x49b   : > { %8748 = vmatpush3.msra.mxu1 %v10656_v60  ;;  %8759 = vmatpush3.msra.mxu0 %v10659_v61 }
 0x49c   : > { %8749 = vmatprep.mubr.msk.f32.mxu1 %vm10177_vm6, %v10176_v30  ;;  %8760 = vmatprep.mubr.msk.f32.mxu0 %vm10177_vm6, %v10176_v30 }
 0x49d   : > { %8763 = vmatprep.subr.mxu1 %v10176_v30  ;;  %8774 = vmatprep.subr.mxu0 %v10176_v30 }
 0x54a   : > { %v2603_v38 = vpop.f32.mrf.mxu1  ;;  %v2692_v26 = vpop.f32.mrf.mxu0 }
 0x54b   : > { %v2608_v43 = vrot.slane %v2603_v38, 6  ;;  %v2609_v44 = vrot.slane %v2603_v38, 7  ;;  %v2697_v45 = vrot.slane %v2692_v26, 6  ;;  %v2698_v20 = vrot.slane %v2692_v26, 7 }
 0x54c   : > { %v8707_v33 = vpop.f32.mrf.mxu1  ;;  %v8718_v46 = vpop.f32.mrf.mxu0 }
 0x54d   : > { %v2612_v47 = vadd.f32 %v2608_v43, %v10761_v39  ;;  %v2613_v48 = vadd.f32 %v2609_v44, %v10765_v41  ;;  %v2701_v49 = vadd.f32 %v2697_v45, %v10763_v40  ;;  %v2702_v50 = vadd.f32 %v2698_v20, %v10767_v42 }
 0x54f   : > { %v8002_v51 = vmul.f32 -1.442695, %v2612_v47  ;;  %v8003_v52 = vmul.f32 -1.442695, %v2613_v48  ;;  %v8005_v53 = vmul.f32 -1.442695, %v2701_v49 }
 0x550   : > { %v8006_v34 = vmul.f32 -1.442695, %v2702_v50 }
 0x551   : > { %9454 = vpow2.f32 %v8002_v51 }
 0x552   : > { %9456 = vpow2.f32 %v8003_v52 }
 0x553   : > { %9458 = vpow2.f32 %v8005_v53  ;;  %v2781_v54 = vpop.f32.mrf.mxu1  ;;  %v2860_v36 = vpop.f32.mrf.mxu0 }
 0x554   : > { %9460 = vpow2.f32 %v8006_v34  ;;  %v2865_v6 = vrot.slane %v2860_v36, 6  ;;  %v2786_v7 = vrot.slane %v2781_v54, 6  ;;  %v2866_v18 = vrot.slane %v2860_v36, 7 }
 0x555   : > { %v8729_v12 = vpop.f32.mrf.mxu1  ;;  %v8740_v22 = vpop.f32.mrf.mxu0  ;;  %v2787_v23 = vrot.slane %v2781_v54, 7  ;;  %v2885_v34 = vrot.slane %v10848_v15, 7 }
 0x556   : > { %v2869_v9 = vadd.f32 %v2865_v6, %v10773_v35  ;;  %v2870_v27 = vadd.f32 %v2866_v18, %v10775_v8  ;;  %v2790_v28 = vadd.f32 %v2786_v7, %v10777_v13  ;;  %v2886_v7 = vrot.slane %v10846_v14, 7 }
 0x557   : > { %v2791_v29 = vadd.f32 %v2787_v23, %v10780_v19 }
 0x558   : > { %v8009_v21 = vmul.f32 -1.442695, %v2869_v9  ;;  %v8010_v38 = vmul.f32 -1.442695, %v2870_v27  ;;  %9462 = vtanh.f32 %v2790_v28 }
 0x559   : > { %9464 = vtanh.f32 %v2791_v29 }
 0x55a   : > { %9466 = vpow2.f32 %v8009_v21 }
 0x55b   : > { %9468 = vpow2.f32 %v8010_v38 }
 0x55e   : > { %v9455_v26 = vpop.eup %9454 }
 0x55f   : > { %v9457_v43 = vpop.eup %9456  ;;  %v2620_v44 = vadd.f32 1.0, %v9455_v26 }
 0x560   : > { %v9459_v45 = vpop.eup %9458  ;;  %v2621_v20 = vadd.f32 1.0, %v9457_v43 }
 0x561   : > { %v9461_v33 = vpop.eup %9460  ;;  %9470 = vrcp.f32 %v2620_v44  ;;  %v2709_v46 = vadd.f32 1.0, %v9459_v45 }
 0x562   : > { %9472 = vrcp.f32 %v2621_v20  ;;  %v2710_v47 = vadd.f32 1.0, %v9461_v33 }
 0x563   : > { %9474 = vrcp.f32 %v2709_v46 }
 0x564   : > { %9476 = vrcp.f32 %v2710_v47 }
 0x565   : > { %v9463_v48 = vpop.eup %9462 }
 0x566   : > { %v9465_v49 = vpop.eup %9464 }
 0x567   : > { %v9467_v50 = vpop.eup %9466 }
 0x568   : > { %v9469_v51 = vpop.eup %9468  ;;  %v2877_v36 = vadd.f32 1.0, %v9467_v50 }
 0x569   : > { %v2878_v12 = vadd.f32 1.0, %v9469_v51 }
 0x56a   : > { %9478 = vrcp.f32 %v2877_v36 }
 0x56b   : > { %9480 = vrcp.f32 %v2878_v12 }
 0x56e   : > { %v9471_v52 = vpop.eup %9470 }
 0x56f   : > { %v9473_v53 = vpop.eup %9472  ;;  %v2891_v54 = vmul.f32 %v9471_v52, %v9463_v48 }
 0x570   : > { %v9475_v6 = vpop.eup %9474  ;;  %v2892_v18 = vmul.f32 %v9473_v53, %v9465_v49 }
 0x571   : > { %v9477_v22 = vpop.eup %9476  ;;  %v2889_v23 = vmul.f32 %v9475_v6, %v2885_v34 }
 0x572   : > { %v2890_v9 = vmul.f32 %v9477_v22, %v2886_v7 }
 0x573   : > { %v10907_v27 = vadd.f32 %v2891_v54, %v2889_v23 }
 0x574   : > { %v10909_v28 = vadd.f32 %v2892_v18, %v2890_v9 }
 0x575   : > { %9482 = vtanh.f32 %v10907_v27 }
 0x576   : > { %9484 = vtanh.f32 %v10909_v28 }
 0x577   : > { %v9479_v15 = vpop.eup %9478 }
 0x578   : > { %v9481_v29 = vpop.eup %9480 }
 0x582   : > { %v9483_v21 = vpop.eup %9482 }
 0x583   : > { %v9485_v38 = vpop.eup %9484  ;;  %v2897_v14 = vmul.f32 %v9483_v21, %v9479_v15 }
 0x584   : > { %v2898_v26 = vmul.f32 %v9485_v38, %v9481_v29 }
 0x585   : > { %v2901_v43 = vrot.slane %v2897_v14, 2 }
 0x586   : > { %v2902_v44 = vrot.slane %v2898_v26, 1 }
 0x588   : > { %v2903_v45 = vsel %vm2169_vm7, %v2902_v44, %v2901_v43 }
 0x589   : > { %8750 = vmatmul.mubr.msk.f32.vlgmr.msra.gmra.mxu1 %vm1810_vm8, %v2903_v45  ;;  %8761 = vmatmul.mubr.msk.f32.vlgmr.msra.gmra.mxu0 %vm1810_vm8, %v2903_v45 }
 0x58a   : > { %8764 = vmatpush3.msra.mxu1 %v10672_v62  ;;  %8775 = vmatpush3.msra.mxu0 %v10675_v63 }
 0x58b   : > { %8765 = vmatprep.subr.mxu1 %v10176_v30  ;;  %8776 = vmatprep.subr.mxu0 %v10176_v30 }
 0x58c   : > { %8766 = vmatpush3.msra.mxu1 %v10682_v0  ;;  %8777 = vmatpush3.msra.mxu0 %v10685_v1 }
 0x58d   : > { %8767 = vmatprep.subr.mxu1 %v10176_v30  ;;  %8778 = vmatprep.subr.mxu0 %v10176_v30 }
 0x58e   : > { %8768 = vmatpush3.msra.mxu1 %v10692_v2  ;;  %8779 = vmatpush3.msra.mxu0 %v10695_v3 }
 0x58f   : > { %8769 = vmatprep.subr.mxu1 %v10176_v30  ;;  %8780 = vmatprep.subr.mxu0 %v10176_v30 }
 0x590   : > { %8770 = vmatpush3.msra.mxu1 %v10702_v4  ;;  %8771 = vmatprep.mubr.msk.f32.mxu1 %vm10177_vm6, %v10176_v30 }
 0x591   : > { %8781 = vmatpush3.msra.mxu0 %v10707_v5  ;;  %8782 = vmatprep.mubr.msk.f32.mxu0 %vm10177_vm6, %v10176_v30 }
 0x592   : > { %8772 = vmatmul.mubr.msk.f32.vlgmr.msra.gmra.mxu1 %vm1810_vm8, %v2903_v45  ;;  %8783 = vmatmul.mubr.msk.f32.vlgmr.msra.gmra.mxu0 %vm1810_vm8, %v2903_v45  ;;  %v3254_v45 = vrot.slane %v10907_v27, 7 }
 0x593   : > { %8785 = vmatprep.subr.mxu1 %v10176_v30  ;;  %8796 = vmatprep.subr.mxu0 %v10176_v30 }
 0x594   : > { %8786 = vmatpush3.msra.mxu1 %v10624_v37  ;;  %8797 = vmatpush3.msra.mxu0 %v10627_v55 }
 0x595   : > { %8787 = vmatprep.subr.mxu1 %v10176_v30  ;;  %8798 = vmatprep.subr.mxu0 %v10176_v30 }
 0x596   : > { %8788 = vmatpush3.msra.mxu1 %v10634_v56  ;;  %8799 = vmatpush3.msra.mxu0 %v10637_v57 }
 0x597   : > { %8789 = vmatprep.subr.mxu1 %v10176_v30  ;;  %8800 = vmatprep.subr.mxu0 %v10176_v30 }
 0x598   : > { %8790 = vmatpush3.msra.mxu1 %v10646_v58  ;;  %8801 = vmatpush3.msra.mxu0 %v10649_v59 }
 0x599   : > { %8791 = vmatprep.subr.mxu1 %v10176_v30  ;;  %8802 = vmatprep.subr.mxu0 %v10176_v30 }
 0x59a   : > { %8792 = vmatpush3.msra.mxu1 %v10656_v60  ;;  %8803 = vmatpush3.msra.mxu0 %v10659_v61 }
 0x59b   : > { %8793 = vmatprep.mubr.msk.f32.mxu1 %vm10177_vm6, %v10176_v30  ;;  %8804 = vmatprep.mubr.msk.f32.mxu0 %vm10177_vm6, %v10176_v30 }
 0x59c   : > { %8807 = vmatprep.subr.mxu1 %v10176_v30  ;;  %8818 = vmatprep.subr.mxu0 %v10176_v30 }
 0x649   : > { %v2972_v37 = vpop.f32.mrf.mxu1  ;;  %v3061_v55 = vpop.f32.mrf.mxu0 }
 0x64a   : > { %v2977_v56 = vrot.slane %v2972_v37, 5  ;;  %v2978_v57 = vrot.slane %v2972_v37, 6  ;;  %v3066_v58 = vrot.slane %v3061_v55, 5  ;;  %v3067_v59 = vrot.slane %v3061_v55, 6 }
 0x64b   : > { %v8751_v62 = vpop.f32.mrf.mxu1  ;;  %v8762_v60 = vpop.f32.mrf.mxu0 }
 0x64c   : > { %v2981_v61 = vadd.f32 %v2977_v56, %v10761_v39  ;;  %v2982_v63 = vadd.f32 %v2978_v57, %v10765_v41  ;;  %v3070_v0 = vadd.f32 %v3066_v58, %v10763_v40  ;;  %v3071_v1 = vadd.f32 %v3067_v59, %v10767_v42 }
 0x64d   : > { %v3255_v57 = vrot.slane %v10909_v28, 7 }
 0x64e   : > { %v8012_v2 = vmul.f32 -1.442695, %v2981_v61  ;;  %v8013_v3 = vmul.f32 -1.442695, %v2982_v63  ;;  %v8015_v4 = vmul.f32 -1.442695, %v3070_v0 }
 0x64f   : > { %v8016_v5 = vmul.f32 -1.442695, %v3071_v1 }
 0x650   : > { %9486 = vpow2.f32 %v8012_v2 }
 0x651   : > { %9488 = vpow2.f32 %v8013_v3 }
 0x652   : > { %9490 = vpow2.f32 %v8015_v4  ;;  %v3150_v20 = vpop.f32.mrf.mxu1  ;;  %v3229_v33 = vpop.f32.mrf.mxu0 }
 0x653   : > { %9492 = vpow2.f32 %v8016_v5  ;;  %v3234_v46 = vrot.slane %v3229_v33, 5  ;;  %v3155_v47 = vrot.slane %v3150_v20, 5  ;;  %v3235_v48 = vrot.slane %v3229_v33, 6 }
 0x654   : > { %v8773_v49 = vpop.f32.mrf.mxu1  ;;  %v8784_v50 = vpop.f32.mrf.mxu0  ;;  %v3156_v51 = vrot.slane %v3150_v20, 6 }
 0x655   : > { %v3238_v52 = vadd.f32 %v3234_v46, %v10773_v35  ;;  %v3239_v53 = vadd.f32 %v3235_v48, %v10775_v8  ;;  %v3159_v34 = vadd.f32 %v3155_v47, %v10777_v13  ;;  %v10978_v46 = vld [vmem:[%s10615_s28 + $0x58] sm:$0xff]  ;;  %v10988_v48 = vld [vmem:[%s10615_s28 + $0x50] sm:$0xff]  ;;  %v10998_v50 = vld [vmem:[%s10615_s28 + $0x48] sm:$0xff] }
 0x656   : > { %v3160_v54 = vadd.f32 %v3156_v51, %v10780_v19  ;;  %v10982_v47 = vld [vmem:[%s10615_s28 + $0x78] sm:$0xff]  ;;  %v10992_v49 = vld [vmem:[%s10615_s28 + $0x70] sm:$0xff]  ;;  %v11002_v51 = vld [vmem:[%s10615_s28 + $0x68] sm:$0xff] }
 0x657   : > { %v8019_v36 = vmul.f32 -1.442695, %v3238_v52  ;;  %v8020_v6 = vmul.f32 -1.442695, %v3239_v53  ;;  %9494 = vtanh.f32 %v3159_v34  ;;  %v11008_v52 = vld [vmem:[%s10615_s28 + $0x40] sm:$0xff]  ;;  %v11024_v34 = vld [vmem:[%s10615_s28 + $0x18] sm:$0xff] }
 0x658   : > { %9496 = vtanh.f32 %v3160_v54  ;;  %v11014_v53 = vld [vmem:[%s10615_s28 + $0x60] sm:$0xff]  ;;  %v11028_v54 = vld [vmem:[%s10615_s28 + $0x38] sm:$0xff] }
 0x659   : > { %9498 = vpow2.f32 %v8019_v36  ;;  %v11034_v36 = vld [vmem:[%s10615_s28 + $0x10] sm:$0xff] }
 0x65a   : > { %9500 = vpow2.f32 %v8020_v6  ;;  %v11038_v6 = vld [vmem:[%s10615_s28 + $0x30] sm:$0xff] }
 0x65d   : > { %v9487_v7 = vpop.eup %9486 }
 0x65e   : > { %v9489_v18 = vpop.eup %9488  ;;  %v2989_v12 = vadd.f32 1.0, %v9487_v7  ;;  %v11044_v7 = vld [vmem:[%s10615_s28 + $0x8] sm:$0xff] }
 0x65f   : > { %v9491_v22 = vpop.eup %9490  ;;  %v2990_v23 = vadd.f32 1.0, %v9489_v18  ;;  %v11048_v18 = vld [vmem:[%s10615_s28 + $0x28] sm:$0xff] }
 0x660   : > { %v9493_v9 = vpop.eup %9492  ;;  %9502 = vrcp.f32 %v2989_v12  ;;  %v3078_v15 = vadd.f32 1.0, %v9491_v22  ;;  %v11054_v12 = vld [vmem:[%s10615_s28] sm:$0xff] }
 0x661   : > { %9504 = vrcp.f32 %v2990_v23  ;;  %v3079_v29 = vadd.f32 1.0, %v9493_v9  ;;  %v11058_v22 = vld [vmem:[%s10615_s28 + $0x20] sm:$0xff] }
 0x662   : > { %9506 = vrcp.f32 %v3078_v15 }
 0x663   : > { %9508 = vrcp.f32 %v3079_v29 }
 0x664   : > { %v9495_v21 = vpop.eup %9494 }
 0x665   : > { %v9497_v38 = vpop.eup %9496 }
 0x666   : > { %v9499_v14 = vpop.eup %9498 }
 0x667   : > { %v9501_v26 = vpop.eup %9500  ;;  %v3246_v55 = vadd.f32 1.0, %v9499_v14 }
 0x668   : > { %v3247_v59 = vadd.f32 1.0, %v9501_v26 }
 0x669   : > { %9510 = vrcp.f32 %v3246_v55 }
 0x66a   : > { %9512 = vrcp.f32 %v3247_v59 }
 0x66d   : > { %v9503_v43 = vpop.eup %9502 }
 0x66e   : > { %v9505_v44 = vpop.eup %9504  ;;  %v3260_v37 = vmul.f32 %v9503_v43, %v9495_v21 }
 0x66f   : > { %v9507_v56 = vpop.eup %9506  ;;  %v3261_v58 = vmul.f32 %v9505_v44, %v9497_v38 }
 0x670   : > { %v9509_v62 = vpop.eup %9508  ;;  %v3258_v60 = vmul.f32 %v9507_v56, %v3254_v45 }
 0x671   : > { %v3259_v61 = vmul.f32 %v9509_v62, %v3255_v57 }
 0x672   : > { %v10968_v63 = vadd.f32 %v3260_v37, %v3258_v60 }
 0x673   : > { %v10970_v0 = vadd.f32 %v3261_v58, %v3259_v61 }
 0x674   : > { %9514 = vtanh.f32 %v10968_v63 }
 0x675   : > { %9516 = vtanh.f32 %v10970_v0 }
 0x676   : > { %v9511_v27 = vpop.eup %9510 }
 0x677   : > { %v9513_v1 = vpop.eup %9512 }
 0x681   : > { %v9515_v28 = vpop.eup %9514 }
 0x682   : > { %v9517_v2 = vpop.eup %9516  ;;  %v3266_v3 = vmul.f32 %v9515_v28, %v9511_v27 }
 0x683   : > { %v3267_v4 = vmul.f32 %v9517_v2, %v9513_v1 }
 0x684   : > { %v3270_v5 = vrot.slane %v3266_v3, 3 }
 0x685   : > { %v3271_v20 = vrot.slane %v3267_v4, 2 }
 0x687   : > { %v3272_v33 = vsel %vm2169_vm7, %v3271_v20, %v3270_v5 }
 0x688   : > { %8794 = vmatmul.mubr.msk.f32.vlgmr.msra.gmra.mxu1 %vm1810_vm8, %v3272_v33  ;;  %8805 = vmatmul.mubr.msk.f32.vlgmr.msra.gmra.mxu0 %vm1810_vm8, %v3272_v33 }
 0x689   : > { %8808 = vmatpush3.msra.mxu1 %v10978_v46  ;;  %8819 = vmatpush3.msra.mxu0 %v10982_v47 }
 0x68a   : > { %8809 = vmatprep.subr.mxu1 %v10176_v30  ;;  %8820 = vmatprep.subr.mxu0 %v10176_v30 }
 0x68b   : > { %8810 = vmatpush3.msra.mxu1 %v10988_v48  ;;  %8821 = vmatpush3.msra.mxu0 %v10992_v49 }
 0x68c   : > { %8811 = vmatprep.subr.mxu1 %v10176_v30  ;;  %8822 = vmatprep.subr.mxu0 %v10176_v30 }
 0x68d   : > { %8812 = vmatpush3.msra.mxu1 %v10998_v50  ;;  %8823 = vmatpush3.msra.mxu0 %v11002_v51 }
 0x68e   : > { %8813 = vmatprep.subr.mxu1 %v10176_v30  ;;  %8824 = vmatprep.subr.mxu0 %v10176_v30 }
 0x68f   : > { %8814 = vmatpush3.msra.mxu1 %v11008_v52  ;;  %8815 = vmatprep.mubr.msk.f32.mxu1 %vm10177_vm6, %v10176_v30 }
 0x690   : > { %8825 = vmatpush3.msra.mxu0 %v11014_v53  ;;  %8826 = vmatprep.mubr.msk.f32.mxu0 %vm10177_vm6, %v10176_v30 }
 0x691   : > { %8816 = vmatmul.mubr.msk.f32.vlgmr.msra.gmra.mxu1 %vm1810_vm8, %v3272_v33  ;;  %8827 = vmatmul.mubr.msk.f32.vlgmr.msra.gmra.mxu0 %vm1810_vm8, %v3272_v33 }
 0x692   : > { %8829 = vmatprep.subr.mxu1 %v10176_v30  ;;  %8840 = vmatprep.subr.mxu0 %v10176_v30 }
 0x693   : > { %8830 = vmatpush3.msra.mxu1 %v11024_v34  ;;  %8841 = vmatpush3.msra.mxu0 %v11028_v54 }
 0x694   : > { %8831 = vmatprep.subr.mxu1 %v10176_v30  ;;  %8842 = vmatprep.subr.mxu0 %v10176_v30 }
 0x695   : > { %8832 = vmatpush3.msra.mxu1 %v11034_v36  ;;  %8843 = vmatpush3.msra.mxu0 %v11038_v6 }
 0x696   : > { %8833 = vmatprep.subr.mxu1 %v10176_v30  ;;  %8844 = vmatprep.subr.mxu0 %v10176_v30 }
 0x697   : > { %8834 = vmatpush3.msra.mxu1 %v11044_v7  ;;  %8845 = vmatpush3.msra.mxu0 %v11048_v18 }
 0x698   : > { %8835 = vmatprep.subr.mxu1 %v10176_v30  ;;  %8846 = vmatprep.subr.mxu0 %v10176_v30 }
 0x699   : > { %8836 = vmatpush3.msra.mxu1 %v11054_v12  ;;  %8847 = vmatpush3.msra.mxu0 %v11058_v22 }
 0x69a   : > { %8837 = vmatprep.mubr.msk.f32.mxu1 %vm10177_vm6, %v10176_v30  ;;  %8848 = vmatprep.mubr.msk.f32.mxu0 %vm10177_vm6, %v10176_v30 }
 0x69b   : > { %8851 = vmatprep.subr.mxu1 %v10176_v30  ;;  %8862 = vmatprep.subr.mxu0 %v10176_v30 }
 0x748   : > { %v3341_v23 = vpop.f32.mrf.mxu1  ;;  %v3430_v9 = vpop.f32.mrf.mxu0 }
 0x749   : > { %v3346_v15 = vrot.slane %v3341_v23, 4  ;;  %v3347_v29 = vrot.slane %v3341_v23, 5  ;;  %v3435_v21 = vrot.slane %v3430_v9, 4  ;;  %v3436_v38 = vrot.slane %v3430_v9, 5 }
 0x74a   : > { %v8795_v14 = vpop.f32.mrf.mxu1  ;;  %v8806_v26 = vpop.f32.mrf.mxu0 }
 0x74b   : > { %v3350_v43 = vadd.f32 %v3346_v15, %v10761_v39  ;;  %v3351_v44 = vadd.f32 %v3347_v29, %v10765_v41  ;;  %v3439_v45 = vadd.f32 %v3435_v21, %v10763_v40  ;;  %v3440_v37 = vadd.f32 %v3436_v38, %v10767_v42 }
 0x74d   : > { %v8022_v55 = vmul.f32 -1.442695, %v3350_v43  ;;  %v8023_v56 = vmul.f32 -1.442695, %v3351_v44  ;;  %v8025_v57 = vmul.f32 -1.442695, %v3439_v45 }
 0x74e   : > { %v8026_v58 = vmul.f32 -1.442695, %v3440_v37 }
 0x74f   : > { %9518 = vpow2.f32 %v8022_v55 }
 0x750   : > { %9520 = vpow2.f32 %v8023_v56 }
 0x751   : > { %9522 = vpow2.f32 %v8025_v57  ;;  %v3519_v59 = vpop.f32.mrf.mxu1  ;;  %v3598_v62 = vpop.f32.mrf.mxu0 }
 0x752   : > { %9524 = vpow2.f32 %v8026_v58  ;;  %v3603_v60 = vrot.slane %v3598_v62, 4  ;;  %v3524_v61 = vrot.slane %v3519_v59, 4  ;;  %v3604_v27 = vrot.slane %v3598_v62, 5 }
 0x753   : > { %v8817_v1 = vpop.f32.mrf.mxu1  ;;  %v8828_v28 = vpop.f32.mrf.mxu0  ;;  %v3525_v2 = vrot.slane %v3519_v59, 5  ;;  %v3623_v58 = vrot.slane %v10968_v63, 7 }
 0x754   : > { %v3607_v3 = vadd.f32 %v3603_v60, %v10773_v35  ;;  %v3608_v4 = vadd.f32 %v3604_v27, %v10775_v8  ;;  %v3528_v5 = vadd.f32 %v3524_v61, %v10777_v13  ;;  %v3624_v61 = vrot.slane %v10970_v0, 7 }
 0x755   : > { %v3529_v20 = vadd.f32 %v3525_v2, %v10780_v19 }
 0x756   : > { %v8029_v33 = vmul.f32 -1.442695, %v3607_v3  ;;  %v8030_v23 = vmul.f32 -1.442695, %v3608_v4  ;;  %9526 = vtanh.f32 %v3528_v5 }
 0x757   : > { %9528 = vtanh.f32 %v3529_v20 }
 0x758   : > { %9530 = vpow2.f32 %v8029_v33 }
 0x759   : > { %9532 = vpow2.f32 %v8030_v23 }
 0x75c   : > { %v9519_v9 = vpop.eup %9518 }
 0x75d   : > { %v9521_v15 = vpop.eup %9520  ;;  %v3358_v29 = vadd.f32 1.0, %v9519_v9 }
 0x75e   : > { %v9523_v21 = vpop.eup %9522  ;;  %v3359_v38 = vadd.f32 1.0, %v9521_v15 }
 0x75f   : > { %v9525_v14 = vpop.eup %9524  ;;  %9534 = vrcp.f32 %v3358_v29  ;;  %v3447_v26 = vadd.f32 1.0, %v9523_v21 }
 0x760   : > { %9536 = vrcp.f32 %v3359_v38  ;;  %v3448_v43 = vadd.f32 1.0, %v9525_v14 }
 0x761   : > { %9538 = vrcp.f32 %v3447_v26 }
 0x762   : > { %9540 = vrcp.f32 %v3448_v43 }
 0x763   : > { %v9527_v44 = vpop.eup %9526 }
 0x764   : > { %v9529_v45 = vpop.eup %9528 }
 0x765   : > { %v9531_v37 = vpop.eup %9530 }
 0x766   : > { %v9533_v55 = vpop.eup %9532  ;;  %v3615_v62 = vadd.f32 1.0, %v9531_v37 }
 0x767   : > { %v3616_v1 = vadd.f32 1.0, %v9533_v55 }
 0x768   : > { %9542 = vrcp.f32 %v3615_v62 }
 0x769   : > { %9544 = vrcp.f32 %v3616_v1 }
 0x76c   : > { %v9535_v56 = vpop.eup %9534 }
 0x76d   : > { %v9537_v57 = vpop.eup %9536  ;;  %v3629_v59 = vmul.f32 %v9535_v56, %v9527_v44 }
 0x76e   : > { %v9539_v60 = vpop.eup %9538  ;;  %v3630_v27 = vmul.f32 %v9537_v57, %v9529_v45 }
 0x76f   : > { %v9541_v28 = vpop.eup %9540  ;;  %v3627_v2 = vmul.f32 %v9539_v60, %v3623_v58 }
 0x770   : > { %v3628_v3 = vmul.f32 %v9541_v28, %v3624_v61 }
 0x771   : > { %v11077_v4 = vadd.f32 %v3629_v59, %v3627_v2 }
 0x772   : > { %v11079_v5 = vadd.f32 %v3630_v27, %v3628_v3 }
 0x773   : > { %9546 = vtanh.f32 %v11077_v4 }
 0x774   : > { %9548 = vtanh.f32 %v11079_v5 }
 0x775   : > { %v9543_v63 = vpop.eup %9542 }
 0x776   : > { %v9545_v20 = vpop.eup %9544 }
 0x780   : > { %v9547_v33 = vpop.eup %9546 }
 0x781   : > { %v9549_v23 = vpop.eup %9548  ;;  %v3635_v0 = vmul.f32 %v9547_v33, %v9543_v63 }
 0x782   : > { %v3636_v9 = vmul.f32 %v9549_v23, %v9545_v20 }
 0x783   : > { %v3639_v15 = vrot.slane %v3635_v0, 4 }
 0x784   : > { %v3640_v29 = vrot.slane %v3636_v9, 3 }
 0x786   : > { %v3641_v21 = vsel %vm2169_vm7, %v3640_v29, %v3639_v15 }
 0x787   : > { %8838 = vmatmul.mubr.msk.f32.vlgmr.msra.gmra.mxu1 %vm1810_vm8, %v3641_v21  ;;  %8849 = vmatmul.mubr.msk.f32.vlgmr.msra.gmra.mxu0 %vm1810_vm8, %v3641_v21 }
 0x788   : > { %8852 = vmatpush3.msra.mxu1 %v10978_v46  ;;  %8863 = vmatpush3.msra.mxu0 %v10982_v47 }
 0x789   : > { %8853 = vmatprep.subr.mxu1 %v10176_v30  ;;  %8864 = vmatprep.subr.mxu0 %v10176_v30 }
 0x78a   : > { %8854 = vmatpush3.msra.mxu1 %v10988_v48  ;;  %8865 = vmatpush3.msra.mxu0 %v10992_v49 }
 0x78b   : > { %8855 = vmatprep.subr.mxu1 %v10176_v30  ;;  %8866 = vmatprep.subr.mxu0 %v10176_v30 }
 0x78c   : > { %8856 = vmatpush3.msra.mxu1 %v10998_v50  ;;  %8867 = vmatpush3.msra.mxu0 %v11002_v51 }
 0x78d   : > { %8857 = vmatprep.subr.mxu1 %v10176_v30  ;;  %8868 = vmatprep.subr.mxu0 %v10176_v30 }
 0x78e   : > { %8858 = vmatpush3.msra.mxu1 %v11008_v52  ;;  %8859 = vmatprep.mubr.msk.f32.mxu1 %vm10177_vm6, %v10176_v30 }
 0x78f   : > { %8869 = vmatpush3.msra.mxu0 %v11014_v53  ;;  %8870 = vmatprep.mubr.msk.f32.mxu0 %vm10177_vm6, %v10176_v30 }
 0x790   : > { %8860 = vmatmul.mubr.msk.f32.vlgmr.msra.gmra.mxu1 %vm1810_vm8, %v3641_v21  ;;  %8871 = vmatmul.mubr.msk.f32.vlgmr.msra.gmra.mxu0 %vm1810_vm8, %v3641_v21 }
 0x791   : > { %8873 = vmatprep.subr.mxu1 %v10176_v30  ;;  %8884 = vmatprep.subr.mxu0 %v10176_v30 }
 0x792   : > { %8874 = vmatpush3.msra.mxu1 %v11024_v34  ;;  %8885 = vmatpush3.msra.mxu0 %v11028_v54 }
 0x793   : > { %8875 = vmatprep.subr.mxu1 %v10176_v30  ;;  %8886 = vmatprep.subr.mxu0 %v10176_v30 }
 0x794   : > { %8876 = vmatpush3.msra.mxu1 %v11034_v36  ;;  %8887 = vmatpush3.msra.mxu0 %v11038_v6 }
 0x795   : > { %8877 = vmatprep.subr.mxu1 %v10176_v30  ;;  %8888 = vmatprep.subr.mxu0 %v10176_v30 }
 0x796   : > { %8878 = vmatpush3.msra.mxu1 %v11044_v7  ;;  %8889 = vmatpush3.msra.mxu0 %v11048_v18 }
 0x797   : > { %8879 = vmatprep.subr.mxu1 %v10176_v30  ;;  %8890 = vmatprep.subr.mxu0 %v10176_v30 }
 0x798   : > { %8880 = vmatpush3.msra.mxu1 %v11054_v12  ;;  %8891 = vmatpush3.msra.mxu0 %v11058_v22 }
 0x799   : > { %8881 = vmatprep.mubr.msk.f32.mxu1 %vm10177_vm6, %v10176_v30  ;;  %8892 = vmatprep.mubr.msk.f32.mxu0 %vm10177_vm6, %v10176_v30 }
 0x79a   : > { %8895 = vmatprep.subr.mxu1 %v10176_v30  ;;  %8906 = vmatprep.subr.mxu0 %v10176_v30 }
 0x847   : > { %v3710_v38 = vpop.f32.mrf.mxu1  ;;  %v3799_v14 = vpop.f32.mrf.mxu0 }
 0x848   : > { %v3715_v26 = vrot.slane %v3710_v38, 3  ;;  %v3716_v43 = vrot.slane %v3710_v38, 4  ;;  %v3804_v44 = vrot.slane %v3799_v14, 3  ;;  %v3805_v45 = vrot.slane %v3799_v14, 4 }
 0x849   : > { %v8839_v37 = vpop.f32.mrf.mxu1  ;;  %v8850_v55 = vpop.f32.mrf.mxu0 }
 0x84a   : > { %v3719_v56 = vadd.f32 %v3715_v26, %v10761_v39  ;;  %v3720_v57 = vadd.f32 %v3716_v43, %v10765_v41  ;;  %v3808_v58 = vadd.f32 %v3804_v44, %v10763_v40  ;;  %v3809_v59 = vadd.f32 %v3805_v45, %v10767_v42 }
 0x84c   : > { %v8032_v62 = vmul.f32 -1.442695, %v3719_v56  ;;  %v8033_v60 = vmul.f32 -1.442695, %v3720_v57  ;;  %v8035_v61 = vmul.f32 -1.442695, %v3808_v58 }
 0x84d   : > { %v8036_v27 = vmul.f32 -1.442695, %v3809_v59 }
 0x84e   : > { %9550 = vpow2.f32 %v8032_v62 }
 0x84f   : > { %9552 = vpow2.f32 %v8033_v60 }
 0x850   : > { %9554 = vpow2.f32 %v8035_v61  ;;  %v3888_v1 = vpop.f32.mrf.mxu1  ;;  %v3967_v28 = vpop.f32.mrf.mxu0 }
 0x851   : > { %9556 = vpow2.f32 %v8036_v27  ;;  %v3972_v2 = vrot.slane %v3967_v28, 3  ;;  %v3893_v3 = vrot.slane %v3888_v1, 3  ;;  %v3973_v63 = vrot.slane %v3967_v28, 4 }
 0x852   : > { %v8861_v20 = vpop.f32.mrf.mxu1  ;;  %v8872_v33 = vpop.f32.mrf.mxu0  ;;  %v3894_v23 = vrot.slane %v3888_v1, 4  ;;  %v3992_v27 = vrot.slane %v11077_v4, 7 }
 0x853   : > { %v3976_v0 = vadd.f32 %v3972_v2, %v10773_v35  ;;  %v3977_v9 = vadd.f32 %v3973_v63, %v10775_v8  ;;  %v3897_v15 = vadd.f32 %v3893_v3, %v10777_v13  ;;  %v3993_v3 = vrot.slane %v11079_v5, 7 }
 0x854   : > { %v3898_v29 = vadd.f32 %v3894_v23, %v10780_v19 }
 0x855   : > { %v8039_v21 = vmul.f32 -1.442695, %v3976_v0  ;;  %v8040_v38 = vmul.f32 -1.442695, %v3977_v9  ;;  %9558 = vtanh.f32 %v3897_v15 }
 0x856   : > { %9560 = vtanh.f32 %v3898_v29 }
 0x857   : > { %9562 = vpow2.f32 %v8039_v21 }
 0x858   : > { %9564 = vpow2.f32 %v8040_v38 }
 0x85b   : > { %v9551_v14 = vpop.eup %9550 }
 0x85c   : > { %v9553_v26 = vpop.eup %9552  ;;  %v3727_v43 = vadd.f32 1.0, %v9551_v14 }
 0x85d   : > { %v9555_v44 = vpop.eup %9554  ;;  %v3728_v45 = vadd.f32 1.0, %v9553_v26 }
 0x85e   : > { %v9557_v37 = vpop.eup %9556  ;;  %9566 = vrcp.f32 %v3727_v43  ;;  %v3816_v55 = vadd.f32 1.0, %v9555_v44 }
 0x85f   : > { %9568 = vrcp.f32 %v3728_v45  ;;  %v3817_v56 = vadd.f32 1.0, %v9557_v37 }
 0x860   : > { %9570 = vrcp.f32 %v3816_v55 }
 0x861   : > { %9572 = vrcp.f32 %v3817_v56 }
 0x862   : > { %v9559_v57 = vpop.eup %9558 }
 0x863   : > { %v9561_v58 = vpop.eup %9560 }
 0x864   : > { %v9563_v59 = vpop.eup %9562 }
 0x865   : > { %v9565_v62 = vpop.eup %9564  ;;  %v3984_v28 = vadd.f32 1.0, %v9563_v59 }
 0x866   : > { %v3985_v20 = vadd.f32 1.0, %v9565_v62 }
 0x867   : > { %9574 = vrcp.f32 %v3984_v28 }
 0x868   : > { %9576 = vrcp.f32 %v3985_v20 }
 0x86b   : > { %v9567_v60 = vpop.eup %9566 }
 0x86c   : > { %v9569_v61 = vpop.eup %9568  ;;  %v3998_v1 = vmul.f32 %v9567_v60, %v9559_v57 }
 0x86d   : > { %v9571_v2 = vpop.eup %9570  ;;  %v3999_v63 = vmul.f32 %v9569_v61, %v9561_v58 }
 0x86e   : > { %v9573_v33 = vpop.eup %9572  ;;  %v3996_v23 = vmul.f32 %v9571_v2, %v3992_v27 }
 0x86f   : > { %v3997_v0 = vmul.f32 %v9573_v33, %v3993_v3 }
 0x870   : > { %v11138_v9 = vadd.f32 %v3998_v1, %v3996_v23 }
 0x871   : > { %v11140_v15 = vadd.f32 %v3999_v63, %v3997_v0 }
 0x872   : > { %9578 = vtanh.f32 %v11138_v9 }
 0x873   : > { %9580 = vtanh.f32 %v11140_v15 }
 0x874   : > { %v9575_v4 = vpop.eup %9574 }
 0x875   : > { %v9577_v29 = vpop.eup %9576 }
 0x87f   : > { %v9579_v21 = vpop.eup %9578 }
 0x880   : > { %v9581_v38 = vpop.eup %9580  ;;  %v4004_v5 = vmul.f32 %v9579_v21, %v9575_v4 }
 0x881   : > { %v4005_v14 = vmul.f32 %v9581_v38, %v9577_v29 }
 0x882   : > { %v4008_v26 = vrot.slane %v4004_v5, 5 }
 0x883   : > { %v4009_v43 = vrot.slane %v4005_v14, 4 }
 0x885   : > { %v4010_v44 = vsel %vm2169_vm7, %v4009_v43, %v4008_v26 }
 0x886   : > { %8882 = vmatmul.mubr.msk.f32.vlgmr.msra.gmra.mxu1 %vm1810_vm8, %v4010_v44  ;;  %8893 = vmatmul.mubr.msk.f32.vlgmr.msra.gmra.mxu0 %vm1810_vm8, %v4010_v44 }
 0x887   : > { %8896 = vmatpush3.msra.mxu1 %v10978_v46  ;;  %8907 = vmatpush3.msra.mxu0 %v10982_v47 }
 0x888   : > { %8897 = vmatprep.subr.mxu1 %v10176_v30  ;;  %8908 = vmatprep.subr.mxu0 %v10176_v30 }
 0x889   : > { %8898 = vmatpush3.msra.mxu1 %v10988_v48  ;;  %8909 = vmatpush3.msra.mxu0 %v10992_v49 }
 0x88a   : > { %8899 = vmatprep.subr.mxu1 %v10176_v30  ;;  %8910 = vmatprep.subr.mxu0 %v10176_v30 }
 0x88b   : > { %8900 = vmatpush3.msra.mxu1 %v10998_v50  ;;  %8911 = vmatpush3.msra.mxu0 %v11002_v51 }
 0x88c   : > { %8901 = vmatprep.subr.mxu1 %v10176_v30  ;;  %8912 = vmatprep.subr.mxu0 %v10176_v30 }
 0x88d   : > { %8902 = vmatpush3.msra.mxu1 %v11008_v52  ;;  %8903 = vmatprep.mubr.msk.f32.mxu1 %vm10177_vm6, %v10176_v30 }
 0x88e   : > { %8913 = vmatpush3.msra.mxu0 %v11014_v53  ;;  %8914 = vmatprep.mubr.msk.f32.mxu0 %vm10177_vm6, %v10176_v30 }
 0x88f   : > { %8904 = vmatmul.mubr.msk.f32.vlgmr.msra.gmra.mxu1 %vm1810_vm8, %v4010_v44  ;;  %8915 = vmatmul.mubr.msk.f32.vlgmr.msra.gmra.mxu0 %vm1810_vm8, %v4010_v44 }
 0x890   : > { %8917 = vmatprep.subr.mxu1 %v10176_v30  ;;  %8928 = vmatprep.subr.mxu0 %v10176_v30 }
 0x891   : > { %8918 = vmatpush3.msra.mxu1 %v11024_v34  ;;  %8929 = vmatpush3.msra.mxu0 %v11028_v54 }
 0x892   : > { %8919 = vmatprep.subr.mxu1 %v10176_v30  ;;  %8930 = vmatprep.subr.mxu0 %v10176_v30 }
 0x893   : > { %8920 = vmatpush3.msra.mxu1 %v11034_v36  ;;  %8931 = vmatpush3.msra.mxu0 %v11038_v6 }
 0x894   : > { %8921 = vmatprep.subr.mxu1 %v10176_v30  ;;  %8932 = vmatprep.subr.mxu0 %v10176_v30 }
 0x895   : > { %8922 = vmatpush3.msra.mxu1 %v11044_v7  ;;  %8933 = vmatpush3.msra.mxu0 %v11048_v18 }
 0x896   : > { %8923 = vmatprep.subr.mxu1 %v10176_v30  ;;  %8934 = vmatprep.subr.mxu0 %v10176_v30 }
 0x897   : > { %8924 = vmatpush3.msra.mxu1 %v11054_v12  ;;  %8935 = vmatpush3.msra.mxu0 %v11058_v22 }
 0x898   : > { %8925 = vmatprep.mubr.msk.f32.mxu1 %vm10177_vm6, %v10176_v30  ;;  %8936 = vmatprep.mubr.msk.f32.mxu0 %vm10177_vm6, %v10176_v30 }
 0x899   : > { %8939 = vmatprep.subr.mxu1 %v10176_v30  ;;  %8950 = vmatprep.subr.mxu0 %v10176_v30 }
 0x946   : > { %v4079_v45 = vpop.f32.mrf.mxu1  ;;  %v4168_v37 = vpop.f32.mrf.mxu0 }
 0x947   : > { %v4084_v55 = vrot.slane %v4079_v45, 2  ;;  %v4085_v56 = vrot.slane %v4079_v45, 3  ;;  %v4173_v57 = vrot.slane %v4168_v37, 2  ;;  %v4174_v58 = vrot.slane %v4168_v37, 3 }
 0x948   : > { %v8883_v59 = vpop.f32.mrf.mxu1  ;;  %v8894_v62 = vpop.f32.mrf.mxu0 }
 0x949   : > { %v4088_v60 = vadd.f32 %v4084_v55, %v10761_v39  ;;  %v4089_v61 = vadd.f32 %v4085_v56, %v10765_v41  ;;  %v4177_v27 = vadd.f32 %v4173_v57, %v10763_v40  ;;  %v4178_v1 = vadd.f32 %v4174_v58, %v10767_v42 }
 0x94b   : > { %v8042_v28 = vmul.f32 -1.442695, %v4088_v60  ;;  %v8043_v2 = vmul.f32 -1.442695, %v4089_v61  ;;  %v8045_v3 = vmul.f32 -1.442695, %v4177_v27 }
 0x94c   : > { %v8046_v63 = vmul.f32 -1.442695, %v4178_v1 }
 0x94d   : > { %9582 = vpow2.f32 %v8042_v28 }
 0x94e   : > { %9584 = vpow2.f32 %v8043_v2 }
 0x94f   : > { %9586 = vpow2.f32 %v8045_v3  ;;  %v4257_v20 = vpop.f32.mrf.mxu1  ;;  %v4336_v33 = vpop.f32.mrf.mxu0 }
 0x950   : > { %9588 = vpow2.f32 %v8046_v63  ;;  %v4341_v23 = vrot.slane %v4336_v33, 2  ;;  %v4262_v0 = vrot.slane %v4257_v20, 2  ;;  %v4342_v4 = vrot.slane %v4336_v33, 3 }
 0x951   : > { %v8905_v29 = vpop.f32.mrf.mxu1  ;;  %v8916_v21 = vpop.f32.mrf.mxu0  ;;  %v4263_v38 = vrot.slane %v4257_v20, 3  ;;  %v4361_v63 = vrot.slane %v11138_v9, 7 }
 0x952   : > { %v4345_v5 = vadd.f32 %v4341_v23, %v10773_v35  ;;  %v4346_v14 = vadd.f32 %v4342_v4, %v10775_v8  ;;  %v4266_v26 = vadd.f32 %v4262_v0, %v10777_v13  ;;  %v4362_v0 = vrot.slane %v11140_v15, 7 }
 0x953   : > { %v4267_v43 = vadd.f32 %v4263_v38, %v10780_v19 }
 0x954   : > { %v8049_v44 = vmul.f32 -1.442695, %v4345_v5  ;;  %v8050_v45 = vmul.f32 -1.442695, %v4346_v14  ;;  %9590 = vtanh.f32 %v4266_v26 }
 0x955   : > { %9592 = vtanh.f32 %v4267_v43 }
 0x956   : > { %9594 = vpow2.f32 %v8049_v44 }
 0x957   : > { %9596 = vpow2.f32 %v8050_v45 }
 0x95a   : > { %v9583_v37 = vpop.eup %9582 }
 0x95b   : > { %v9585_v55 = vpop.eup %9584  ;;  %v4096_v56 = vadd.f32 1.0, %v9583_v37 }
 0x95c   : > { %v9587_v57 = vpop.eup %9586  ;;  %v4097_v58 = vadd.f32 1.0, %v9585_v55 }
 0x95d   : > { %v9589_v59 = vpop.eup %9588  ;;  %9598 = vrcp.f32 %v4096_v56  ;;  %v4185_v62 = vadd.f32 1.0, %v9587_v57 }
 0x95e   : > { %9600 = vrcp.f32 %v4097_v58  ;;  %v4186_v60 = vadd.f32 1.0, %v9589_v59 }
 0x95f   : > { %9602 = vrcp.f32 %v4185_v62 }
 0x960   : > { %9604 = vrcp.f32 %v4186_v60 }
 0x961   : > { %v9591_v61 = vpop.eup %9590 }
 0x962   : > { %v9593_v27 = vpop.eup %9592 }
 0x963   : > { %v9595_v1 = vpop.eup %9594 }
 0x964   : > { %v9597_v28 = vpop.eup %9596  ;;  %v4353_v33 = vadd.f32 1.0, %v9595_v1 }
 0x965   : > { %v4354_v29 = vadd.f32 1.0, %v9597_v28 }
 0x966   : > { %9606 = vrcp.f32 %v4353_v33 }
 0x967   : > { %9608 = vrcp.f32 %v4354_v29 }
 0x96a   : > { %v9599_v2 = vpop.eup %9598 }
 0x96b   : > { %v9601_v3 = vpop.eup %9600  ;;  %v4367_v20 = vmul.f32 %v9599_v2, %v9591_v61 }
 0x96c   : > { %v9603_v23 = vpop.eup %9602  ;;  %v4368_v4 = vmul.f32 %v9601_v3, %v9593_v27 }
 0x96d   : > { %v9605_v21 = vpop.eup %9604  ;;  %v4365_v38 = vmul.f32 %v9603_v23, %v4361_v63 }
 0x96e   : > { %v4366_v5 = vmul.f32 %v9605_v21, %v4362_v0 }
 0x96f   : > { %v11199_v14 = vadd.f32 %v4367_v20, %v4365_v38 }
 0x970   : > { %v11201_v26 = vadd.f32 %v4368_v4, %v4366_v5 }
 0x971   : > { %9610 = vtanh.f32 %v11199_v14 }
 0x972   : > { %9612 = vtanh.f32 %v11201_v26 }
 0x973   : > { %v9607_v9 = vpop.eup %9606 }
 0x974   : > { %v9609_v43 = vpop.eup %9608 }
 0x97e   : > { %v9611_v44 = vpop.eup %9610 }
 0x97f   : > { %v9613_v45 = vpop.eup %9612  ;;  %v4373_v15 = vmul.f32 %v9611_v44, %v9607_v9 }
 0x980   : > { %v4374_v37 = vmul.f32 %v9613_v45, %v9609_v43 }
 0x981   : > { %v4377_v55 = vrot.slane %v4373_v15, 6 }
 0x982   : > { %v4378_v56 = vrot.slane %v4374_v37, 5 }
 0x984   : > { %v4379_v57 = vsel %vm2169_vm7, %v4378_v56, %v4377_v55 }
 0x985   : > { %8926 = vmatmul.mubr.msk.f32.vlgmr.msra.gmra.mxu1 %vm1810_vm8, %v4379_v57  ;;  %8937 = vmatmul.mubr.msk.f32.vlgmr.msra.gmra.mxu0 %vm1810_vm8, %v4379_v57 }
 0x986   : > { %8940 = vmatpush3.msra.mxu1 %v10978_v46  ;;  %8951 = vmatpush3.msra.mxu0 %v10982_v47 }
 0x987   : > { %8941 = vmatprep.subr.mxu1 %v10176_v30  ;;  %8952 = vmatprep.subr.mxu0 %v10176_v30 }
 0x988   : > { %8942 = vmatpush3.msra.mxu1 %v10988_v48  ;;  %8953 = vmatpush3.msra.mxu0 %v10992_v49 }
 0x989   : > { %8943 = vmatprep.subr.mxu1 %v10176_v30  ;;  %8954 = vmatprep.subr.mxu0 %v10176_v30 }
 0x98a   : > { %8944 = vmatpush3.msra.mxu1 %v10998_v50  ;;  %8955 = vmatpush3.msra.mxu0 %v11002_v51 }
 0x98b   : > { %8945 = vmatprep.subr.mxu1 %v10176_v30  ;;  %8956 = vmatprep.subr.mxu0 %v10176_v30 }
 0x98c   : > { %8946 = vmatpush3.msra.mxu1 %v11008_v52  ;;  %8947 = vmatprep.mubr.msk.f32.mxu1 %vm10177_vm6, %v10176_v30 }
 0x98d   : > { %8957 = vmatpush3.msra.mxu0 %v11014_v53  ;;  %8958 = vmatprep.mubr.msk.f32.mxu0 %vm10177_vm6, %v10176_v30 }
 0x98e   : > { %8948 = vmatmul.mubr.msk.f32.vlgmr.msra.gmra.mxu1 %vm1810_vm8, %v4379_v57  ;;  %8959 = vmatmul.mubr.msk.f32.vlgmr.msra.gmra.mxu0 %vm1810_vm8, %v4379_v57 }
 0x98f   : > { %8961 = vmatprep.subr.mxu1 %v10176_v30  ;;  %8972 = vmatprep.subr.mxu0 %v10176_v30 }
 0x990   : > { %8962 = vmatpush3.msra.mxu1 %v11024_v34  ;;  %8973 = vmatpush3.msra.mxu0 %v11028_v54 }
 0x991   : > { %8963 = vmatprep.subr.mxu1 %v10176_v30  ;;  %8974 = vmatprep.subr.mxu0 %v10176_v30 }
 0x992   : > { %8964 = vmatpush3.msra.mxu1 %v11034_v36  ;;  %8975 = vmatpush3.msra.mxu0 %v11038_v6 }
 0x993   : > { %8965 = vmatprep.subr.mxu1 %v10176_v30  ;;  %8976 = vmatprep.subr.mxu0 %v10176_v30 }
 0x994   : > { %8966 = vmatpush3.msra.mxu1 %v11044_v7  ;;  %8977 = vmatpush3.msra.mxu0 %v11048_v18 }
 0x995   : > { %8967 = vmatprep.subr.mxu1 %v10176_v30  ;;  %8978 = vmatprep.subr.mxu0 %v10176_v30 }
 0x996   : > { %8968 = vmatpush3.msra.mxu1 %v11054_v12  ;;  %8979 = vmatpush3.msra.mxu0 %v11058_v22 }
 0x997   : > { %8969 = vmatprep.mubr.msk.f32.mxu1 %vm10177_vm6, %v10176_v30  ;;  %8980 = vmatprep.mubr.msk.f32.mxu0 %vm10177_vm6, %v10176_v30 }
 0x998   : > { %8983 = vmatprep.subr.mxu1 %v10176_v30  ;;  %8994 = vmatprep.subr.mxu0 %v10176_v30 }
 0xa45   : > { %v4448_v58 = vpop.f32.mrf.mxu1  ;;  %v4537_v59 = vpop.f32.mrf.mxu0 }
 0xa46   : > { %v4453_v62 = vrot.slane %v4448_v58, 1  ;;  %v4454_v60 = vrot.slane %v4448_v58, 2  ;;  %v4542_v61 = vrot.slane %v4537_v59, 1  ;;  %v4543_v27 = vrot.slane %v4537_v59, 2 }
 0xa47   : > { %v8927_v1 = vpop.f32.mrf.mxu1  ;;  %v8938_v28 = vpop.f32.mrf.mxu0 }
 0xa48   : > { %v4457_v2 = vadd.f32 %v4453_v62, %v10761_v39  ;;  %v4458_v3 = vadd.f32 %v4454_v60, %v10765_v41  ;;  %v4546_v63 = vadd.f32 %v4542_v61, %v10763_v40  ;;  %v4547_v20 = vadd.f32 %v4543_v27, %v10767_v42 }
 0xa49   : > { %v4730_v28 = vrot.slane %v11199_v14, 7 }
 0xa4a   : > { %v8052_v33 = vmul.f32 -1.442695, %v4457_v2  ;;  %v8053_v23 = vmul.f32 -1.442695, %v4458_v3  ;;  %v8055_v0 = vmul.f32 -1.442695, %v4546_v63 }
 0xa4b   : > { %v8056_v4 = vmul.f32 -1.442695, %v4547_v20  ;;  %v4731_v20 = vrot.slane %v11201_v26, 7 }
 0xa4c   : > { %9614 = vpow2.f32 %v8052_v33 }
 0xa4d   : > { %9616 = vpow2.f32 %v8053_v23 }
 0xa4e   : > { %9618 = vpow2.f32 %v8055_v0  ;;  %v4626_v29 = vpop.f32.mrf.mxu1  ;;  %v4705_v21 = vpop.f32.mrf.mxu0 }
 0xa4f   : > { %9620 = vpow2.f32 %v8056_v4  ;;  %v4710_v38 = vrot.slane %v4705_v21, 1  ;;  %v4631_v5 = vrot.slane %v4626_v29, 1  ;;  %v4711_v9 = vrot.slane %v4705_v21, 2 }
 0xa50   : > { %v8949_v39 = vpop.f32.mrf.mxu1  ;;  %v8960_v43 = vpop.f32.mrf.mxu0  ;;  %v4632_v41 = vrot.slane %v4626_v29, 2 }
 0xa51   : > { %v4714_v40 = vadd.f32 %v4710_v38, %v10773_v35  ;;  %v4715_v42 = vadd.f32 %v4711_v9, %v10775_v8  ;;  %v4635_v44 = vadd.f32 %v4631_v5, %v10777_v13 }
 0xa52   : > { %v4636_v45 = vadd.f32 %v4632_v41, %v10780_v19 }
 0xa53   : > { %v8059_v15 = vmul.f32 -1.442695, %v4714_v40  ;;  %v8060_v37 = vmul.f32 -1.442695, %v4715_v42  ;;  %9622 = vtanh.f32 %v4635_v44 }
 0xa54   : > { %9624 = vtanh.f32 %v4636_v45 }
 0xa55   : > { %9626 = vpow2.f32 %v8059_v15 }
 0xa56   : > { %9628 = vpow2.f32 %v8060_v37 }
 0xa59   : > { %v9615_v55 = vpop.eup %9614 }
 0xa5a   : > { %v9617_v56 = vpop.eup %9616  ;;  %v4465_v57 = vadd.f32 1.0, %v9615_v55 }
 0xa5b   : > { %v9619_v58 = vpop.eup %9618  ;;  %v4466_v59 = vadd.f32 1.0, %v9617_v56 }
 0xa5c   : > { %v9621_v62 = vpop.eup %9620  ;;  %9630 = vrcp.f32 %v4465_v57  ;;  %v4554_v35 = vadd.f32 1.0, %v9619_v58 }
 0xa5d   : > { %9632 = vrcp.f32 %v4466_v59  ;;  %v4555_v8 = vadd.f32 1.0, %v9621_v62 }
 0xa5e   : > { %9634 = vrcp.f32 %v4554_v35 }
 0xa5f   : > { %9636 = vrcp.f32 %v4555_v8 }
 0xa60   : > { %v9623_v13 = vpop.eup %9622 }
 0xa61   : > { %v9625_v19 = vpop.eup %9624 }
 0xa62   : > { %v9627_v60 = vpop.eup %9626 }
 0xa63   : > { %v9629_v61 = vpop.eup %9628  ;;  %v4722_v3 = vadd.f32 1.0, %v9627_v60 }
 0xa64   : > { %v4723_v23 = vadd.f32 1.0, %v9629_v61 }
 0xa65   : > { %9638 = vrcp.f32 %v4722_v3 }
 0xa66   : > { %9640 = vrcp.f32 %v4723_v23 }
 0xa69   : > { %v9631_v27 = vpop.eup %9630 }
 0xa6a   : > { %v9633_v1 = vpop.eup %9632  ;;  %v4736_v2 = vmul.f32 %v9631_v27, %v9623_v13 }
 0xa6b   : > { %v9635_v63 = vpop.eup %9634  ;;  %v4737_v33 = vmul.f32 %v9633_v1, %v9625_v19 }
 0xa6c   : > { %v9637_v0 = vpop.eup %9636  ;;  %v4734_v4 = vmul.f32 %v9635_v63, %v4730_v28 }
 0xa6d   : > { %v4735_v29 = vmul.f32 %v9637_v0, %v4731_v20 }
 0xa6e   : > { %v11260_v21 = vadd.f32 %v4736_v2, %v4734_v4 }
 0xa6f   : > { %v11262_v38 = vadd.f32 %v4737_v33, %v4735_v29 }
 0xa70   : > { %9642 = vtanh.f32 %v11260_v21  ;;  %v5095_v33 = vrot.slane %v11260_v21, 7 }
 0xa71   : > { %9644 = vtanh.f32 %v11262_v38  ;;  %v5096_v29 = vrot.slane %v11262_v38, 7 }
 0xa72   : > { %v9639_v14 = vpop.eup %9638 }
 0xa73   : > { %v9641_v5 = vpop.eup %9640 }
 0xa7d   : > { %v9643_v9 = vpop.eup %9642 }
 0xa7e   : > { %v9645_v39 = vpop.eup %9644  ;;  %v4742_v26 = vmul.f32 %v9643_v9, %v9639_v14 }
 0xa7f   : > { %v4743_v43 = vmul.f32 %v9645_v39, %v9641_v5 }
 0xa80   : > { %v4746_v41 = vrot.slane %v4742_v26, 7 }
 0xa81   : > { %v4747_v40 = vrot.slane %v4743_v43, 6 }
 0xa83   : > { %v4748_v42 = vsel %vm2169_vm7, %v4747_v40, %v4746_v41 }
 0xa84   : > { %8970 = vmatmul.mubr.msk.f32.vlgmr.msra.gmra.mxu1 %vm1810_vm8, %v4748_v42  ;;  %8981 = vmatmul.mubr.msk.f32.vlgmr.msra.gmra.mxu0 %vm1810_vm8, %v4748_v42 }
 0xa85   : > { %8984 = vmatpush3.msra.mxu1 %v10978_v46  ;;  %8995 = vmatpush3.msra.mxu0 %v10982_v47 }
 0xa86   : > { %8985 = vmatprep.subr.mxu1 %v10176_v30  ;;  %8996 = vmatprep.subr.mxu0 %v10176_v30 }
 0xa87   : > { %8986 = vmatpush3.msra.mxu1 %v10988_v48  ;;  %8997 = vmatpush3.msra.mxu0 %v10992_v49 }
 0xa88   : > { %8987 = vmatprep.subr.mxu1 %v10176_v30  ;;  %8998 = vmatprep.subr.mxu0 %v10176_v30 }
 0xa89   : > { %8988 = vmatpush3.msra.mxu1 %v10998_v50  ;;  %8999 = vmatpush3.msra.mxu0 %v11002_v51 }
 0xa8a   : > { %8989 = vmatprep.subr.mxu1 %v10176_v30  ;;  %9000 = vmatprep.subr.mxu0 %v10176_v30 }
 0xa8b   : > { %8990 = vmatpush3.msra.mxu1 %v11008_v52  ;;  %8991 = vmatprep.mubr.msk.f32.mxu1 %vm10177_vm6, %v10176_v30 }
 0xa8c   : > { %9001 = vmatpush3.msra.mxu0 %v11014_v53  ;;  %9002 = vmatprep.mubr.msk.f32.mxu0 %vm10177_vm6, %v10176_v30 }
 0xa8d   : > { %8992 = vmatmul.mubr.msk.f32.vlgmr.msra.gmra.mxu1 %vm1810_vm8, %v4748_v42  ;;  %9003 = vmatmul.mubr.msk.f32.vlgmr.msra.gmra.mxu0 %vm1810_vm8, %v4748_v42 }
 0xa8e   : > { %9005 = vmatprep.subr.mxu1 %v10176_v30  ;;  %9016 = vmatprep.subr.mxu0 %v10176_v30 }
 0xa8f   : > { %9006 = vmatpush3.msra.mxu1 %v11024_v34  ;;  %9017 = vmatpush3.msra.mxu0 %v11028_v54 }
 0xa90   : > { %9007 = vmatprep.subr.mxu1 %v10176_v30  ;;  %9018 = vmatprep.subr.mxu0 %v10176_v30 }
 0xa91   : > { %9008 = vmatpush3.msra.mxu1 %v11034_v36  ;;  %9019 = vmatpush3.msra.mxu0 %v11038_v6 }
 0xa92   : > { %9009 = vmatprep.subr.mxu1 %v10176_v30  ;;  %9020 = vmatprep.subr.mxu0 %v10176_v30 }
 0xa93   : > { %9010 = vmatpush3.msra.mxu1 %v11044_v7  ;;  %9021 = vmatpush3.msra.mxu0 %v11048_v18 }
 0xa94   : > { %9011 = vmatprep.subr.mxu1 %v10176_v30  ;;  %9022 = vmatprep.subr.mxu0 %v10176_v30 }
 0xa95   : > { %9012 = vmatpush3.msra.mxu1 %v11054_v12  ;;  %9023 = vmatpush3.msra.mxu0 %v11058_v22 }
 0xa96   : > { %9013 = vmatprep.mubr.msk.f32.mxu1 %vm10177_vm6, %v10176_v30  ;;  %9024 = vmatprep.mubr.msk.f32.mxu0 %vm10177_vm6, %v10176_v30 }
 0xa97   : > { %9027 = vmatprep.subr.mxu1 %v10176_v30  ;;  %9038 = vmatprep.subr.mxu0 %v10176_v30 }
 0xb44   : > { %v4817_v46 = vpop.f32.mrf.mxu1  ;;  %v4905_v47 = vpop.f32.mrf.mxu0 }
 0xb45   : > { %v4822_v48 = vrot.slane %v4817_v46, 1  ;;  %v4825_v49 = vadd.f32 %v4817_v46, %v10743_v10  ;;  %v4910_v50 = vrot.slane %v4905_v47, 1  ;;  %v4913_v51 = vadd.f32 %v4905_v47, %v10745_v11 }
 0xb46   : > { %v8971_v52 = vpop.f32.mrf.mxu1  ;;  %v8982_v53 = vpop.f32.mrf.mxu0 }
 0xb47   : > { %v4826_v34 = vadd.f32 %v4822_v48, %v10747_v16  ;;  %v8062_v54 = vmul.f32 -1.442695, %v4825_v49  ;;  %v4914_v36 = vadd.f32 %v4910_v50, %v10749_v17  ;;  %v8065_v6 = vmul.f32 -1.442695, %v4913_v51  ;;  %v11331_v51 = vld [vmem:[%s10615_s28 + $0x58] sm:$0xff]  ;;  %v11341_v53 = vld [vmem:[%s10615_s28 + $0x50] sm:$0xff] }
 0xb48   : > { %v11335_v52 = vld [vmem:[%s10615_s28 + $0x78] sm:$0xff] }
 0xb49   : > { %9646 = vpow2.f32 %v8062_v54  ;;  %v8063_v7 = vmul.f32 -1.442695, %v4826_v34  ;;  %v8066_v18 = vmul.f32 -1.442695, %v4914_v36  ;;  %v11345_v34 = vld [vmem:[%s10615_s28 + $0x70] sm:$0xff]  ;;  %v11351_v54 = vld [vmem:[%s10615_s28 + $0x48] sm:$0xff] }
 0xb4a   : > { %9648 = vpow2.f32 %v8065_v6  ;;  %v11355_v36 = vld [vmem:[%s10615_s28 + $0x68] sm:$0xff]  ;;  %v11361_v6 = vld [vmem:[%s10615_s28 + $0x40] sm:$0xff] }
 0xb4b   : > { %9650 = vpow2.f32 %v8063_v7  ;;  %v11367_v7 = vld [vmem:[%s10615_s28 + $0x60] sm:$0xff] }
 0xb4c   : > { %9652 = vpow2.f32 %v8066_v18  ;;  %v11377_v18 = vld [vmem:[%s10615_s28 + $0x18] sm:$0xff] }
 0xb4d   : > { %v4993_v12 = vpop.f32.mrf.mxu1  ;;  %v5071_v22 = vpop.f32.mrf.mxu0 }
 0xb4e   : > { %v4998_v44 = vrot.slane %v4993_v12, 1  ;;  %v5076_v45 = vrot.slane %v5071_v22, 1  ;;  %v5079_v15 = vadd.f32 %v5071_v22, %v10755_v25  ;;  %v5001_v57 = vadd.f32 %v4993_v12, %v10753_v24  ;;  %v11381_v12 = vld [vmem:[%s10615_s28 + $0x38] sm:$0xff]  ;;  %v11387_v22 = vld [vmem:[%s10615_s28 + $0x10] sm:$0xff] }
 0xb4f   : > { %v8993_v37 = vpop.f32.mrf.mxu1  ;;  %v9004_v55 = vpop.f32.mrf.mxu0 }
 0xb50   : > { %v5080_v56 = vadd.f32 %v5076_v45, %v10759_v32  ;;  %v5002_v58 = vadd.f32 %v4998_v44, %v10757_v31  ;;  %v8069_v59 = vmul.f32 -1.442695, %v5079_v15  ;;  %9654 = vtanh.f32 %v5001_v57  ;;  %v11391_v44 = vld [vmem:[%s10615_s28 + $0x30] sm:$0xff]  ;;  %v11397_v45 = vld [vmem:[%s10615_s28 + $0x8] sm:$0xff]  ;;  %v11407_v37 = vld [vmem:[%s10615_s28] sm:$0xff] }
 0xb51   : > { %v11401_v15 = vld [vmem:[%s10615_s28 + $0x28] sm:$0xff]  ;;  %v11411_v55 = vld [vmem:[%s10615_s28 + $0x20] sm:$0xff] }
 0xb52   : > { %v8070_v62 = vmul.f32 -1.442695, %v5080_v56  ;;  %9656 = vtanh.f32 %v5002_v58 }
 0xb53   : > { %9658 = vpow2.f32 %v8069_v59 }
 0xb54   : > { %9660 = vpow2.f32 %v8070_v62 }
 0xb56   : > { %v9647_v35 = vpop.eup %9646 }
 0xb57   : > { %v9649_v8 = vpop.eup %9648  ;;  %v4833_v13 = vadd.f32 1.0, %v9647_v35 }
 0xb58   : > { %v9651_v19 = vpop.eup %9650  ;;  %v4921_v60 = vadd.f32 1.0, %v9649_v8 }
 0xb59   : > { %v9653_v61 = vpop.eup %9652  ;;  %v4834_v27 = vadd.f32 1.0, %v9651_v19  ;;  %9662 = vrcp.f32 %v4833_v13 }
 0xb5a   : > { %v4922_v1 = vadd.f32 1.0, %v9653_v61  ;;  %9664 = vrcp.f32 %v4921_v60 }
 0xb5b   : > { %9666 = vrcp.f32 %v4834_v27 }
 0xb5c   : > { %9668 = vrcp.f32 %v4922_v1 }
 0xb5d   : > { %v9655_v28 = vpop.eup %9654 }
 0xb5f   : > { %v9657_v2 = vpop.eup %9656 }
 0xb60   : > { %v9659_v3 = vpop.eup %9658 }
 0xb61   : > { %v9661_v63 = vpop.eup %9660  ;;  %v5087_v40 = vadd.f32 1.0, %v9659_v3 }
 0xb62   : > { %v5088_v5 = vadd.f32 1.0, %v9661_v63 }
 0xb64   : > { %9670 = vrcp.f32 %v5088_v5 }
 0xb66   : > { %v9663_v20 = vpop.eup %9662 }
 0xb67   : > { %v9665_v23 = vpop.eup %9664  ;;  %v5101_v0 = vmul.f32 %v9663_v20, %v9655_v28 }
 0xb68   : > { %v9667_v4 = vpop.eup %9666  ;;  %v5099_v14 = vmul.f32 %v9665_v23, %v5095_v33 }
 0xb69   : > { %v9669_v9 = vpop.eup %9668  ;;  %v5102_v39 = vmul.f32 %v9667_v4, %v9657_v2 }
 0xb6a   : > { %v5100_v26 = vmul.f32 %v9669_v9, %v5096_v29  ;;  %v11321_v43 = vadd.f32 %v5101_v0, %v5099_v14 }
 0xb6c   : > { %v11323_v41 = vadd.f32 %v5102_v39, %v5100_v26  ;;  %9672 = vtanh.f32 %v11321_v43 }
 0xb6e   : > { %9674 = vtanh.f32 %v11323_v41 }
 0xb6f   : > { %9676 = vrcp.f32 %v5087_v40 }
 0xb71   : > { %v9671_v21 = vpop.eup %9670 }
 0xb79   : > { %v9673_v38 = vpop.eup %9672 }
 0xb7b   : > { %v9675_v42 = vpop.eup %9674 }
 0xb7c   : > { %v5108_v46 = vmul.f32 %v9675_v42, %v9671_v21  ;;  %v9677_v47 = vpop.eup %9676 }
 0xb7d   : > { %v5107_v48 = vmul.f32 %v9677_v47, %v9673_v38 }
 0xb7e   : > { %v5111_v49 = vrot.slane %v5108_v46, 7 }
 0xb80   : > { %v5112_v50 = vsel %vm2169_vm7, %v5111_v49, %v5107_v48 }
 0xb81   : > { %9014 = vmatmul.mubr.msk.f32.vlgmr.msra.gmra.mxu1 %vm1810_vm8, %v5112_v50  ;;  %9025 = vmatmul.mubr.msk.f32.vlgmr.msra.gmra.mxu0 %vm1810_vm8, %v5112_v50 }
 0xb82   : > { %9028 = vmatpush3.msra.mxu1 %v11331_v51  ;;  %9039 = vmatpush3.msra.mxu0 %v11335_v52 }
 0xb83   : > { %9029 = vmatprep.subr.mxu1 %v10176_v30  ;;  %9040 = vmatprep.subr.mxu0 %v10176_v30 }
 0xb84   : > { %9030 = vmatpush3.msra.mxu1 %v11341_v53  ;;  %9041 = vmatpush3.msra.mxu0 %v11345_v34 }
 0xb85   : > { %9031 = vmatprep.subr.mxu1 %v10176_v30  ;;  %9042 = vmatprep.subr.mxu0 %v10176_v30 }
 0xb86   : > { %9032 = vmatpush3.msra.mxu1 %v11351_v54  ;;  %9043 = vmatpush3.msra.mxu0 %v11355_v36 }
 0xb87   : > { %9033 = vmatprep.subr.mxu1 %v10176_v30  ;;  %9044 = vmatprep.subr.mxu0 %v10176_v30 }
 0xb88   : > { %9034 = vmatpush3.msra.mxu1 %v11361_v6  ;;  %9035 = vmatprep.mubr.msk.f32.mxu1 %vm10177_vm6, %v10176_v30 }
 0xb89   : > { %9045 = vmatpush3.msra.mxu0 %v11367_v7  ;;  %9046 = vmatprep.mubr.msk.f32.mxu0 %vm10177_vm6, %v10176_v30 }
 0xb8a   : > { %9036 = vmatmul.mubr.msk.f32.vlgmr.msra.gmra.mxu1 %vm1810_vm8, %v5112_v50  ;;  %9047 = vmatmul.mubr.msk.f32.vlgmr.msra.gmra.mxu0 %vm1810_vm8, %v5112_v50 }
 0xb8b   : > { %9049 = vmatprep.subr.mxu1 %v10176_v30  ;;  %9060 = vmatprep.subr.mxu0 %v10176_v30 }
 0xb8c   : > { %9050 = vmatpush3.msra.mxu1 %v11377_v18  ;;  %9061 = vmatpush3.msra.mxu0 %v11381_v12 }
 0xb8d   : > { %9051 = vmatprep.subr.mxu1 %v10176_v30  ;;  %9062 = vmatprep.subr.mxu0 %v10176_v30 }
 0xb8e   : > { %9052 = vmatpush3.msra.mxu1 %v11387_v22  ;;  %9063 = vmatpush3.msra.mxu0 %v11391_v44 }
 0xb8f   : > { %9053 = vmatprep.subr.mxu1 %v10176_v30  ;;  %9064 = vmatprep.subr.mxu0 %v10176_v30 }
 0xb90   : > { %9054 = vmatpush3.msra.mxu1 %v11397_v45  ;;  %9065 = vmatpush3.msra.mxu0 %v11401_v15 }
 0xb91   : > { %9055 = vmatprep.subr.mxu1 %v10176_v30  ;;  %9066 = vmatprep.subr.mxu0 %v10176_v30 }
 0xb92   : > { %9056 = vmatpush3.msra.mxu1 %v11407_v37  ;;  %9067 = vmatpush3.msra.mxu0 %v11411_v55 }
 0xb93   : > { %9057 = vmatprep.mubr.msk.f32.mxu1 %vm10177_vm6, %v10176_v30  ;;  %9068 = vmatprep.mubr.msk.f32.mxu0 %vm10177_vm6, %v10176_v30 }
 0xb94   : > { %9071 = vmatprep.subr.mxu1 %v10176_v30  ;;  %9082 = vmatprep.subr.mxu0 %v10176_v30 }
 0xc41   : > { %v5181_v56 = vpop.f32.mrf.mxu1  ;;  %v5269_v57 = vpop.f32.mrf.mxu0 }
 0xc42   : > { %v5186_v58 = vrot.slane %v5181_v56, 7  ;;  %v5190_v59 = vadd.f32 %v5181_v56, %v10747_v16  ;;  %v5274_v62 = vrot.slane %v5269_v57, 7  ;;  %v5278_v35 = vadd.f32 %v5269_v57, %v10749_v17 }
 0xc43   : > { %v9015_v8 = vpop.f32.mrf.mxu1  ;;  %v9026_v13 = vpop.f32.mrf.mxu0 }
 0xc44   : > { %v5189_v19 = vadd.f32 %v5186_v58, %v10743_v10  ;;  %v8073_v60 = vmul.f32 -1.442695, %v5190_v59  ;;  %v5277_v61 = vadd.f32 %v5274_v62, %v10745_v11  ;;  %v8076_v27 = vmul.f32 -1.442695, %v5278_v35 }
 0xc45   : > { %v5460_v58 = vrot.slane %v11323_v41, 7  ;;  %v5459_v8 = vrot.slane %v11321_v43, 7 }
 0xc46   : > { %v8072_v1 = vmul.f32 -1.442695, %v5189_v19  ;;  %9678 = vpow2.f32 %v8073_v60  ;;  %v8075_v28 = vmul.f32 -1.442695, %v5277_v61 }
 0xc47   : > { %9680 = vpow2.f32 %v8076_v27 }
 0xc48   : > { %9682 = vpow2.f32 %v8072_v1 }
 0xc49   : > { %9684 = vpow2.f32 %v8075_v28 }
 0xc4a   : > { %v5357_v2 = vpop.f32.mrf.mxu1  ;;  %v5435_v3 = vpop.f32.mrf.mxu0 }
 0xc4b   : > { %v5362_v63 = vrot.slane %v5357_v2, 7  ;;  %v5440_v20 = vrot.slane %v5435_v3, 7  ;;  %v5444_v33 = vadd.f32 %v5435_v3, %v10759_v32  ;;  %v5366_v29 = vadd.f32 %v5357_v2, %v10757_v31 }
 0xc4c   : > { %v9037_v23 = vpop.f32.mrf.mxu1  ;;  %v9048_v0 = vpop.f32.mrf.mxu0 }
 0xc4d   : > { %v5443_v4 = vadd.f32 %v5440_v20, %v10755_v25  ;;  %v5365_v14 = vadd.f32 %v5362_v63, %v10753_v24  ;;  %v8080_v5 = vmul.f32 -1.442695, %v5444_v33  ;;  %9686 = vtanh.f32 %v5366_v29 }
 0xc4f   : > { %v8079_v9 = vmul.f32 -1.442695, %v5443_v4  ;;  %9688 = vtanh.f32 %v5365_v14 }
 0xc50   : > { %9690 = vpow2.f32 %v8080_v5 }
 0xc51   : > { %9692 = vpow2.f32 %v8079_v9 }
 0xc53   : > { %v9679_v39 = vpop.eup %9678 }
 0xc54   : > { %v9681_v26 = vpop.eup %9680  ;;  %v5198_v40 = vadd.f32 1.0, %v9679_v39 }
 0xc55   : > { %v9683_v21 = vpop.eup %9682  ;;  %v5286_v38 = vadd.f32 1.0, %v9681_v26 }
 0xc56   : > { %v9685_v42 = vpop.eup %9684  ;;  %v5197_v46 = vadd.f32 1.0, %v9683_v21  ;;  %9694 = vrcp.f32 %v5198_v40 }
 0xc57   : > { %v5285_v47 = vadd.f32 1.0, %v9685_v42  ;;  %9696 = vrcp.f32 %v5286_v38 }
 0xc58   : > { %9698 = vrcp.f32 %v5197_v46 }
 0xc59   : > { %9700 = vrcp.f32 %v5285_v47 }
 0xc5a   : > { %v9687_v48 = vpop.eup %9686 }
 0xc5c   : > { %v9689_v49 = vpop.eup %9688 }
 0xc5d   : > { %v9691_v50 = vpop.eup %9690 }
 0xc5e   : > { %v9693_v56 = vpop.eup %9692  ;;  %v5452_v2 = vadd.f32 1.0, %v9691_v50 }
 0xc5f   : > { %v5451_v19 = vadd.f32 1.0, %v9693_v56 }
 0xc61   : > { %9702 = vrcp.f32 %v5451_v19 }
 0xc63   : > { %v9695_v57 = vpop.eup %9694 }
 0xc64   : > { %v9697_v59 = vpop.eup %9696  ;;  %v5466_v62 = vmul.f32 %v9695_v57, %v9687_v48 }
 0xc65   : > { %v9699_v35 = vpop.eup %9698  ;;  %v5464_v13 = vmul.f32 %v9697_v59, %v5460_v58 }
 0xc66   : > { %v9701_v60 = vpop.eup %9700  ;;  %v5465_v61 = vmul.f32 %v9699_v35, %v9689_v49 }
 0xc67   : > { %v5463_v27 = vmul.f32 %v9701_v60, %v5459_v8  ;;  %v11430_v1 = vadd.f32 %v5466_v62, %v5464_v13 }
 0xc69   : > { %v11432_v28 = vadd.f32 %v5465_v61, %v5463_v27  ;;  %9704 = vtanh.f32 %v11430_v1 }
 0xc6b   : > { %9706 = vtanh.f32 %v11432_v28 }
 0xc6c   : > { %9708 = vrcp.f32 %v5452_v2 }
 0xc6e   : > { %v9703_v41 = vpop.eup %9702 }
 0xc76   : > { %v9705_v3 = vpop.eup %9704 }
 0xc78   : > { %v9707_v63 = vpop.eup %9706 }
 0xc79   : > { %v5471_v43 = vmul.f32 %v9707_v63, %v9703_v41  ;;  %v9709_v20 = vpop.eup %9708 }
 0xc7a   : > { %v5472_v33 = vmul.f32 %v9709_v20, %v9705_v3 }
 0xc7b   : > { %v5475_v23 = vrot.slane %v5471_v43, 1 }
 0xc7d   : > { %v5476_v0 = vsel %vm2169_vm7, %v5472_v33, %v5475_v23 }
 0xc7e   : > { %9058 = vmatmul.mubr.msk.f32.vlgmr.msra.gmra.mxu1 %vm1810_vm8, %v5476_v0  ;;  %9069 = vmatmul.mubr.msk.f32.vlgmr.msra.gmra.mxu0 %vm1810_vm8, %v5476_v0 }
 0xc7f   : > { %9072 = vmatpush3.msra.mxu1 %v11331_v51  ;;  %9083 = vmatpush3.msra.mxu0 %v11335_v52 }
 0xc80   : > { %9073 = vmatprep.subr.mxu1 %v10176_v30  ;;  %9084 = vmatprep.subr.mxu0 %v10176_v30 }
 0xc81   : > { %9074 = vmatpush3.msra.mxu1 %v11341_v53  ;;  %9085 = vmatpush3.msra.mxu0 %v11345_v34 }
 0xc82   : > { %9075 = vmatprep.subr.mxu1 %v10176_v30  ;;  %9086 = vmatprep.subr.mxu0 %v10176_v30 }
 0xc83   : > { %9076 = vmatpush3.msra.mxu1 %v11351_v54  ;;  %9087 = vmatpush3.msra.mxu0 %v11355_v36 }
 0xc84   : > { %9077 = vmatprep.subr.mxu1 %v10176_v30  ;;  %9088 = vmatprep.subr.mxu0 %v10176_v30 }
 0xc85   : > { %9078 = vmatpush3.msra.mxu1 %v11361_v6  ;;  %9079 = vmatprep.mubr.msk.f32.mxu1 %vm10177_vm6, %v10176_v30 }
 0xc86   : > { %9089 = vmatpush3.msra.mxu0 %v11367_v7  ;;  %9090 = vmatprep.mubr.msk.f32.mxu0 %vm10177_vm6, %v10176_v30 }
 0xc87   : > { %9080 = vmatmul.mubr.msk.f32.vlgmr.msra.gmra.mxu1 %vm1810_vm8, %v5476_v0  ;;  %9091 = vmatmul.mubr.msk.f32.vlgmr.msra.gmra.mxu0 %vm1810_vm8, %v5476_v0 }
 0xc88   : > { %9093 = vmatprep.subr.mxu1 %v10176_v30  ;;  %9104 = vmatprep.subr.mxu0 %v10176_v30 }
 0xc89   : > { %9094 = vmatpush3.msra.mxu1 %v11377_v18  ;;  %9105 = vmatpush3.msra.mxu0 %v11381_v12 }
 0xc8a   : > { %9095 = vmatprep.subr.mxu1 %v10176_v30  ;;  %9106 = vmatprep.subr.mxu0 %v10176_v30 }
 0xc8b   : > { %9096 = vmatpush3.msra.mxu1 %v11387_v22  ;;  %9107 = vmatpush3.msra.mxu0 %v11391_v44 }
 0xc8c   : > { %9097 = vmatprep.subr.mxu1 %v10176_v30  ;;  %9108 = vmatprep.subr.mxu0 %v10176_v30 }
 0xc8d   : > { %9098 = vmatpush3.msra.mxu1 %v11397_v45  ;;  %9109 = vmatpush3.msra.mxu0 %v11401_v15 }
 0xc8e   : > { %9099 = vmatprep.subr.mxu1 %v10176_v30  ;;  %9110 = vmatprep.subr.mxu0 %v10176_v30 }
 0xc8f   : > { %9100 = vmatpush3.msra.mxu1 %v11407_v37  ;;  %9111 = vmatpush3.msra.mxu0 %v11411_v55 }
 0xc90   : > { %9101 = vmatprep.mubr.msk.f32.mxu1 %vm10177_vm6, %v10176_v30  ;;  %9112 = vmatprep.mubr.msk.f32.mxu0 %vm10177_vm6, %v10176_v30 }
 0xc91   : > { %9115 = vmatprep.subr.mxu1 %v10176_v30  ;;  %9126 = vmatprep.subr.mxu0 %v10176_v30 }
 0xd3e   : > { %v5545_v4 = vpop.f32.mrf.mxu1  ;;  %v5634_v29 = vpop.f32.mrf.mxu0 }
 0xd3f   : > { %v5550_v14 = vrot.slane %v5545_v4, 6  ;;  %v5551_v5 = vrot.slane %v5545_v4, 7  ;;  %v5639_v9 = vrot.slane %v5634_v29, 6  ;;  %v5640_v39 = vrot.slane %v5634_v29, 7 }
 0xd40   : > { %v9059_v26 = vpop.f32.mrf.mxu1  ;;  %v9070_v40 = vpop.f32.mrf.mxu0 }
 0xd41   : > { %v5554_v21 = vadd.f32 %v5550_v14, %v10743_v10  ;;  %v5555_v38 = vadd.f32 %v5551_v5, %v10747_v16  ;;  %v5643_v42 = vadd.f32 %v5639_v9, %v10745_v11  ;;  %v5644_v46 = vadd.f32 %v5640_v39, %v10749_v17 }
 0xd42   : > { %v5827_v40 = vrot.slane %v11432_v28, 7 }
 0xd43   : > { %v8082_v47 = vmul.f32 -1.442695, %v5554_v21  ;;  %v8083_v48 = vmul.f32 -1.442695, %v5555_v38  ;;  %v8085_v49 = vmul.f32 -1.442695, %v5643_v42 }
 0xd44   : > { %v8086_v50 = vmul.f32 -1.442695, %v5644_v46  ;;  %v5828_v46 = vrot.slane %v11430_v1, 7 }
 0xd45   : > { %9710 = vpow2.f32 %v8082_v47 }
 0xd46   : > { %9712 = vpow2.f32 %v8083_v48 }
 0xd47   : > { %9714 = vpow2.f32 %v8085_v49  ;;  %v5723_v56 = vpop.f32.mrf.mxu1  ;;  %v5802_v57 = vpop.f32.mrf.mxu0 }
 0xd48   : > { %9716 = vpow2.f32 %v8086_v50  ;;  %v5807_v58 = vrot.slane %v5802_v57, 6  ;;  %v5728_v59 = vrot.slane %v5723_v56, 6  ;;  %v5808_v62 = vrot.slane %v5802_v57, 7 }
 0xd49   : > { %v9081_v35 = vpop.f32.mrf.mxu1  ;;  %v9092_v8 = vpop.f32.mrf.mxu0  ;;  %v5729_v13 = vrot.slane %v5723_v56, 7 }
 0xd4a   : > { %v5811_v19 = vadd.f32 %v5807_v58, %v10755_v25  ;;  %v5812_v60 = vadd.f32 %v5808_v62, %v10759_v32  ;;  %v5732_v61 = vadd.f32 %v5728_v59, %v10753_v24 }
 0xd4b   : > { %v5733_v27 = vadd.f32 %v5729_v13, %v10757_v31 }
 0xd4c   : > { %v8089_v2 = vmul.f32 -1.442695, %v5811_v19  ;;  %v8090_v41 = vmul.f32 -1.442695, %v5812_v60  ;;  %9718 = vtanh.f32 %v5732_v61 }
 0xd4d   : > { %9720 = vtanh.f32 %v5733_v27 }
 0xd4e   : > { %9722 = vpow2.f32 %v8089_v2 }
 0xd4f   : > { %9724 = vpow2.f32 %v8090_v41 }
 0xd52   : > { %v9711_v3 = vpop.eup %9710 }
 0xd53   : > { %v9713_v63 = vpop.eup %9712  ;;  %v5562_v43 = vadd.f32 1.0, %v9711_v3 }
 0xd54   : > { %v9715_v20 = vpop.eup %9714  ;;  %v5563_v33 = vadd.f32 1.0, %v9713_v63 }
 0xd55   : > { %v9717_v23 = vpop.eup %9716  ;;  %9726 = vrcp.f32 %v5562_v43  ;;  %v5651_v0 = vadd.f32 1.0, %v9715_v20 }
 0xd56   : > { %9728 = vrcp.f32 %v5563_v33  ;;  %v5652_v4 = vadd.f32 1.0, %v9717_v23 }
 0xd57   : > { %9730 = vrcp.f32 %v5651_v0 }
 0xd58   : > { %9732 = vrcp.f32 %v5652_v4 }
 0xd59   : > { %v9719_v29 = vpop.eup %9718 }
 0xd5a   : > { %v9721_v14 = vpop.eup %9720 }
 0xd5b   : > { %v9723_v5 = vpop.eup %9722 }
 0xd5c   : > { %v9725_v9 = vpop.eup %9724  ;;  %v5819_v38 = vadd.f32 1.0, %v9723_v5 }
 0xd5d   : > { %v5820_v48 = vadd.f32 1.0, %v9725_v9 }
 0xd5e   : > { %9734 = vrcp.f32 %v5819_v38 }
 0xd5f   : > { %9736 = vrcp.f32 %v5820_v48 }
 0xd62   : > { %v9727_v39 = vpop.eup %9726 }
 0xd63   : > { %v9729_v26 = vpop.eup %9728  ;;  %v5833_v21 = vmul.f32 %v9727_v39, %v9719_v29 }
 0xd64   : > { %v9731_v42 = vpop.eup %9730  ;;  %v5834_v47 = vmul.f32 %v9729_v26, %v9721_v14 }
 0xd65   : > { %v9733_v49 = vpop.eup %9732  ;;  %v5831_v50 = vmul.f32 %v9731_v42, %v5827_v40 }
 0xd66   : > { %v5832_v56 = vmul.f32 %v9733_v49, %v5828_v46 }
 0xd67   : > { %v11491_v57 = vadd.f32 %v5833_v21, %v5831_v50 }
 0xd68   : > { %v11493_v58 = vadd.f32 %v5834_v47, %v5832_v56 }
 0xd69   : > { %9738 = vtanh.f32 %v11491_v57 }
 0xd6a   : > { %9740 = vtanh.f32 %v11493_v58 }
 0xd6b   : > { %v9735_v28 = vpop.eup %9734 }
 0xd6c   : > { %v9737_v59 = vpop.eup %9736 }
 0xd76   : > { %v9739_v62 = vpop.eup %9738 }
 0xd77   : > { %v9741_v35 = vpop.eup %9740  ;;  %v5839_v1 = vmul.f32 %v9739_v62, %v9735_v28 }
 0xd78   : > { %v5840_v8 = vmul.f32 %v9741_v35, %v9737_v59 }
 0xd79   : > { %v5843_v13 = vrot.slane %v5839_v1, 2 }
 0xd7a   : > { %v5844_v19 = vrot.slane %v5840_v8, 1 }
 0xd7c   : > { %v5845_v60 = vsel %vm2169_vm7, %v5844_v19, %v5843_v13 }
 0xd7d   : > { %9102 = vmatmul.mubr.msk.f32.vlgmr.msra.gmra.mxu1 %vm1810_vm8, %v5845_v60  ;;  %9113 = vmatmul.mubr.msk.f32.vlgmr.msra.gmra.mxu0 %vm1810_vm8, %v5845_v60 }
 0xd7e   : > { %9116 = vmatpush3.msra.mxu1 %v11331_v51  ;;  %9127 = vmatpush3.msra.mxu0 %v11335_v52 }
 0xd7f   : > { %9117 = vmatprep.subr.mxu1 %v10176_v30  ;;  %9128 = vmatprep.subr.mxu0 %v10176_v30 }
 0xd80   : > { %9118 = vmatpush3.msra.mxu1 %v11341_v53  ;;  %9129 = vmatpush3.msra.mxu0 %v11345_v34 }
 0xd81   : > { %9119 = vmatprep.subr.mxu1 %v10176_v30  ;;  %9130 = vmatprep.subr.mxu0 %v10176_v30 }
 0xd82   : > { %9120 = vmatpush3.msra.mxu1 %v11351_v54  ;;  %9131 = vmatpush3.msra.mxu0 %v11355_v36 }
 0xd83   : > { %9121 = vmatprep.subr.mxu1 %v10176_v30  ;;  %9132 = vmatprep.subr.mxu0 %v10176_v30 }
 0xd84   : > { %9122 = vmatpush3.msra.mxu1 %v11361_v6  ;;  %9123 = vmatprep.mubr.msk.f32.mxu1 %vm10177_vm6, %v10176_v30 }
 0xd85   : > { %9133 = vmatpush3.msra.mxu0 %v11367_v7  ;;  %9134 = vmatprep.mubr.msk.f32.mxu0 %vm10177_vm6, %v10176_v30 }
 0xd86   : > { %9124 = vmatmul.mubr.msk.f32.vlgmr.msra.gmra.mxu1 %vm1810_vm8, %v5845_v60  ;;  %9135 = vmatmul.mubr.msk.f32.vlgmr.msra.gmra.mxu0 %vm1810_vm8, %v5845_v60 }
 0xd87   : > { %9137 = vmatprep.subr.mxu1 %v10176_v30  ;;  %9148 = vmatprep.subr.mxu0 %v10176_v30 }
 0xd88   : > { %9138 = vmatpush3.msra.mxu1 %v11377_v18  ;;  %9149 = vmatpush3.msra.mxu0 %v11381_v12 }
 0xd89   : > { %9139 = vmatprep.subr.mxu1 %v10176_v30  ;;  %9150 = vmatprep.subr.mxu0 %v10176_v30 }
 0xd8a   : > { %9140 = vmatpush3.msra.mxu1 %v11387_v22  ;;  %9151 = vmatpush3.msra.mxu0 %v11391_v44 }
 0xd8b   : > { %9141 = vmatprep.subr.mxu1 %v10176_v30  ;;  %9152 = vmatprep.subr.mxu0 %v10176_v30 }
 0xd8c   : > { %9142 = vmatpush3.msra.mxu1 %v11397_v45  ;;  %9153 = vmatpush3.msra.mxu0 %v11401_v15 }
 0xd8d   : > { %9143 = vmatprep.subr.mxu1 %v10176_v30  ;;  %9154 = vmatprep.subr.mxu0 %v10176_v30 }
 0xd8e   : > { %9144 = vmatpush3.msra.mxu1 %v11407_v37  ;;  %9155 = vmatpush3.msra.mxu0 %v11411_v55 }
 0xd8f   : > { %9145 = vmatprep.mubr.msk.f32.mxu1 %vm10177_vm6, %v10176_v30  ;;  %9156 = vmatprep.mubr.msk.f32.mxu0 %vm10177_vm6, %v10176_v30 }
 0xd90   : > { %9159 = vmatprep.subr.mxu1 %v10176_v30  ;;  %9170 = vmatprep.subr.mxu0 %v10176_v30 }
 0xe3d   : > { %v5914_v61 = vpop.f32.mrf.mxu1  ;;  %v6003_v27 = vpop.f32.mrf.mxu0 }
 0xe3e   : > { %v5919_v2 = vrot.slane %v5914_v61, 5  ;;  %v5920_v41 = vrot.slane %v5914_v61, 6  ;;  %v6008_v3 = vrot.slane %v6003_v27, 5  ;;  %v6009_v63 = vrot.slane %v6003_v27, 6 }
 0xe3f   : > { %v9103_v43 = vpop.f32.mrf.mxu1  ;;  %v9114_v20 = vpop.f32.mrf.mxu0 }
 0xe40   : > { %v5923_v33 = vadd.f32 %v5919_v2, %v10743_v10  ;;  %v5924_v23 = vadd.f32 %v5920_v41, %v10747_v16  ;;  %v6012_v0 = vadd.f32 %v6008_v3, %v10745_v11  ;;  %v6013_v4 = vadd.f32 %v6009_v63, %v10749_v17 }
 0xe41   : > { %v6196_v20 = vrot.slane %v11491_v57, 7 }
 0xe42   : > { %v8092_v29 = vmul.f32 -1.442695, %v5923_v33  ;;  %v8093_v14 = vmul.f32 -1.442695, %v5924_v23  ;;  %v8095_v5 = vmul.f32 -1.442695, %v6012_v0 }
 0xe43   : > { %v8096_v9 = vmul.f32 -1.442695, %v6013_v4  ;;  %v6197_v4 = vrot.slane %v11493_v58, 7 }
 0xe44   : > { %9742 = vpow2.f32 %v8092_v29 }
 0xe45   : > { %9744 = vpow2.f32 %v8093_v14 }
 0xe46   : > { %9746 = vpow2.f32 %v8095_v5  ;;  %v6092_v39 = vpop.f32.mrf.mxu1  ;;  %v6171_v26 = vpop.f32.mrf.mxu0 }
 0xe47   : > { %9748 = vpow2.f32 %v8096_v9  ;;  %v6176_v40 = vrot.slane %v6171_v26, 5  ;;  %v6097_v21 = vrot.slane %v6092_v39, 5  ;;  %v6177_v38 = vrot.slane %v6171_v26, 6 }
 0xe48   : > { %v9125_v42 = vpop.f32.mrf.mxu1  ;;  %v9136_v46 = vpop.f32.mrf.mxu0  ;;  %v6098_v47 = vrot.slane %v6092_v39, 6 }
 0xe49   : > { %v6180_v48 = vadd.f32 %v6176_v40, %v10755_v25  ;;  %v6181_v49 = vadd.f32 %v6177_v38, %v10759_v32  ;;  %v6101_v50 = vadd.f32 %v6097_v21, %v10753_v24 }
 0xe4a   : > { %v6102_v56 = vadd.f32 %v6098_v47, %v10757_v31 }
 0xe4b   : > { %v8099_v28 = vmul.f32 -1.442695, %v6180_v48  ;;  %v8100_v59 = vmul.f32 -1.442695, %v6181_v49  ;;  %9750 = vtanh.f32 %v6101_v50 }
 0xe4c   : > { %9752 = vtanh.f32 %v6102_v56 }
 0xe4d   : > { %9754 = vpow2.f32 %v8099_v28 }
 0xe4e   : > { %9756 = vpow2.f32 %v8100_v59 }
 0xe51   : > { %v9743_v62 = vpop.eup %9742 }
 0xe52   : > { %v9745_v35 = vpop.eup %9744  ;;  %v5931_v1 = vadd.f32 1.0, %v9743_v62 }
 0xe53   : > { %v9747_v8 = vpop.eup %9746  ;;  %v5932_v13 = vadd.f32 1.0, %v9745_v35 }
 0xe54   : > { %v9749_v19 = vpop.eup %9748  ;;  %9758 = vrcp.f32 %v5931_v1  ;;  %v6020_v60 = vadd.f32 1.0, %v9747_v8 }
 0xe55   : > { %9760 = vrcp.f32 %v5932_v13  ;;  %v6021_v61 = vadd.f32 1.0, %v9749_v19 }
 0xe56   : > { %9762 = vrcp.f32 %v6020_v60 }
 0xe57   : > { %9764 = vrcp.f32 %v6021_v61 }
 0xe58   : > { %v9751_v27 = vpop.eup %9750 }
 0xe59   : > { %v9753_v2 = vpop.eup %9752 }
 0xe5a   : > { %v9755_v41 = vpop.eup %9754 }
 0xe5b   : > { %v9757_v3 = vpop.eup %9756  ;;  %v6188_v23 = vadd.f32 1.0, %v9755_v41 }
 0xe5c   : > { %v6189_v14 = vadd.f32 1.0, %v9757_v3 }
 0xe5d   : > { %9766 = vrcp.f32 %v6188_v23 }
 0xe5e   : > { %9768 = vrcp.f32 %v6189_v14 }
 0xe61   : > { %v9759_v63 = vpop.eup %9758 }
 0xe62   : > { %v9761_v43 = vpop.eup %9760  ;;  %v6202_v33 = vmul.f32 %v9759_v63, %v9751_v27 }
 0xe63   : > { %v9763_v0 = vpop.eup %9762  ;;  %v6203_v29 = vmul.f32 %v9761_v43, %v9753_v2 }
 0xe64   : > { %v9765_v5 = vpop.eup %9764  ;;  %v6200_v9 = vmul.f32 %v9763_v0, %v6196_v20 }
 0xe65   : > { %v6201_v39 = vmul.f32 %v9765_v5, %v6197_v4 }
 0xe66   : > { %v11552_v26 = vadd.f32 %v6202_v33, %v6200_v9 }
 0xe67   : > { %v11554_v40 = vadd.f32 %v6203_v29, %v6201_v39 }
 0xe68   : > { %9770 = vtanh.f32 %v11552_v26 }
 0xe69   : > { %9772 = vtanh.f32 %v11554_v40 }
 0xe6a   : > { %v9767_v57 = vpop.eup %9766 }
 0xe6b   : > { %v9769_v21 = vpop.eup %9768 }
 0xe75   : > { %v9771_v38 = vpop.eup %9770 }
 0xe76   : > { %v9773_v42 = vpop.eup %9772  ;;  %v6208_v58 = vmul.f32 %v9771_v38, %v9767_v57 }
 0xe77   : > { %v6209_v46 = vmul.f32 %v9773_v42, %v9769_v21 }
 0xe78   : > { %v6212_v47 = vrot.slane %v6208_v58, 3 }
 0xe79   : > { %v6213_v48 = vrot.slane %v6209_v46, 2 }
 0xe7b   : > { %v6214_v49 = vsel %vm2169_vm7, %v6213_v48, %v6212_v47 }
 0xe7c   : > { %9146 = vmatmul.mubr.msk.f32.vlgmr.msra.gmra.mxu1 %vm1810_vm8, %v6214_v49  ;;  %9157 = vmatmul.mubr.msk.f32.vlgmr.msra.gmra.mxu0 %vm1810_vm8, %v6214_v49 }
 0xe7d   : > { %9160 = vmatpush3.msra.mxu1 %v11331_v51  ;;  %9171 = vmatpush3.msra.mxu0 %v11335_v52 }
 0xe7e   : > { %9161 = vmatprep.subr.mxu1 %v10176_v30  ;;  %9172 = vmatprep.subr.mxu0 %v10176_v30 }
 0xe7f   : > { %9162 = vmatpush3.msra.mxu1 %v11341_v53  ;;  %9173 = vmatpush3.msra.mxu0 %v11345_v34 }
 0xe80   : > { %9163 = vmatprep.subr.mxu1 %v10176_v30  ;;  %9174 = vmatprep.subr.mxu0 %v10176_v30 }
 0xe81   : > { %9164 = vmatpush3.msra.mxu1 %v11351_v54  ;;  %9175 = vmatpush3.msra.mxu0 %v11355_v36 }
 0xe82   : > { %9165 = vmatprep.subr.mxu1 %v10176_v30  ;;  %9176 = vmatprep.subr.mxu0 %v10176_v30 }
 0xe83   : > { %9166 = vmatpush3.msra.mxu1 %v11361_v6  ;;  %9167 = vmatprep.mubr.msk.f32.mxu1 %vm10177_vm6, %v10176_v30 }
 0xe84   : > { %9177 = vmatpush3.msra.mxu0 %v11367_v7  ;;  %9178 = vmatprep.mubr.msk.f32.mxu0 %vm10177_vm6, %v10176_v30 }
 0xe85   : > { %9168 = vmatmul.mubr.msk.f32.vlgmr.msra.gmra.mxu1 %vm1810_vm8, %v6214_v49  ;;  %9179 = vmatmul.mubr.msk.f32.vlgmr.msra.gmra.mxu0 %vm1810_vm8, %v6214_v49 }
 0xe86   : > { %9181 = vmatprep.subr.mxu1 %v10176_v30  ;;  %9192 = vmatprep.subr.mxu0 %v10176_v30 }
 0xe87   : > { %9182 = vmatpush3.msra.mxu1 %v11377_v18  ;;  %9193 = vmatpush3.msra.mxu0 %v11381_v12 }
 0xe88   : > { %9183 = vmatprep.subr.mxu1 %v10176_v30  ;;  %9194 = vmatprep.subr.mxu0 %v10176_v30 }
 0xe89   : > { %9184 = vmatpush3.msra.mxu1 %v11387_v22  ;;  %9195 = vmatpush3.msra.mxu0 %v11391_v44 }
 0xe8a   : > { %9185 = vmatprep.subr.mxu1 %v10176_v30  ;;  %9196 = vmatprep.subr.mxu0 %v10176_v30 }
 0xe8b   : > { %9186 = vmatpush3.msra.mxu1 %v11397_v45  ;;  %9197 = vmatpush3.msra.mxu0 %v11401_v15 }
 0xe8c   : > { %9187 = vmatprep.subr.mxu1 %v10176_v30  ;;  %9198 = vmatprep.subr.mxu0 %v10176_v30 }
 0xe8d   : > { %9188 = vmatpush3.msra.mxu1 %v11407_v37  ;;  %9199 = vmatpush3.msra.mxu0 %v11411_v55 }
 0xe8e   : > { %9189 = vmatprep.mubr.msk.f32.mxu1 %vm10177_vm6, %v10176_v30  ;;  %9200 = vmatprep.mubr.msk.f32.mxu0 %vm10177_vm6, %v10176_v30 }
 0xe8f   : > { %9203 = vmatprep.subr.mxu1 %v10176_v30  ;;  %9214 = vmatprep.subr.mxu0 %v10176_v30 }
 0xf3c   : > { %v6283_v50 = vpop.f32.mrf.mxu1  ;;  %v6372_v56 = vpop.f32.mrf.mxu0 }
 0xf3d   : > { %v6288_v28 = vrot.slane %v6283_v50, 4  ;;  %v6289_v59 = vrot.slane %v6283_v50, 5  ;;  %v6377_v62 = vrot.slane %v6372_v56, 4  ;;  %v6378_v35 = vrot.slane %v6372_v56, 5 }
 0xf3e   : > { %v9147_v1 = vpop.f32.mrf.mxu1  ;;  %v9158_v8 = vpop.f32.mrf.mxu0 }
 0xf3f   : > { %v6292_v13 = vadd.f32 %v6288_v28, %v10743_v10  ;;  %v6293_v19 = vadd.f32 %v6289_v59, %v10747_v16  ;;  %v6381_v60 = vadd.f32 %v6377_v62, %v10745_v11  ;;  %v6382_v61 = vadd.f32 %v6378_v35, %v10749_v17 }
 0xf40   : > { %v6565_v8 = vrot.slane %v11552_v26, 7 }
 0xf41   : > { %v8102_v27 = vmul.f32 -1.442695, %v6292_v13  ;;  %v8103_v2 = vmul.f32 -1.442695, %v6293_v19  ;;  %v8105_v41 = vmul.f32 -1.442695, %v6381_v60 }
 0xf42   : > { %v8106_v3 = vmul.f32 -1.442695, %v6382_v61  ;;  %v6566_v61 = vrot.slane %v11554_v40, 7 }
 0xf43   : > { %9774 = vpow2.f32 %v8102_v27 }
 0xf44   : > { %9776 = vpow2.f32 %v8103_v2 }
 0xf45   : > { %9778 = vpow2.f32 %v8105_v41  ;;  %v6461_v63 = vpop.f32.mrf.mxu1  ;;  %v6540_v43 = vpop.f32.mrf.mxu0 }
 0xf46   : > { %9780 = vpow2.f32 %v8106_v3  ;;  %v6545_v20 = vrot.slane %v6540_v43, 4  ;;  %v6466_v33 = vrot.slane %v6461_v63, 4  ;;  %v6546_v23 = vrot.slane %v6540_v43, 5 }
 0xf47   : > { %v9169_v0 = vpop.f32.mrf.mxu1  ;;  %v9180_v4 = vpop.f32.mrf.mxu0  ;;  %v6467_v29 = vrot.slane %v6461_v63, 5 }
 0xf48   : > { %v6549_v14 = vadd.f32 %v6545_v20, %v10755_v25  ;;  %v6550_v5 = vadd.f32 %v6546_v23, %v10759_v32  ;;  %v6470_v9 = vadd.f32 %v6466_v33, %v10753_v24 }
 0xf49   : > { %v6471_v39 = vadd.f32 %v6467_v29, %v10757_v31 }
 0xf4a   : > { %v8109_v57 = vmul.f32 -1.442695, %v6549_v14  ;;  %v8110_v21 = vmul.f32 -1.442695, %v6550_v5  ;;  %9782 = vtanh.f32 %v6470_v9 }
 0xf4b   : > { %9784 = vtanh.f32 %v6471_v39 }
 0xf4c   : > { %9786 = vpow2.f32 %v8109_v57 }
 0xf4d   : > { %9788 = vpow2.f32 %v8110_v21 }
 0xf50   : > { %v9775_v38 = vpop.eup %9774 }
 0xf51   : > { %v9777_v42 = vpop.eup %9776  ;;  %v6300_v58 = vadd.f32 1.0, %v9775_v38 }
 0xf52   : > { %v9779_v46 = vpop.eup %9778  ;;  %v6301_v47 = vadd.f32 1.0, %v9777_v42 }
 0xf53   : > { %v9781_v48 = vpop.eup %9780  ;;  %9790 = vrcp.f32 %v6300_v58  ;;  %v6389_v49 = vadd.f32 1.0, %v9779_v46 }
 0xf54   : > { %9792 = vrcp.f32 %v6301_v47  ;;  %v6390_v50 = vadd.f32 1.0, %v9781_v48 }
 0xf55   : > { %9794 = vrcp.f32 %v6389_v49 }
 0xf56   : > { %9796 = vrcp.f32 %v6390_v50 }
 0xf57   : > { %v9783_v56 = vpop.eup %9782 }
 0xf58   : > { %v9785_v28 = vpop.eup %9784 }
 0xf59   : > { %v9787_v59 = vpop.eup %9786 }
 0xf5a   : > { %v9789_v62 = vpop.eup %9788  ;;  %v6557_v19 = vadd.f32 1.0, %v9787_v59 }
 0xf5b   : > { %v6558_v2 = vadd.f32 1.0, %v9789_v62 }
 0xf5c   : > { %9798 = vrcp.f32 %v6557_v19 }
 0xf5d   : > { %9800 = vrcp.f32 %v6558_v2 }
 0xf60   : > { %v9791_v35 = vpop.eup %9790 }
 0xf61   : > { %v9793_v1 = vpop.eup %9792  ;;  %v6571_v13 = vmul.f32 %v9791_v35, %v9783_v56 }
 0xf62   : > { %v9795_v60 = vpop.eup %9794  ;;  %v6572_v27 = vmul.f32 %v9793_v1, %v9785_v28 }
 0xf63   : > { %v9797_v41 = vpop.eup %9796  ;;  %v6569_v3 = vmul.f32 %v9795_v60, %v6565_v8 }
 0xf64   : > { %v6570_v63 = vmul.f32 %v9797_v41, %v6566_v61 }
 0xf65   : > { %v11613_v43 = vadd.f32 %v6571_v13, %v6569_v3 }
 0xf66   : > { %v11615_v20 = vadd.f32 %v6572_v27, %v6570_v63 }
 0xf67   : > { %9802 = vtanh.f32 %v11613_v43 }
 0xf68   : > { %9804 = vtanh.f32 %v11615_v20 }
 0xf69   : > { %v9799_v26 = vpop.eup %9798 }
 0xf6a   : > { %v9801_v33 = vpop.eup %9800 }
 0xf74   : > { %v9803_v23 = vpop.eup %9802 }
 0xf75   : > { %v9805_v0 = vpop.eup %9804  ;;  %v6577_v40 = vmul.f32 %v9803_v23, %v9799_v26  ;;  %v6934_v26 = vrot.slane %v11613_v43, 7 }
 0xf76   : > { %v6578_v4 = vmul.f32 %v9805_v0, %v9801_v33 }
 0xf77   : > { %v6581_v29 = vrot.slane %v6577_v40, 4  ;;  %v6935_v40 = vrot.slane %v11615_v20, 7 }
 0xf78   : > { %v6582_v14 = vrot.slane %v6578_v4, 3 }
 0xf7a   : > { %v6583_v5 = vsel %vm2169_vm7, %v6582_v14, %v6581_v29 }
 0xf7b   : > { %9190 = vmatmul.mubr.msk.f32.vlgmr.msra.gmra.mxu1 %vm1810_vm8, %v6583_v5  ;;  %9201 = vmatmul.mubr.msk.f32.vlgmr.msra.gmra.mxu0 %vm1810_vm8, %v6583_v5 }
 0xf7c   : > { %9204 = vmatpush3.msra.mxu1 %v11331_v51  ;;  %9215 = vmatpush3.msra.mxu0 %v11335_v52 }
 0xf7d   : > { %9205 = vmatprep.subr.mxu1 %v10176_v30  ;;  %9216 = vmatprep.subr.mxu0 %v10176_v30 }
 0xf7e   : > { %9206 = vmatpush3.msra.mxu1 %v11341_v53  ;;  %9217 = vmatpush3.msra.mxu0 %v11345_v34 }
 0xf7f   : > { %9207 = vmatprep.subr.mxu1 %v10176_v30  ;;  %9218 = vmatprep.subr.mxu0 %v10176_v30 }
 0xf80   : > { %9208 = vmatpush3.msra.mxu1 %v11351_v54  ;;  %9219 = vmatpush3.msra.mxu0 %v11355_v36 }
 0xf81   : > { %9209 = vmatprep.subr.mxu1 %v10176_v30  ;;  %9220 = vmatprep.subr.mxu0 %v10176_v30 }
 0xf82   : > { %9210 = vmatpush3.msra.mxu1 %v11361_v6  ;;  %9211 = vmatprep.mubr.msk.f32.mxu1 %vm10177_vm6, %v10176_v30 }
 0xf83   : > { %9221 = vmatpush3.msra.mxu0 %v11367_v7  ;;  %9222 = vmatprep.mubr.msk.f32.mxu0 %vm10177_vm6, %v10176_v30 }
 0xf84   : > { %9212 = vmatmul.mubr.msk.f32.vlgmr.msra.gmra.mxu1 %vm1810_vm8, %v6583_v5  ;;  %9223 = vmatmul.mubr.msk.f32.vlgmr.msra.gmra.mxu0 %vm1810_vm8, %v6583_v5 }
 0xf85   : > { %9225 = vmatprep.subr.mxu1 %v10176_v30  ;;  %9236 = vmatprep.subr.mxu0 %v10176_v30 }
 0xf86   : > { %9226 = vmatpush3.msra.mxu1 %v11377_v18  ;;  %9237 = vmatpush3.msra.mxu0 %v11381_v12 }
 0xf87   : > { %9227 = vmatprep.subr.mxu1 %v10176_v30  ;;  %9238 = vmatprep.subr.mxu0 %v10176_v30 }
 0xf88   : > { %9228 = vmatpush3.msra.mxu1 %v11387_v22  ;;  %9239 = vmatpush3.msra.mxu0 %v11391_v44 }
 0xf89   : > { %9229 = vmatprep.subr.mxu1 %v10176_v30  ;;  %9240 = vmatprep.subr.mxu0 %v10176_v30 }
 0xf8a   : > { %9230 = vmatpush3.msra.mxu1 %v11397_v45  ;;  %9241 = vmatpush3.msra.mxu0 %v11401_v15 }
 0xf8b   : > { %9231 = vmatprep.subr.mxu1 %v10176_v30  ;;  %9242 = vmatprep.subr.mxu0 %v10176_v30 }
 0xf8c   : > { %9232 = vmatpush3.msra.mxu1 %v11407_v37  ;;  %9243 = vmatpush3.msra.mxu0 %v11411_v55 }
 0xf8d   : > { %9233 = vmatprep.mubr.msk.f32.mxu1 %vm10177_vm6, %v10176_v30  ;;  %9244 = vmatprep.mubr.msk.f32.mxu0 %vm10177_vm6, %v10176_v30 }
 0xf8e   : > { %9247 = vmatprep.subr.mxu1 %v10176_v30  ;;  %9258 = vmatprep.subr.mxu0 %v10176_v30 }
0x103b   : > { %v6652_v51 = vpop.f32.mrf.mxu1  ;;  %v6741_v52 = vpop.f32.mrf.mxu0 }
0x103c   : > { %v6657_v53 = vrot.slane %v6652_v51, 3  ;;  %v6658_v34 = vrot.slane %v6652_v51, 4  ;;  %v6746_v54 = vrot.slane %v6741_v52, 3  ;;  %v6747_v36 = vrot.slane %v6741_v52, 4 }
0x103d   : > { %v9191_v6 = vpop.f32.mrf.mxu1  ;;  %v9202_v7 = vpop.f32.mrf.mxu0 }
0x103e   : > { %v6661_v18 = vadd.f32 %v6657_v53, %v10743_v10  ;;  %v6662_v12 = vadd.f32 %v6658_v34, %v10747_v16  ;;  %v6750_v22 = vadd.f32 %v6746_v54, %v10745_v11  ;;  %v6751_v44 = vadd.f32 %v6747_v36, %v10749_v17 }
0x1040   : > { %v8112_v45 = vmul.f32 -1.442695, %v6661_v18  ;;  %v8113_v15 = vmul.f32 -1.442695, %v6662_v12  ;;  %v8115_v37 = vmul.f32 -1.442695, %v6750_v22 }
0x1041   : > { %v8116_v55 = vmul.f32 -1.442695, %v6751_v44  ;;  %v11684_v22 = vld [vmem:[%s10615_s28 + $0x58] sm:$0xff] }
0x1042   : > { %9806 = vpow2.f32 %v8112_v45  ;;  %v11688_v44 = vld [vmem:[%s10615_s28 + $0x78] sm:$0xff]  ;;  %v11694_v45 = vld [vmem:[%s10615_s28 + $0x50] sm:$0xff] }
0x1043   : > { %9808 = vpow2.f32 %v8113_v15  ;;  %v11698_v15 = vld [vmem:[%s10615_s28 + $0x70] sm:$0xff] }
0x1044   : > { %9810 = vpow2.f32 %v8115_v37  ;;  %v6830_v9 = vpop.f32.mrf.mxu1  ;;  %v6909_v39 = vpop.f32.mrf.mxu0  ;;  %v11704_v37 = vld [vmem:[%s10615_s28 + $0x48] sm:$0xff] }
0x1045   : > { %9812 = vpow2.f32 %v8116_v55  ;;  %v6914_v57 = vrot.slane %v6909_v39, 3  ;;  %v6835_v21 = vrot.slane %v6830_v9, 3  ;;  %v6915_v38 = vrot.slane %v6909_v39, 4  ;;  %v11708_v55 = vld [vmem:[%s10615_s28 + $0x68] sm:$0xff]  ;;  %v11720_v39 = vld [vmem:[%s10615_s28 + $0x60] sm:$0xff] }
0x1046   : > { %v9213_v42 = vpop.f32.mrf.mxu1  ;;  %v9224_v58 = vpop.f32.mrf.mxu0  ;;  %v6836_v46 = vrot.slane %v6830_v9, 4  ;;  %v11714_v9 = vld [vmem:[%s10615_s28 + $0x40] sm:$0xff] }
0x1047   : > { %v6918_v47 = vadd.f32 %v6914_v57, %v10755_v25  ;;  %v6919_v48 = vadd.f32 %v6915_v38, %v10759_v32  ;;  %v6839_v49 = vadd.f32 %v6835_v21, %v10753_v24  ;;  %v9942_v57 = vld [vmem:[%s10615_s28 + $0x18] sm:$0xff]  ;;  %v9944_v38 = vld [vmem:[%s10615_s28 + $0x10] sm:$0xff]  ;;  %v9946_v58 = vld [vmem:[%s10615_s28 + $0x8] sm:$0xff] }
0x1048   : > { %v6840_v50 = vadd.f32 %v6836_v46, %v10757_v31  ;;  %v9943_v21 = vld [vmem:[%s10615_s28 + $0x38] sm:$0xff]  ;;  %v9945_v42 = vld [vmem:[%s10615_s28 + $0x30] sm:$0xff]  ;;  %v9947_v46 = vld [vmem:[%s10615_s28 + $0x28] sm:$0xff] }
0x1049   : > { %v8119_v56 = vmul.f32 -1.442695, %v6918_v47  ;;  %v8120_v28 = vmul.f32 -1.442695, %v6919_v48  ;;  %9814 = vtanh.f32 %v6839_v49  ;;  %v9948_v47 = vld [vmem:[%s10615_s28] sm:$0xff] }
0x104a   : > { %9816 = vtanh.f32 %v6840_v50  ;;  %v9949_v48 = vld [vmem:[%s10615_s28 + $0x20] sm:$0xff] }
0x104b   : > { %9818 = vpow2.f32 %v8119_v56 }
0x104c   : > { %9820 = vpow2.f32 %v8120_v28 }
0x104f   : > { %v9807_v59 = vpop.eup %9806 }
0x1050   : > { %v9809_v62 = vpop.eup %9808  ;;  %v6669_v35 = vadd.f32 1.0, %v9807_v59 }
0x1051   : > { %v9811_v1 = vpop.eup %9810  ;;  %v6670_v8 = vadd.f32 1.0, %v9809_v62 }
0x1052   : > { %v9813_v13 = vpop.eup %9812  ;;  %9822 = vrcp.f32 %v6669_v35  ;;  %v6758_v19 = vadd.f32 1.0, %v9811_v1 }
0x1053   : > { %9824 = vrcp.f32 %v6670_v8  ;;  %v6759_v60 = vadd.f32 1.0, %v9813_v13 }
0x1054   : > { %9826 = vrcp.f32 %v6758_v19 }
0x1055   : > { %9828 = vrcp.f32 %v6759_v60 }
0x1056   : > { %v9815_v61 = vpop.eup %9814 }
0x1057   : > { %v9817_v27 = vpop.eup %9816 }
0x1058   : > { %v9819_v2 = vpop.eup %9818 }
0x1059   : > { %v9821_v41 = vpop.eup %9820  ;;  %v6926_v23 = vadd.f32 1.0, %v9819_v2 }
0x105a   : > { %v6927_v29 = vadd.f32 1.0, %v9821_v41 }
0x105b   : > { %9830 = vrcp.f32 %v6926_v23 }
0x105c   : > { %9832 = vrcp.f32 %v6927_v29 }
0x105f   : > { %v9823_v3 = vpop.eup %9822 }
0x1060   : > { %v9825_v63 = vpop.eup %9824  ;;  %v6940_v33 = vmul.f32 %v9823_v3, %v9815_v61 }
0x1061   : > { %v9827_v0 = vpop.eup %9826  ;;  %v6941_v4 = vmul.f32 %v9825_v63, %v9817_v27 }
0x1062   : > { %v9829_v14 = vpop.eup %9828  ;;  %v6938_v5 = vmul.f32 %v9827_v0, %v6934_v26 }
0x1063   : > { %v6939_v51 = vmul.f32 %v9829_v14, %v6935_v40 }
0x1064   : > { %v11674_v52 = vadd.f32 %v6940_v33, %v6938_v5 }
0x1065   : > { %v11676_v53 = vadd.f32 %v6941_v4, %v6939_v51 }
0x1066   : > { %9834 = vtanh.f32 %v11674_v52 }
0x1067   : > { %9836 = vtanh.f32 %v11676_v53 }
0x1068   : > { %v9831_v43 = vpop.eup %9830 }
0x1069   : > { %v9833_v34 = vpop.eup %9832 }
0x1073   : > { %v9835_v20 = vpop.eup %9834 }
0x1074   : > { %v9837_v54 = vpop.eup %9836  ;;  %v6946_v36 = vmul.f32 %v9835_v20, %v9831_v43 }
0x1075   : > { %v6947_v6 = vmul.f32 %v9837_v54, %v9833_v34 }
0x1076   : > { %v6950_v7 = vrot.slane %v6946_v36, 5 }
0x1077   : > { %v6951_v18 = vrot.slane %v6947_v6, 4 }
0x1079   : > { %v6952_v12 = vsel %vm2169_vm7, %v6951_v18, %v6950_v7 }
0x107a   : > { %9234 = vmatmul.mubr.msk.f32.vlgmr.msra.gmra.mxu1 %vm1810_vm8, %v6952_v12  ;;  %9245 = vmatmul.mubr.msk.f32.vlgmr.msra.gmra.mxu0 %vm1810_vm8, %v6952_v12 }
0x107b   : > { %9248 = vmatpush3.msra.mxu1 %v11684_v22  ;;  %9259 = vmatpush3.msra.mxu0 %v11688_v44 }
0x107c   : > { %9249 = vmatprep.subr.mxu1 %v10176_v30  ;;  %9260 = vmatprep.subr.mxu0 %v10176_v30 }
0x107d   : > { %9250 = vmatpush3.msra.mxu1 %v11694_v45  ;;  %9261 = vmatpush3.msra.mxu0 %v11698_v15 }
0x107e   : > { %9251 = vmatprep.subr.mxu1 %v10176_v30  ;;  %9262 = vmatprep.subr.mxu0 %v10176_v30 }
0x107f   : > { %9252 = vmatpush3.msra.mxu1 %v11704_v37  ;;  %9263 = vmatpush3.msra.mxu0 %v11708_v55 }
0x1080   : > { %9253 = vmatprep.subr.mxu1 %v10176_v30  ;;  %9264 = vmatprep.subr.mxu0 %v10176_v30 }
0x1081   : > { %9254 = vmatpush3.msra.mxu1 %v11714_v9  ;;  %9255 = vmatprep.mubr.msk.f32.mxu1 %vm10177_vm6, %v10176_v30 }
0x1082   : > { %9265 = vmatpush3.msra.mxu0 %v11720_v39  ;;  %9266 = vmatprep.mubr.msk.f32.mxu0 %vm10177_vm6, %v10176_v30 }
0x1083   : > { %9256 = vmatmul.mubr.msk.f32.vlgmr.msra.gmra.mxu1 %vm1810_vm8, %v6952_v12  ;;  %9267 = vmatmul.mubr.msk.f32.vlgmr.msra.gmra.mxu0 %vm1810_vm8, %v6952_v12 }
0x1084   : > { %9269 = vmatprep.subr.mxu1 %v10176_v30  ;;  %9280 = vmatprep.subr.mxu0 %v10176_v30 }
0x1085   : > { %9270 = vmatpush3.msra.mxu1 %v9942_v57  ;;  %9281 = vmatpush3.msra.mxu0 %v9943_v21 }
0x1086   : > { %9271 = vmatprep.subr.mxu1 %v10176_v30  ;;  %9282 = vmatprep.subr.mxu0 %v10176_v30 }
0x1087   : > { %9272 = vmatpush3.msra.mxu1 %v9944_v38  ;;  %9283 = vmatpush3.msra.mxu0 %v9945_v42 }
0x1088   : > { %9273 = vmatprep.subr.mxu1 %v10176_v30  ;;  %9284 = vmatprep.subr.mxu0 %v10176_v30 }
0x1089   : > { %9274 = vmatpush3.msra.mxu1 %v9946_v58  ;;  %9285 = vmatpush3.msra.mxu0 %v9947_v46 }
0x108a   : > { %9275 = vmatprep.subr.mxu1 %v10176_v30  ;;  %9286 = vmatprep.subr.mxu0 %v10176_v30 }
0x108b   : > { %9276 = vmatpush3.msra.mxu1 %v9948_v47  ;;  %9287 = vmatpush3.msra.mxu0 %v9949_v48  ;;  %v7303_v48 = vrot.slane %v11674_v52, 7 }
0x108c   : > { %9277 = vmatprep.mubr.msk.f32.mxu1 %vm10177_vm6, %v10176_v30  ;;  %9288 = vmatprep.mubr.msk.f32.mxu0 %vm10177_vm6, %v10176_v30 }
0x108d   : > { %9291 = vmatprep.subr.mxu1 %v10176_v30  ;;  %9302 = vmatprep.subr.mxu0 %v10176_v30 }
0x113a   : > { %v7021_v49 = vpop.f32.mrf.mxu1  ;;  %v7110_v50 = vpop.f32.mrf.mxu0 }
0x113b   : > { %v7026_v56 = vrot.slane %v7021_v49, 2  ;;  %v7027_v28 = vrot.slane %v7021_v49, 3  ;;  %v7115_v59 = vrot.slane %v7110_v50, 2  ;;  %v7116_v62 = vrot.slane %v7110_v50, 3 }
0x113c   : > { %v9235_v35 = vpop.f32.mrf.mxu1  ;;  %v9246_v1 = vpop.f32.mrf.mxu0 }
0x113d   : > { %v7030_v8 = vadd.f32 %v7026_v56, %v10743_v10  ;;  %v7031_v13 = vadd.f32 %v7027_v28, %v10747_v16  ;;  %v7119_v19 = vadd.f32 %v7115_v59, %v10745_v11  ;;  %v7120_v60 = vadd.f32 %v7116_v62, %v10749_v17 }
0x113e   : > { %v7304_v28 = vrot.slane %v11676_v53, 7 }
0x113f   : > { %v8122_v61 = vmul.f32 -1.442695, %v7030_v8  ;;  %v8123_v27 = vmul.f32 -1.442695, %v7031_v13  ;;  %v8125_v2 = vmul.f32 -1.442695, %v7119_v19 }
0x1140   : > { %v8126_v41 = vmul.f32 -1.442695, %v7120_v60 }
0x1141   : > { %9838 = vpow2.f32 %v8122_v61 }
0x1142   : > { %9840 = vpow2.f32 %v8123_v27 }
0x1143   : > { %9842 = vpow2.f32 %v8125_v2  ;;  %v7199_v3 = vpop.f32.mrf.mxu1  ;;  %v7278_v63 = vpop.f32.mrf.mxu0 }
0x1144   : > { %9844 = vpow2.f32 %v8126_v41  ;;  %v7283_v26 = vrot.slane %v7278_v63, 2  ;;  %v7204_v33 = vrot.slane %v7199_v3, 2  ;;  %v7284_v23 = vrot.slane %v7278_v63, 3 }
0x1145   : > { %v9257_v0 = vpop.f32.mrf.mxu1  ;;  %v9268_v40 = vpop.f32.mrf.mxu0  ;;  %v7205_v4 = vrot.slane %v7199_v3, 3 }
0x1146   : > { %v7287_v29 = vadd.f32 %v7283_v26, %v10755_v25  ;;  %v7288_v14 = vadd.f32 %v7284_v23, %v10759_v32  ;;  %v7208_v5 = vadd.f32 %v7204_v33, %v10753_v24 }
0x1147   : > { %v7209_v51 = vadd.f32 %v7205_v4, %v10757_v31 }
0x1148   : > { %v8129_v43 = vmul.f32 -1.442695, %v7287_v29  ;;  %v8130_v34 = vmul.f32 -1.442695, %v7288_v14  ;;  %9846 = vtanh.f32 %v7208_v5 }
0x1149   : > { %9848 = vtanh.f32 %v7209_v51 }
0x114a   : > { %9850 = vpow2.f32 %v8129_v43 }
0x114b   : > { %9852 = vpow2.f32 %v8130_v34 }
0x114e   : > { %v9839_v20 = vpop.eup %9838 }
0x114f   : > { %v9841_v54 = vpop.eup %9840  ;;  %v7038_v36 = vadd.f32 1.0, %v9839_v20 }
0x1150   : > { %v9843_v6 = vpop.eup %9842  ;;  %v7039_v7 = vadd.f32 1.0, %v9841_v54 }
0x1151   : > { %v9845_v18 = vpop.eup %9844  ;;  %9854 = vrcp.f32 %v7038_v36  ;;  %v7127_v12 = vadd.f32 1.0, %v9843_v6 }
0x1152   : > { %9856 = vrcp.f32 %v7039_v7  ;;  %v7128_v57 = vadd.f32 1.0, %v9845_v18 }
0x1153   : > { %9858 = vrcp.f32 %v7127_v12 }
0x1154   : > { %9860 = vrcp.f32 %v7128_v57 }
0x1155   : > { %v9847_v21 = vpop.eup %9846 }
0x1156   : > { %v9849_v38 = vpop.eup %9848 }
0x1157   : > { %v9851_v42 = vpop.eup %9850 }
0x1158   : > { %v9853_v58 = vpop.eup %9852  ;;  %v7295_v50 = vadd.f32 1.0, %v9851_v42 }
0x1159   : > { %v7296_v62 = vadd.f32 1.0, %v9853_v58 }
0x115a   : > { %9862 = vrcp.f32 %v7295_v50 }
0x115b   : > { %9864 = vrcp.f32 %v7296_v62 }
0x115e   : > { %v9855_v46 = vpop.eup %9854 }
0x115f   : > { %v9857_v47 = vpop.eup %9856  ;;  %v7309_v49 = vmul.f32 %v9855_v46, %v9847_v21 }
0x1160   : > { %v9859_v56 = vpop.eup %9858  ;;  %v7310_v59 = vmul.f32 %v9857_v47, %v9849_v38 }
0x1161   : > { %v9861_v35 = vpop.eup %9860  ;;  %v7307_v1 = vmul.f32 %v9859_v56, %v7303_v48 }
0x1162   : > { %v7308_v8 = vmul.f32 %v9861_v35, %v7304_v28 }
0x1163   : > { %v11759_v13 = vadd.f32 %v7309_v49, %v7307_v1 }
0x1164   : > { %v11761_v19 = vadd.f32 %v7310_v59, %v7308_v8 }
0x1165   : > { %9866 = vtanh.f32 %v11759_v13  ;;  %v7672_v49 = vrot.slane %v11759_v13, 7 }
0x1166   : > { %9868 = vtanh.f32 %v11761_v19  ;;  %v7673_v59 = vrot.slane %v11761_v19, 7 }
0x1167   : > { %v9863_v52 = vpop.eup %9862 }
0x1168   : > { %v9865_v60 = vpop.eup %9864 }
0x1172   : > { %v9867_v61 = vpop.eup %9866 }
0x1173   : > { %v9869_v27 = vpop.eup %9868  ;;  %v7315_v53 = vmul.f32 %v9867_v61, %v9863_v52 }
0x1174   : > { %v7316_v2 = vmul.f32 %v9869_v27, %v9865_v60 }
0x1175   : > { %v7319_v41 = vrot.slane %v7315_v53, 6 }
0x1176   : > { %v7320_v3 = vrot.slane %v7316_v2, 5 }
0x1178   : > { %v7321_v63 = vsel %vm2169_vm7, %v7320_v3, %v7319_v41 }
0x1179   : > { %9278 = vmatmul.mubr.msk.f32.vlgmr.msra.gmra.mxu1 %vm1810_vm8, %v7321_v63  ;;  %9289 = vmatmul.mubr.msk.f32.vlgmr.msra.gmra.mxu0 %vm1810_vm8, %v7321_v63 }
0x117a   : > { %9292 = vmatpush3.msra.mxu1 %v11684_v22  ;;  %9303 = vmatpush3.msra.mxu0 %v11688_v44 }
0x117b   : > { %9293 = vmatprep.subr.mxu1 %v10176_v30  ;;  %9304 = vmatprep.subr.mxu0 %v10176_v30 }
0x117c   : > { %9294 = vmatpush3.msra.mxu1 %v11694_v45  ;;  %9305 = vmatpush3.msra.mxu0 %v11698_v15 }
0x117d   : > { %9295 = vmatprep.subr.mxu1 %v10176_v30  ;;  %9306 = vmatprep.subr.mxu0 %v10176_v30 }
0x117e   : > { %9296 = vmatpush3.msra.mxu1 %v11704_v37  ;;  %9307 = vmatpush3.msra.mxu0 %v11708_v55 }
0x117f   : > { %9297 = vmatprep.subr.mxu1 %v10176_v30  ;;  %9308 = vmatprep.subr.mxu0 %v10176_v30 }
0x1180   : > { %9298 = vmatpush3.msra.mxu1 %v11714_v9  ;;  %9299 = vmatprep.mubr.msk.f32.mxu1 %vm10177_vm6, %v10176_v30 }
0x1181   : > { %9309 = vmatpush3.msra.mxu0 %v11720_v39  ;;  %9310 = vmatprep.mubr.msk.f32.mxu0 %vm10177_vm6, %v10176_v30 }
0x1182   : > { %9300 = vmatmul.mubr.msk.f32.vlgmr.msra.gmra.mxu1 %vm1810_vm8, %v7321_v63  ;;  %9311 = vmatmul.mubr.msk.f32.vlgmr.msra.gmra.mxu0 %vm1810_vm8, %v7321_v63 }
0x1239   : > { %v7390_v22 = vpop.f32.mrf.mxu1  ;;  %v7479_v44 = vpop.f32.mrf.mxu0 }
0x123a   : > { %v7395_v45 = vrot.slane %v7390_v22, 1  ;;  %v7396_v15 = vrot.slane %v7390_v22, 2  ;;  %v7484_v37 = vrot.slane %v7479_v44, 1  ;;  %v7485_v55 = vrot.slane %v7479_v44, 2 }
0x123b   : > { %v9279_v26 = vpop.f32.mrf.mxu1  ;;  %v9290_v9 = vpop.f32.mrf.mxu0 }
0x123c   : > { %v7399_v33 = vadd.f32 %v7395_v45, %v10743_v10  ;;  %v7400_v23 = vadd.f32 %v7396_v15, %v10747_v16  ;;  %v7488_v39 = vadd.f32 %v7484_v37, %v10745_v11  ;;  %v7489_v30 = vadd.f32 %v7485_v55, %v10749_v17 }
0x123e   : > { %v8132_v0 = vmul.f32 -1.442695, %v7399_v33  ;;  %v8133_v40 = vmul.f32 -1.442695, %v7400_v23  ;;  %v8135_v4 = vmul.f32 -1.442695, %v7488_v39 }
0x123f   : > { %v8136_v29 = vmul.f32 -1.442695, %v7489_v30 }
0x1240   : > { %9870 = vpow2.f32 %v8132_v0 }
0x1241   : > { %9872 = vpow2.f32 %v8133_v40 }
0x1242   : > { %9874 = vpow2.f32 %v8135_v4  ;;  %v7568_v14 = vpop.f32.mrf.mxu1  ;;  %v7647_v5 = vpop.f32.mrf.mxu0 }
0x1243   : > { %9876 = vpow2.f32 %v8136_v29  ;;  %v7652_v51 = vrot.slane %v7647_v5, 1  ;;  %v7573_v43 = vrot.slane %v7568_v14, 1  ;;  %v7653_v34 = vrot.slane %v7647_v5, 2 }
0x1244   : > { %v9301_v10 = vpop.f32.mrf.mxu1  ;;  %v9312_v20 = vpop.f32.mrf.mxu0  ;;  %v7574_v16 = vrot.slane %v7568_v14, 2 }
0x1245   : > { %v7656_v11 = vadd.f32 %v7652_v51, %v10755_v25  ;;  %v7657_v17 = vadd.f32 %v7653_v34, %v10759_v32  ;;  %v7577_v54 = vadd.f32 %v7573_v43, %v10753_v24 }
0x1246   : > { %v7578_v36 = vadd.f32 %v7574_v16, %v10757_v31 }
0x1247   : > { %v8139_v6 = vmul.f32 -1.442695, %v7656_v11  ;;  %v8140_v7 = vmul.f32 -1.442695, %v7657_v17  ;;  %9878 = vtanh.f32 %v7577_v54 }
0x1248   : > { %9880 = vtanh.f32 %v7578_v36 }
0x1249   : > { %9882 = vpow2.f32 %v8139_v6 }
0x124a   : > { %9884 = vpow2.f32 %v8140_v7 }
0x124d   : > { %v9871_v18 = vpop.eup %9870 }
0x124e   : > { %v9873_v12 = vpop.eup %9872  ;;  %v7407_v57 = vadd.f32 1.0, %v9871_v18 }
0x124f   : > { %v9875_v21 = vpop.eup %9874  ;;  %v7408_v38 = vadd.f32 1.0, %v9873_v12 }
0x1250   : > { %v9877_v42 = vpop.eup %9876  ;;  %9886 = vrcp.f32 %v7407_v57  ;;  %v7496_v25 = vadd.f32 1.0, %v9875_v21 }
0x1251   : > { %9888 = vrcp.f32 %v7408_v38  ;;  %v7497_v32 = vadd.f32 1.0, %v9877_v42 }
0x1252   : > { %9890 = vrcp.f32 %v7496_v25 }
0x1253   : > { %9892 = vrcp.f32 %v7497_v32 }
0x1254   : > { %v9879_v24 = vpop.eup %9878 }
0x1255   : > { %v9881_v31 = vpop.eup %9880 }
0x1256   : > { %v9883_v58 = vpop.eup %9882 }
0x1257   : > { %v9885_v46 = vpop.eup %9884  ;;  %v7664_v56 = vadd.f32 1.0, %v9883_v58 }
0x1258   : > { %v7665_v35 = vadd.f32 1.0, %v9885_v46 }
0x1259   : > { %9894 = vrcp.f32 %v7664_v56 }
0x125a   : > { %9896 = vrcp.f32 %v7665_v35 }
0x125d   : > { %v9887_v47 = vpop.eup %9886 }
0x125e   : > { %v9889_v48 = vpop.eup %9888  ;;  %v7678_v50 = vmul.f32 %v9887_v47, %v9879_v24 }
0x125f   : > { %v9891_v28 = vpop.eup %9890  ;;  %v7679_v62 = vmul.f32 %v9889_v48, %v9881_v31 }
0x1260   : > { %v9893_v1 = vpop.eup %9892  ;;  %v7676_v8 = vmul.f32 %v9891_v28, %v7672_v49 }
0x1261   : > { %v7677_v52 = vmul.f32 %v9893_v1, %v7673_v59 }
0x1262   : > { %v7680_v60 = vadd.f32 %v7678_v50, %v7676_v8 }
0x1263   : > { %v7681_v61 = vadd.f32 %v7679_v62, %v7677_v52 }
0x1264   : > { %9898 = vtanh.f32 %v7680_v60 }
0x1265   : > { %9900 = vtanh.f32 %v7681_v61 }
0x1266   : > { %v9895_v27 = vpop.eup %9894 }
0x1267   : > { %v9897_v13 = vpop.eup %9896 }
0x1271   : > { %v9899_v53 = vpop.eup %9898 }
0x1272   : > { %v9901_v19 = vpop.eup %9900  ;;  %v7684_v2 = vmul.f32 %v9899_v53, %v9895_v27 }
0x1273   : > { %v7685_v41 = vmul.f32 %v9901_v19, %v9897_v13 }
0x1274   : > { %7692 = vst.msk [vmem:[%s630_s29 - $0x7] sm:$0x80] %vm7691_vm9, %v7684_v2 }
0x1275   : > { %v7688_v3 = vrot.slane %v7685_v41, 7 }
0x1277   : > { %7694 = vst.msk [vmem:[%s630_s29 + $0x1] sm:$0x1] %vm7693_vm10, %v7688_v3 }
0x1278 PF: > { %s11853_s16 = sld [smem:[#allocation18_spill]]  ;;  %s11856_s13 = smov %s10156_s14 }
0x1279   : > { %s11854_s6 = sld [smem:[#allocation17_spill]] }
0x127a   : > { %s11855_s15 = sld [smem:[#allocation19_spill]] }
0x127e   : > { %p29_p13 = scmp.ge.s32.totalorder %s11853_s16, 4  }
0x127f   : > { %s11857_s14 = smov %s11854_s6 }
0x1280   :  { %31 = sbr.rel (!%p29_p13) target bundleno = 14 (0xe), region = 173 }
0x1285   :  { %7714 = vsyncpa [#allocation4], 1 }
0x1286   :  { %7716 = vsyncpa [#allocation4 + $0x1], 1 }
0x1287   :  { %7717 = vsyncpa [#allocation6], 1 }
0x1288   :  { %7719 = vsyncpa [#allocation6 + $0x1], 1 }
0x1289   :  { %7720 = vsyncpa [#allocation9], 1 }
0x128a   :  { %7722 = vsyncpa [#allocation9 + $0x1], 1 }
0x128b   :  { %7723 = vsyncpa [#allocation12], 1 }
0x128c   :  { %7725 = vsyncpa [#allocation12 + $0x1], 1 }

</bundles_post_ra>
